<compile_context>
chip_gen: v7x
topology: tpu7x:2x2x1
jax: 0.10.0
libtpu: 0.0.40
codegen_flags: <defaults>
</compile_context>

<pallas_src>
import functools

import jax
import jax.numpy as jnp
from jax import lax
from jax.experimental import pallas as pl
from jax.experimental.pallas import tpu as pltpu

# 32 MiB: equals the v6e/v7x scoped default, raises v5e's 16 MiB default, and all
# tiles below stay well under it (largest call uses < 6 MiB of VMEM).
_VMEM_LIMIT = 32 * 1024 * 1024


def _round_up(x, m):
    return (x + m - 1) // m * m


# ----------------------------------------------------------------------------
# Pallas kernel 1: out = relu?(x @ w + b), M-tiled, bf16 MXU, f32 accumulate
# ----------------------------------------------------------------------------
def _matmul_bias_kernel(x_ref, w_ref, b_ref, o_ref, *, apply_relu):
    acc = jnp.dot(x_ref[...], w_ref[...], preferred_element_type=jnp.float32)
    acc = acc + b_ref[...]                    # (1, N) broadcasts over the M tile
    if apply_relu:
        acc = jnp.maximum(acc, 0.0)
    o_ref[...] = acc.astype(o_ref.dtype)


def matmul_bias_relu(x, w, b, *, apply_relu, tile_m=1024, out_dtype=jnp.bfloat16):
    """x:(M,K), w:(K,N), b:(1,N) -> (M,N).  Tiles M; K and N stay whole."""
    x = x.astype(jnp.bfloat16)
    w = w.astype(jnp.bfloat16)
    M, K = x.shape
    K2, N = w.shape
    assert K == K2, (K, K2)
    b = b.reshape(1, N).astype(jnp.float32)

    tile = min(tile_m, _round_up(M, 8))       # multiple of 8 (sublane rule)
    m_pad = _round_up(M, tile)                # pad ragged M -> no OOB tiles
    if m_pad != M:
        x = jnp.pad(x, ((0, m_pad - M), (0, 0)))
    grid = (m_pad // tile,)

    out_bytes = jnp.dtype(out_dtype).itemsize
    flops = 2 * m_pad * K * N
    bytes_accessed = m_pad * K * 2 + K * N * 2 + N * 4 + m_pad * N * out_bytes

    out = pl.pallas_call(
        functools.partial(_matmul_bias_kernel, apply_relu=apply_relu),
        out_shape=jax.ShapeDtypeStruct((m_pad, N), out_dtype),
        grid=grid,
        in_specs=[
            pl.BlockSpec((tile, K), lambda i: (i, 0)),
            pl.BlockSpec((K, N), lambda i: (0, 0)),
            pl.BlockSpec((1, N), lambda i: (0, 0)),
        ],
        out_specs=pl.BlockSpec((tile, N), lambda i: (i, 0)),
        compiler_params=pltpu.CompilerParams(
            dimension_semantics=("parallel",),
            vmem_limit_bytes=_VMEM_LIMIT),
        cost_estimate=pl.CostEstimate(flops=flops, transcendentals=0,
                                      bytes_accessed=bytes_accessed),
    )(x, w, b)
    return out[:M] if m_pad != M else out


# ----------------------------------------------------------------------------
# Pallas kernel 2: fused fc1(+ReLU) + fc2 in one call (weights fit VMEM)
# ----------------------------------------------------------------------------
def _fc_fused_kernel(x_ref, w1_ref, b1_ref, w2_ref, b2_ref, o_ref):
    h = jnp.dot(x_ref[...], w1_ref[...], preferred_element_type=jnp.float32)
    h = jnp.maximum(h + b1_ref[...], 0.0)
    acc = jnp.dot(h.astype(jnp.bfloat16), w2_ref[...],
                  preferred_element_type=jnp.float32)
    o_ref[...] = (acc + b2_ref[...]).astype(o_ref.dtype)


def fc_fused(x, w1, b1, w2, b2, *, tile_b=256):
    """relu(x @ w1 + b1) @ w2 + b2.  w2's last dim is pre-padded to 128k (lane-dense)."""
    x = x.astype(jnp.bfloat16)
    B, K1 = x.shape
    _, N1 = w1.shape
    _, N2 = w2.shape

    tile = min(tile_b, _round_up(B, 8))
    b_pad = _round_up(B, tile)
    if b_pad != B:
        x = jnp.pad(x, ((0, b_pad - B), (0, 0)))
    grid = (b_pad // tile,)

    flops = 2 * b_pad * (K1 * N1 + N1 * N2)
    bytes_accessed = (b_pad * K1 * 2 + K1 * N1 * 2 + N1 * 4
                      + N1 * N2 * 2 + N2 * 4 + b_pad * N2 * 4)

    out = pl.pallas_call(
        _fc_fused_kernel,
        out_shape=jax.ShapeDtypeStruct((b_pad, N2), jnp.float32),
        grid=grid,
        in_specs=[
            pl.BlockSpec((tile, K1), lambda i: (i, 0)),
            pl.BlockSpec((K1, N1), lambda i: (0, 0)),
            pl.BlockSpec((1, N1), lambda i: (0, 0)),
            pl.BlockSpec((N1, N2), lambda i: (0, 0)),
            pl.BlockSpec((1, N2), lambda i: (0, 0)),
        ],
        out_specs=pl.BlockSpec((tile, N2), lambda i: (i, 0)),
        compiler_params=pltpu.CompilerParams(
            dimension_semantics=("parallel",),
            vmem_limit_bytes=_VMEM_LIMIT),
        cost_estimate=pl.CostEstimate(flops=flops, transcendentals=0,
                                      bytes_accessed=bytes_accessed),
    )(x, w1.astype(jnp.bfloat16), b1.astype(jnp.float32),
      w2.astype(jnp.bfloat16), b2.astype(jnp.float32))
    return out[:B] if b_pad != B else out


# ----------------------------------------------------------------------------
# im2col glue: NHWC, static strided slices only (no gather, no transpose)
# ----------------------------------------------------------------------------
def im2col_nhwc(x, kh, kw, stride):
    """(B,H,W,C) -> (B*OH*OW, kh*kw*C) with feature order (kh, kw, c)."""
    # TODO(synk): fold this patch extraction into the conv Pallas kernel so the
    # expanded patch matrix never round-trips through HBM.
    B, H, W, C = x.shape
    oh = (H - kh) // stride + 1
    ow = (W - kw) // stride + 1
    cols = []
    for i in range(kh):
        for j in range(kw):
            cols.append(lax.slice(
                x, (0, i, j, 0),
                (B, i + stride * (oh - 1) + 1, j + stride * (ow - 1) + 1, C),
                (1, stride, stride, 1)))          # (B, oh, ow, C)
    patches = jnp.stack(cols, axis=3)             # (B, oh, ow, kh*kw, C)
    return patches.reshape(B * oh * ow, kh * kw * C), oh, ow


# ----------------------------------------------------------------------------
# Parameters (torch layout) and one-time re-layout for the kernels
# ----------------------------------------------------------------------------
def init_dqn_params(key, in_channels, out_dim):
    ks = jax.random.split(key, 8)
    return {
        "conv1_w": jax.random.normal(ks[0], (16, in_channels, 8, 8), jnp.float32) * 0.05,
        "conv1_b": jax.random.normal(ks[1], (16,), jnp.float32) * 0.01,
        "conv2_w": jax.random.normal(ks[2], (32, 16, 4, 4), jnp.float32) * 0.05,
        "conv2_b": jax.random.normal(ks[3], (32,), jnp.float32) * 0.01,
        "fc1_w":   jax.random.normal(ks[4], (256, 2592), jnp.float32) * 0.02,
        "fc1_b":   jax.random.normal(ks[5], (256,), jnp.float32) * 0.01,
        "fc2_w":   jax.random.normal(ks[6], (out_dim, 256), jnp.float32) * 0.02,
        "fc2_b":   jax.random.normal(ks[7], (out_dim,), jnp.float32) * 0.01,
    }


def prepare_kernel_params(p, out_dim):
    """Fold all NCHW / channel-major-flatten bookkeeping into the (tiny) weights."""
    o1, c_in, kh1, kw1 = p["conv1_w"].shape
    o2, c2, kh2, kw2 = p["conv2_w"].shape
    # conv weights: (O,I,KH,KW) -> (KH*KW*I, O), matching im2col feature order (kh,kw,c)
    w1 = jnp.transpose(p["conv1_w"], (2, 3, 1, 0)).reshape(kh1 * kw1 * c_in, o1)
    w2 = jnp.transpose(p["conv2_w"], (2, 3, 1, 0)).reshape(kh2 * kw2 * c2, o2)
    # fc1: torch flattens NCHW -> columns ordered (c,h,w); we flatten NHWC -> (h,w,c)
    fc1 = p["fc1_w"].reshape(256, o2, 9, 9).transpose(0, 2, 3, 1).reshape(256, 2592)
    fc1_w = fc1.T                                           # (2592, 256)
    # fc2: pad the tiny output dim to a multiple of 128 -> lane-dense final store
    n_pad = _round_up(out_dim, 128)
    fc2_w = jnp.zeros((256, n_pad), jnp.float32).at[:, :out_dim].set(p["fc2_w"].T)
    fc2_b = jnp.zeros((1, n_pad), jnp.float32).at[0, :out_dim].set(p["fc2_b"])
    return {
        "w1": w1.astype(jnp.bfloat16), "b1": p["conv1_b"].reshape(1, -1),
        "w2": w2.astype(jnp.bfloat16), "b2": p["conv2_b"].reshape(1, -1),
        "fc1_w": fc1_w.astype(jnp.bfloat16), "fc1_b": p["fc1_b"].reshape(1, -1),
        "fc2_w": fc2_w.astype(jnp.bfloat16), "fc2_b": fc2_b,
    }


# ----------------------------------------------------------------------------
# Forward pass
# ----------------------------------------------------------------------------
@functools.partial(jax.jit, static_argnames=("out_dim",))
def dqn_forward(x_nchw, kp, *, out_dim):
    B, C, H, W = x_nchw.shape
    if H != 84 or W != 84:
        raise ValueError(
            f"DQN model requires input of a (84, 84)-shape. "
            f"Input of a ({(H, W)})-shape was passed.")

    # single layout change: NCHW -> NHWC, cast to bf16 once
    x = jnp.transpose(x_nchw, (0, 2, 3, 1)).astype(jnp.bfloat16)

    # Conv1: k=8, s=4, 16 channels (+ReLU)
    p1, oh1, ow1 = im2col_nhwc(x, 8, 8, 4)                           # (B*400, 256)
    y1 = matmul_bias_relu(p1, kp["w1"], kp["b1"], apply_relu=True)   # (B*400, 16)
    y1 = y1.reshape(B, oh1, ow1, 16)                                 # NHWC, no transpose

    # Conv2: k=4, s=2, 32 channels (+ReLU)
    p2, oh2, ow2 = im2col_nhwc(y1, 4, 4, 2)                          # (B*81, 256)
    y2 = matmul_bias_relu(p2, kp["w2"], kp["b2"], apply_relu=True)   # (B*81, 32)

    # Flatten in (h, w, c) order; fc1 weights were re-ordered to match torch's flatten
    flat = y2.reshape(B, oh2 * ow2 * 32)                             # (B, 2592)

    # fc1(+ReLU) + fc2 fused in a single pallas_call; slice off the lane padding
    out = fc_fused(flat, kp["fc1_w"], kp["fc1_b"], kp["fc2_w"], kp["fc2_b"])
    return out[:, :out_dim]


# ----------------------------------------------------------------------------
# Pure-JAX f32 reference (sanity check)
# ----------------------------------------------------------------------------
def dqn_forward_ref(x, p):
    dn = ("NCHW", "OIHW", "NCHW")
    y = lax.conv_general_dilated(x, p["conv1_w"], (4, 4), "VALID", dimension_numbers=dn)
    y = jnp.maximum(y + p["conv1_b"][None, :, None, None], 0.0)
    y = lax.conv_general_dilated(y, p["conv2_w"], (2, 2), "VALID", dimension_numbers=dn)
    y = jnp.maximum(y + p["conv2_b"][None, :, None, None], 0.0)
    y = y.reshape(y.shape[0], -1)
    y = jnp.maximum(y @ p["fc1_w"].T + p["fc1_b"], 0.0)
    return y @ p["fc2_w"].T + p["fc2_b"]


if __name__ == "__main__":
    key = jax.random.PRNGKey(0)
    k_x, k_p = jax.random.split(key)

    batch, in_channels, out_dim = 2, 4, 6
    x = jax.random.normal(k_x, (batch, in_channels, 84, 84), jnp.float32)
    params = init_dqn_params(k_p, in_channels, out_dim)
    kparams = prepare_kernel_params(params, out_dim)

    out = dqn_forward(x, kparams, out_dim=out_dim)
    out = jax.block_until_ready(out)
    assert out.shape == (batch, out_dim), out.shape

    ref = jax.block_until_ready(dqn_forward_ref(x, params))
    max_err = float(jnp.max(jnp.abs(out - ref)))
    assert jnp.allclose(out, ref, rtol=5e-2, atol=5e-2), max_err

    print("KERNEL_OK")
</pallas_src>

<mosaic_0001>
module attributes {stable_mosaic.version = 11 : i64} {
  func.func @_matmul_bias_kernel(%arg0: i32, %arg1: memref<800x256xbf16, #tpu.memory_space<vmem>>, %arg2: memref<256x16xbf16, #tpu.memory_space<vmem>>, %arg3: memref<1x16xf32, #tpu.memory_space<vmem>>, %arg4: memref<800x16xbf16, #tpu.memory_space<vmem>>) attributes {dimension_semantics = [#tpu.dimension_semantics<parallel>], iteration_bounds = array<i64: 1>, scalar_prefetch = 0 : i64, scratch_operands = 0 : i64, tpu.core_type = #tpu.core_type<tc>, window_params = [{transform_indices = @transform_0, window_bounds = array<i64: 800, 256>}, {pipeline_mode = #tpu.pipeline_mode<synchronous>, transform_indices = @transform_1, window_bounds = array<i64: 256, 16>}, {pipeline_mode = #tpu.pipeline_mode<synchronous>, transform_indices = @transform_2, window_bounds = array<i64: 1, 16>}, {transform_indices = @transform_3, window_bounds = array<i64: 800, 16>}]} {
    %c0 = arith.constant 0 : index
    %c0_0 = arith.constant 0 : index
    %0 = vector.load %arg1[%c0, %c0_0] : memref<800x256xbf16, #tpu.memory_space<vmem>>, vector<800x256xbf16>
    %c0_1 = arith.constant 0 : index
    %c0_2 = arith.constant 0 : index
    %1 = vector.load %arg2[%c0_1, %c0_2] : memref<256x16xbf16, #tpu.memory_space<vmem>>, vector<256x16xbf16>
    %cst = arith.constant dense<0.000000e+00> : vector<800x16xf32>
    %2 = tpu.matmul %0, %1, %cst {dimension_numbers = #tpu.dot_dimension_numbers<[1], [0], [0], [1], [0, 0, 1, 1], [], []>} : vector<800x256xbf16>, vector<256x16xbf16>, vector<800x16xf32> -> vector<800x16xf32>
    %c0_3 = arith.constant 0 : index
    %c0_4 = arith.constant 0 : index
    %3 = vector.load %arg3[%c0_3, %c0_4] : memref<1x16xf32, #tpu.memory_space<vmem>>, vector<1x16xf32>
    %4 = vector.broadcast %3 : vector<1x16xf32> to vector<800x16xf32>
    %5 = arith.addf %2, %4 : vector<800x16xf32>
    %cst_5 = arith.constant 0.000000e+00 : f32
    %6 = vector.broadcast %cst_5 : f32 to vector<800x16xf32>
    %7 = arith.maximumf %5, %6 : vector<800x16xf32>
    %8 = arith.truncf %7 : vector<800x16xf32> to vector<800x16xbf16>
    %c0_6 = arith.constant 0 : index
    %c0_7 = arith.constant 0 : index
    %9 = vector.load %arg4[%c0_6, %c0_7] : memref<800x16xbf16, #tpu.memory_space<vmem>>, vector<800x16xbf16>
    tpu.vector_store %arg4[%c0_6, %c0_7], %8 {strides = array<i32>} : memref<800x16xbf16, #tpu.memory_space<vmem>>, vector<800x16xbf16>,
    return
  }
  func.func @transform_0(%arg0: i32) -> (i32, i32) {
    %c0_i32 = arith.constant 0 : i32
    %c0_i32_0 = arith.constant 0 : i32
    return %arg0, %c0_i32 : i32, i32
  }
  func.func @transform_1(%arg0: i32) -> (i32, i32) {
    %c0_i32 = arith.constant 0 : i32
    %c0_i32_0 = arith.constant 0 : i32
    %c0_i32_1 = arith.constant 0 : i32
    return %c0_i32, %c0_i32_0 : i32, i32
  }
  func.func @transform_2(%arg0: i32) -> (i32, i32) {
    %c0_i32 = arith.constant 0 : i32
    %c0_i32_0 = arith.constant 0 : i32
    %c0_i32_1 = arith.constant 0 : i32
    return %c0_i32, %c0_i32_0 : i32, i32
  }
  func.func @transform_3(%arg0: i32) -> (i32, i32) {
    %c0_i32 = arith.constant 0 : i32
    %c0_i32_0 = arith.constant 0 : i32
    return %arg0, %c0_i32 : i32, i32
  }
}

module attributes {stable_mosaic.version = 11 : i64} {
  func.func @_matmul_bias_kernel(%arg0: i32, %arg1: memref<168x256xbf16, #tpu.memory_space<vmem>>, %arg2: memref<256x32xbf16, #tpu.memory_space<vmem>>, %arg3: memref<1x32xf32, #tpu.memory_space<vmem>>, %arg4: memref<168x32xbf16, #tpu.memory_space<vmem>>) attributes {dimension_semantics = [#tpu.dimension_semantics<parallel>], iteration_bounds = array<i64: 1>, scalar_prefetch = 0 : i64, scratch_operands = 0 : i64, tpu.core_type = #tpu.core_type<tc>, window_params = [{transform_indices = @transform_0, window_bounds = array<i64: 168, 256>}, {pipeline_mode = #tpu.pipeline_mode<synchronous>, transform_indices = @transform_1, window_bounds = array<i64: 256, 32>}, {pipeline_mode = #tpu.pipeline_mode<synchronous>, transform_indices = @transform_2, window_bounds = array<i64: 1, 32>}, {transform_indices = @transform_3, window_bounds = array<i64: 168, 32>}]} {
    %c0 = arith.constant 0 : index
    %c0_0 = arith.constant 0 : index
    %0 = vector.load %arg1[%c0, %c0_0] : memref<168x256xbf16, #tpu.memory_space<vmem>>, vector<168x256xbf16>
    %c0_1 = arith.constant 0 : index
    %c0_2 = arith.constant 0 : index
    %1 = vector.load %arg2[%c0_1, %c0_2] : memref<256x32xbf16, #tpu.memory_space<vmem>>, vector<256x32xbf16>
    %cst = arith.constant dense<0.000000e+00> : vector<168x32xf32>
    %2 = tpu.matmul %0, %1, %cst {dimension_numbers = #tpu.dot_dimension_numbers<[1], [0], [0], [1], [0, 0, 1, 1], [], []>} : vector<168x256xbf16>, vector<256x32xbf16>, vector<168x32xf32> -> vector<168x32xf32>
    %c0_3 = arith.constant 0 : index
    %c0_4 = arith.constant 0 : index
    %3 = vector.load %arg3[%c0_3, %c0_4] : memref<1x32xf32, #tpu.memory_space<vmem>>, vector<1x32xf32>
    %4 = vector.broadcast %3 : vector<1x32xf32> to vector<168x32xf32>
    %5 = arith.addf %2, %4 : vector<168x32xf32>
    %cst_5 = arith.constant 0.000000e+00 : f32
    %6 = vector.broadcast %cst_5 : f32 to vector<168x32xf32>
    %7 = arith.maximumf %5, %6 : vector<168x32xf32>
    %8 = arith.truncf %7 : vector<168x32xf32> to vector<168x32xbf16>
    %c0_6 = arith.constant 0 : index
    %c0_7 = arith.constant 0 : index
    %9 = vector.load %arg4[%c0_6, %c0_7] : memref<168x32xbf16, #tpu.memory_space<vmem>>, vector<168x32xbf16>
    tpu.vector_store %arg4[%c0_6, %c0_7], %8 {strides = array<i32>} : memref<168x32xbf16, #tpu.memory_space<vmem>>, vector<168x32xbf16>,
    return
  }
  func.func @transform_0(%arg0: i32) -> (i32, i32) {
    %c0_i32 = arith.constant 0 : i32
    %c0_i32_0 = arith.constant 0 : i32
    return %arg0, %c0_i32 : i32, i32
  }
  func.func @transform_1(%arg0: i32) -> (i32, i32) {
    %c0_i32 = arith.constant 0 : i32
    %c0_i32_0 = arith.constant 0 : i32
    %c0_i32_1 = arith.constant 0 : i32
    return %c0_i32, %c0_i32_0 : i32, i32
  }
  func.func @transform_2(%arg0: i32) -> (i32, i32) {
    %c0_i32 = arith.constant 0 : i32
    %c0_i32_0 = arith.constant 0 : i32
    %c0_i32_1 = arith.constant 0 : i32
    return %c0_i32, %c0_i32_0 : i32, i32
  }
  func.func @transform_3(%arg0: i32) -> (i32, i32) {
    %c0_i32 = arith.constant 0 : i32
    %c0_i32_0 = arith.constant 0 : i32
    return %arg0, %c0_i32 : i32, i32
  }
}

module attributes {stable_mosaic.version = 11 : i64} {
  func.func @_fc_fused_kernel(%arg0: i32, %arg1: memref<8x2592xbf16, #tpu.memory_space<vmem>>, %arg2: memref<2592x256xbf16, #tpu.memory_space<vmem>>, %arg3: memref<1x256xf32, #tpu.memory_space<vmem>>, %arg4: memref<256x128xbf16, #tpu.memory_space<vmem>>, %arg5: memref<1x128xf32, #tpu.memory_space<vmem>>, %arg6: memref<8x128xf32, #tpu.memory_space<vmem>>) attributes {dimension_semantics = [#tpu.dimension_semantics<parallel>], iteration_bounds = array<i64: 1>, scalar_prefetch = 0 : i64, scratch_operands = 0 : i64, tpu.core_type = #tpu.core_type<tc>, window_params = [{transform_indices = @transform_0, window_bounds = array<i64: 8, 2592>}, {pipeline_mode = #tpu.pipeline_mode<synchronous>, transform_indices = @transform_1, window_bounds = array<i64: 2592, 256>}, {pipeline_mode = #tpu.pipeline_mode<synchronous>, transform_indices = @transform_2, window_bounds = array<i64: 1, 256>}, {pipeline_mode = #tpu.pipeline_mode<synchronous>, transform_indices = @transform_3, window_bounds = array<i64: 256, 128>}, {pipeline_mode = #tpu.pipeline_mode<synchronous>, transform_indices = @transform_4, window_bounds = array<i64: 1, 128>}, {transform_indices = @transform_5, window_bounds = array<i64: 8, 128>}]} {
    %c0 = arith.constant 0 : index
    %c0_0 = arith.constant 0 : index
    %0 = vector.load %arg1[%c0, %c0_0] : memref<8x2592xbf16, #tpu.memory_space<vmem>>, vector<8x2592xbf16>
    %c0_1 = arith.constant 0 : index
    %c0_2 = arith.constant 0 : index
    %1 = vector.load %arg2[%c0_1, %c0_2] : memref<2592x256xbf16, #tpu.memory_space<vmem>>, vector<2592x256xbf16>
    %cst = arith.constant dense<0.000000e+00> : vector<8x256xf32>
    %2 = tpu.matmul %0, %1, %cst {dimension_numbers = #tpu.dot_dimension_numbers<[1], [0], [0], [1], [0, 0, 1, 1], [], []>} : vector<8x2592xbf16>, vector<2592x256xbf16>, vector<8x256xf32> -> vector<8x256xf32>
    %c0_3 = arith.constant 0 : index
    %c0_4 = arith.constant 0 : index
    %3 = vector.load %arg3[%c0_3, %c0_4] : memref<1x256xf32, #tpu.memory_space<vmem>>, vector<1x256xf32>
    %4 = vector.broadcast %3 : vector<1x256xf32> to vector<8x256xf32>
    %5 = arith.addf %2, %4 : vector<8x256xf32>
    %cst_5 = arith.constant 0.000000e+00 : f32
    %6 = vector.broadcast %cst_5 : f32 to vector<8x256xf32>
    %7 = arith.maximumf %5, %6 : vector<8x256xf32>
    %8 = arith.truncf %7 : vector<8x256xf32> to vector<8x256xbf16>
    %c0_6 = arith.constant 0 : index
    %c0_7 = arith.constant 0 : index
    %9 = vector.load %arg4[%c0_6, %c0_7] : memref<256x128xbf16, #tpu.memory_space<vmem>>, vector<256x128xbf16>
    %cst_8 = arith.constant dense<0.000000e+00> : vector<8x128xf32>
    %10 = tpu.matmul %8, %9, %cst_8 {dimension_numbers = #tpu.dot_dimension_numbers<[1], [0], [0], [1], [0, 0, 1, 1], [], []>} : vector<8x256xbf16>, vector<256x128xbf16>, vector<8x128xf32> -> vector<8x128xf32>
    %c0_9 = arith.constant 0 : index
    %c0_10 = arith.constant 0 : index
    %11 = vector.load %arg5[%c0_9, %c0_10] : memref<1x128xf32, #tpu.memory_space<vmem>>, vector<1x128xf32>
    %12 = vector.broadcast %11 : vector<1x128xf32> to vector<8x128xf32>
    %13 = arith.addf %10, %12 : vector<8x128xf32>
    %c0_11 = arith.constant 0 : index
    %c0_12 = arith.constant 0 : index
    %14 = vector.load %arg6[%c0_11, %c0_12] : memref<8x128xf32, #tpu.memory_space<vmem>>, vector<8x128xf32>
    tpu.vector_store %arg6[%c0_11, %c0_12], %13 {strides = array<i32>} : memref<8x128xf32, #tpu.memory_space<vmem>>, vector<8x128xf32>,
    return
  }
  func.func @transform_0(%arg0: i32) -> (i32, i32) {
    %c0_i32 = arith.constant 0 : i32
    %c0_i32_0 = arith.constant 0 : i32
    return %arg0, %c0_i32 : i32, i32
  }
  func.func @transform_1(%arg0: i32) -> (i32, i32) {
    %c0_i32 = arith.constant 0 : i32
    %c0_i32_0 = arith.constant 0 : i32
    %c0_i32_1 = arith.constant 0 : i32
    return %c0_i32, %c0_i32_0 : i32, i32
  }
  func.func @transform_2(%arg0: i32) -> (i32, i32) {
    %c0_i32 = arith.constant 0 : i32
    %c0_i32_0 = arith.constant 0 : i32
    %c0_i32_1 = arith.constant 0 : i32
    return %c0_i32, %c0_i32_0 : i32, i32
  }
  func.func @transform_3(%arg0: i32) -> (i32, i32) {
    %c0_i32 = arith.constant 0 : i32
    %c0_i32_0 = arith.constant 0 : i32
    %c0_i32_1 = arith.constant 0 : i32
    return %c0_i32, %c0_i32_0 : i32, i32
  }
  func.func @transform_4(%arg0: i32) -> (i32, i32) {
    %c0_i32 = arith.constant 0 : i32
    %c0_i32_0 = arith.constant 0 : i32
    %c0_i32_1 = arith.constant 0 : i32
    return %c0_i32, %c0_i32_0 : i32, i32
  }
  func.func @transform_5(%arg0: i32) -> (i32, i32) {
    %c0_i32 = arith.constant 0 : i32
    %c0_i32_0 = arith.constant 0 : i32
    return %arg0, %c0_i32 : i32, i32
  }
}

</mosaic_0001>

<bundles_post_ra>
// kernel: dqn_forward.3
= control target key start
LH: loop header
LB: loop body
LE: loop exit
PB: predicated region body
PF: predicated region fallthrough
CT: control target
= control target key end

     0   :  { %v2305_v0 = vmov 0   ;;  %vm1683_vm0 = vcmask 125952   ;;  %s3216_s1 = inlined_call_operand.vmem [shape: bf16[256,16], index: 1, kind: input, shape index: {}]   ;;  %s3217_s0 = inlined_call_operand.vmem [shape: bf16[800,256], index: 0, kind: input, shape index: {}]   ;;  %s3218_s2 = inlined_call_operand.vmem [shape: f32[1,16], index: 2, kind: input, shape index: {}]   ;;  %s3219_s3 = inlined_call_operand.vmem [shape: bf16[800,16], index: 3, kind: output, shape index: {}]  }
   0x1   :  { %750 = vmatprep.subr.bf16.mxu0 %v2305_v0  ;;  %2105 = vmatprep.subr.bf16.mxu1 %v2305_v0  ;;  %v2138_v1 = vld [vmem:[%s3216_s1] sm:$0xff]   ;;  %v2139_v2 = vld [vmem:[%s3216_s1 + $0x8] sm:$0xff]   ;;  %v2140_v3 = vld [vmem:[%s3216_s1 + $0x10] sm:$0xff]  }
   0x2   :  { %751 = vmatpush1.bf16.msra.mxu0 %v2138_v1  ;;  %2121 = vmatpush1.bf16.msra.mxu1 %v2138_v1  ;;  %v2141_v4 = vld [vmem:[%s3216_s1 + $0x18] sm:$0xff]   ;;  %v2142_v5 = vld [vmem:[%s3216_s1 + $0x20] sm:$0xff]   ;;  %v2143_v7 = vld [vmem:[%s3216_s1 + $0x28] sm:$0xff]  }
   0x3   :  { %752 = vmatprep.subr.bf16.mxu0 %v2305_v0  ;;  %2106 = vmatprep.subr.bf16.mxu1 %v2305_v0  ;;  %v2156_v6 = vld [vmem:[%s3217_s0 + $0x4] ss:$8 sps:$4 sm:$0xff]   ;;  %v2159_v8 = vld [vmem:[%s3217_s0 + $0x194] ss:$8 sps:$4 sm:$0xff]   ;;  %v2154_v19 = vld [vmem:[%s3217_s0] ss:$8 sps:$4 sm:$0xff]  }
   0x4   :  { %782 = vmatprep.mubr.bf16.mxu0 %v2156_v6  ;;  %982 = vmatprep.mubr.bf16.mxu1 %v2159_v8  ;;  %v2144_v9 = vld [vmem:[%s3216_s1 + $0x30] sm:$0xff]   ;;  %v2145_v10 = vld [vmem:[%s3216_s1 + $0x38] sm:$0xff]   ;;  %v2146_v11 = vld [vmem:[%s3216_s1 + $0x40] sm:$0xff]  }
   0x5   :  { %v2147_v12 = vld [vmem:[%s3216_s1 + $0x48] sm:$0xff]   ;;  %v2148_v13 = vld [vmem:[%s3216_s1 + $0x50] sm:$0xff]   ;;  %v2149_v14 = vld [vmem:[%s3216_s1 + $0x58] sm:$0xff]  }
   0x6   :  { %753 = vmatpush1.bf16.msra.mxu0 %v2139_v2  ;;  %2122 = vmatpush1.bf16.msra.mxu1 %v2139_v2  ;;  %v2150_v15 = vld [vmem:[%s3216_s1 + $0x60] sm:$0xff]   ;;  %v2151_v16 = vld [vmem:[%s3216_s1 + $0x68] sm:$0xff]   ;;  %v2152_v17 = vld [vmem:[%s3216_s1 + $0x70] sm:$0xff]  }
   0x7   :  { %754 = vmatprep.subr.bf16.mxu0 %v2305_v0  ;;  %2107 = vmatprep.subr.bf16.mxu1 %v2305_v0  ;;  %v2153_v18 = vld [vmem:[%s3216_s1 + $0x78] sm:$0xff]   ;;  %v2162_v22 = vld [vmem:[%s3217_s0 + $0x1a4] ss:$8 sps:$4 sm:$0xff]   ;;  %v2165_v24 = vld [vmem:[%s3217_s0 + $0x1a0] ss:$8 sps:$4 sm:$0xff]  }
   0x8   :  { %v2157_v20 = vld [vmem:[%s3217_s0 + $0x190] ss:$8 sps:$4 sm:$0xff]   ;;  %v2160_v21 = vld [vmem:[%s3217_s0 + $0x14] ss:$8 sps:$4 sm:$0xff]   ;;  %v2166_v25 = vld [vmem:[%s3217_s0 + $0x24] ss:$8 sps:$4 sm:$0xff]  }
   0x9   :  { %v2164_v23 = vld [vmem:[%s3217_s0 + $0x10] ss:$8 sps:$4 sm:$0xff]   ;;  %v2168_v26 = vld [vmem:[%s3217_s0 + $0x1b4] ss:$8 sps:$4 sm:$0xff]   ;;  %v2170_v27 = vld [vmem:[%s3217_s0 + $0x20] ss:$8 sps:$4 sm:$0xff]  }
   0xa   :  { %755 = vmatpush1.bf16.msra.mxu0 %v2140_v3  ;;  %2123 = vmatpush1.bf16.msra.mxu1 %v2140_v3  ;;  %v2171_v28 = vld [vmem:[%s3217_s0 + $0x1b0] ss:$8 sps:$4 sm:$0xff]   ;;  %v2172_v29 = vld [vmem:[%s3217_s0 + $0x34] ss:$8 sps:$4 sm:$0xff]   ;;  %v2174_v30 = vld [vmem:[%s3217_s0 + $0x1c4] ss:$8 sps:$4 sm:$0xff]  }
   0xb   :  { %756 = vmatprep.subr.bf16.mxu0 %v2305_v0  ;;  %2108 = vmatprep.subr.bf16.mxu1 %v2305_v0  ;;  %v2176_v31 = vld [vmem:[%s3217_s0 + $0x30] ss:$8 sps:$4 sm:$0xff]   ;;  %v2177_v32 = vld [vmem:[%s3217_s0 + $0x1c0] ss:$8 sps:$4 sm:$0xff]   ;;  %v2178_v33 = vld [vmem:[%s3217_s0 + $0x44] ss:$8 sps:$4 sm:$0xff]  }
   0xc   :  { %v2180_v34 = vld [vmem:[%s3217_s0 + $0x1d4] ss:$8 sps:$4 sm:$0xff]   ;;  %v2182_v35 = vld [vmem:[%s3217_s0 + $0x40] ss:$8 sps:$4 sm:$0xff]   ;;  %v2183_v36 = vld [vmem:[%s3217_s0 + $0x1d0] ss:$8 sps:$4 sm:$0xff]  }
   0xd   :  { %v2184_v37 = vld [vmem:[%s3217_s0 + $0x54] ss:$8 sps:$4 sm:$0xff]   ;;  %v2186_v38 = vld [vmem:[%s3217_s0 + $0x1e4] ss:$8 sps:$4 sm:$0xff]   ;;  %v2188_v39 = vld [vmem:[%s3217_s0 + $0x50] ss:$8 sps:$4 sm:$0xff]  }
   0xe   :  { %757 = vmatpush1.bf16.msra.mxu0 %v2141_v4  ;;  %2124 = vmatpush1.bf16.msra.mxu1 %v2141_v4  ;;  %v2189_v40 = vld [vmem:[%s3217_s0 + $0x1e0] ss:$8 sps:$4 sm:$0xff]   ;;  %v2190_v41 = vld [vmem:[%s3217_s0 + $0x64] ss:$8 sps:$4 sm:$0xff]   ;;  %v2192_v42 = vld [vmem:[%s3217_s0 + $0x1f4] ss:$8 sps:$4 sm:$0xff]  }
   0xf   :  { %758 = vmatprep.subr.bf16.mxu0 %v2305_v0  ;;  %2109 = vmatprep.subr.bf16.mxu1 %v2305_v0  ;;  %v2194_v43 = vld [vmem:[%s3217_s0 + $0x60] ss:$8 sps:$4 sm:$0xff]   ;;  %v2195_v44 = vld [vmem:[%s3217_s0 + $0x1f0] ss:$8 sps:$4 sm:$0xff]   ;;  %v2196_v45 = vld [vmem:[%s3217_s0 + $0x74] ss:$8 sps:$4 sm:$0xff]  }
  0x10   :  { %v2198_v46 = vld [vmem:[%s3217_s0 + $0x204] ss:$8 sps:$4 sm:$0xff]   ;;  %v2200_v47 = vld [vmem:[%s3217_s0 + $0x70] ss:$8 sps:$4 sm:$0xff]   ;;  %v2201_v48 = vld [vmem:[%s3217_s0 + $0x200] ss:$8 sps:$4 sm:$0xff]  }
  0x11   :  { %v2202_v49 = vld [vmem:[%s3217_s0 + $0x84] ss:$8 sps:$4 sm:$0xff]   ;;  %v2204_v50 = vld [vmem:[%s3217_s0 + $0x214] ss:$8 sps:$4 sm:$0xff]   ;;  %v2206_v51 = vld [vmem:[%s3217_s0 + $0x80] ss:$8 sps:$4 sm:$0xff]  }
  0x12   :  { %759 = vmatpush1.bf16.msra.mxu0 %v2142_v5  ;;  %2125 = vmatpush1.bf16.msra.mxu1 %v2142_v5  ;;  %v2207_v52 = vld [vmem:[%s3217_s0 + $0x210] ss:$8 sps:$4 sm:$0xff]   ;;  %v2208_v53 = vld [vmem:[%s3217_s0 + $0x94] ss:$8 sps:$4 sm:$0xff]   ;;  %v2210_v54 = vld [vmem:[%s3217_s0 + $0x224] ss:$8 sps:$4 sm:$0xff]  }
  0x13   :  { %760 = vmatprep.subr.bf16.mxu0 %v2305_v0  ;;  %2110 = vmatprep.subr.bf16.mxu1 %v2305_v0  ;;  %v2212_v55 = vld [vmem:[%s3217_s0 + $0x90] ss:$8 sps:$4 sm:$0xff]   ;;  %v2213_v56 = vld [vmem:[%s3217_s0 + $0x220] ss:$8 sps:$4 sm:$0xff]   ;;  %v2214_v57 = vld [vmem:[%s3217_s0 + $0xa4] ss:$8 sps:$4 sm:$0xff]  }
  0x14   :  { %v2216_v58 = vld [vmem:[%s3217_s0 + $0x234] ss:$8 sps:$4 sm:$0xff]   ;;  %v2218_v59 = vld [vmem:[%s3217_s0 + $0xa0] ss:$8 sps:$4 sm:$0xff]   ;;  %v2219_v60 = vld [vmem:[%s3217_s0 + $0x230] ss:$8 sps:$4 sm:$0xff]  }
  0x15   :  { %v2220_v61 = vld [vmem:[%s3217_s0 + $0xb4] ss:$8 sps:$4 sm:$0xff]   ;;  %v2222_v62 = vld [vmem:[%s3217_s0 + $0x244] ss:$8 sps:$4 sm:$0xff]   ;;  %v2224_v63 = vld [vmem:[%s3217_s0 + $0xb0] ss:$8 sps:$4 sm:$0xff]  }
  0x16   :  { %761 = vmatpush1.bf16.msra.mxu0 %v2143_v7  ;;  %2126 = vmatpush1.bf16.msra.mxu1 %v2143_v7  ;;  %v2226_v1 = vld [vmem:[%s3217_s0 + $0xc4] ss:$8 sps:$4 sm:$0xff]   ;;  %v2228_v2 = vld [vmem:[%s3217_s0 + $0x254] ss:$8 sps:$4 sm:$0xff]   ;;  %v2230_v3 = vld [vmem:[%s3217_s0 + $0xc0] ss:$8 sps:$4 sm:$0xff]  }
  0x17   :  { %762 = vmatprep.subr.bf16.mxu0 %v2305_v0  ;;  %2111 = vmatprep.subr.bf16.mxu1 %v2305_v0  ;;  %v2231_v4 = vld [vmem:[%s3217_s0 + $0x250] ss:$8 sps:$4 sm:$0xff]   ;;  %v2232_v5 = vld [vmem:[%s3217_s0 + $0xd4] ss:$8 sps:$4 sm:$0xff]   ;;  %v2234_v6 = vld [vmem:[%s3217_s0 + $0x264] ss:$8 sps:$4 sm:$0xff]  }
  0x18   :  { %v2236_v7 = vld [vmem:[%s3217_s0 + $0xd0] ss:$8 sps:$4 sm:$0xff]   ;;  %v2237_v8 = vld [vmem:[%s3217_s0 + $0x260] ss:$8 sps:$4 sm:$0xff]  }
  0x1a   :  { %763 = vmatpush1.bf16.msra.mxu0 %v2144_v9  ;;  %2127 = vmatpush1.bf16.msra.mxu1 %v2144_v9  ;;  %v2238_v9 = vld [vmem:[%s3217_s0 + $0xe4] ss:$8 sps:$4 sm:$0xff]  }
  0x1b   :  { %764 = vmatprep.subr.bf16.mxu0 %v2305_v0  ;;  %2112 = vmatprep.subr.bf16.mxu1 %v2305_v0 }
  0x1e   :  { %765 = vmatpush1.bf16.msra.mxu0 %v2145_v10  ;;  %2128 = vmatpush1.bf16.msra.mxu1 %v2145_v10  ;;  %v2240_v10 = vld [vmem:[%s3217_s0 + $0x274] ss:$8 sps:$4 sm:$0xff]  }
  0x1f   :  { %766 = vmatprep.subr.bf16.mxu0 %v2305_v0  ;;  %2113 = vmatprep.subr.bf16.mxu1 %v2305_v0 }
  0x22   :  { %767 = vmatpush1.bf16.msra.mxu0 %v2146_v11  ;;  %2129 = vmatpush1.bf16.msra.mxu1 %v2146_v11  ;;  %v2242_v11 = vld [vmem:[%s3217_s0 + $0xe0] ss:$8 sps:$4 sm:$0xff]  }
  0x23   :  { %768 = vmatprep.subr.bf16.mxu0 %v2305_v0  ;;  %2114 = vmatprep.subr.bf16.mxu1 %v2305_v0 }
  0x26   :  { %769 = vmatpush1.bf16.msra.mxu0 %v2147_v12  ;;  %2130 = vmatpush1.bf16.msra.mxu1 %v2147_v12  ;;  %v2243_v12 = vld [vmem:[%s3217_s0 + $0x270] ss:$8 sps:$4 sm:$0xff]  }
  0x27   :  { %770 = vmatprep.subr.bf16.mxu0 %v2305_v0  ;;  %2115 = vmatprep.subr.bf16.mxu1 %v2305_v0 }
  0x2a   :  { %771 = vmatpush1.bf16.msra.mxu0 %v2148_v13  ;;  %2131 = vmatpush1.bf16.msra.mxu1 %v2148_v13  ;;  %v2244_v13 = vld [vmem:[%s3217_s0 + $0xf4] ss:$8 sps:$4 sm:$0xff]  }
  0x2b   :  { %772 = vmatprep.subr.bf16.mxu0 %v2305_v0  ;;  %2116 = vmatprep.subr.bf16.mxu1 %v2305_v0 }
  0x2e   :  { %773 = vmatpush1.bf16.msra.mxu0 %v2149_v14  ;;  %2132 = vmatpush1.bf16.msra.mxu1 %v2149_v14  ;;  %v2246_v14 = vld [vmem:[%s3217_s0 + $0x284] ss:$8 sps:$4 sm:$0xff]  }
  0x2f   :  { %774 = vmatprep.subr.bf16.mxu0 %v2305_v0  ;;  %2117 = vmatprep.subr.bf16.mxu1 %v2305_v0 }
  0x32   :  { %775 = vmatpush1.bf16.msra.mxu0 %v2150_v15  ;;  %2133 = vmatpush1.bf16.msra.mxu1 %v2150_v15  ;;  %v2248_v15 = vld [vmem:[%s3217_s0 + $0xf0] ss:$8 sps:$4 sm:$0xff]  }
  0x33   :  { %776 = vmatprep.subr.bf16.mxu0 %v2305_v0  ;;  %2118 = vmatprep.subr.bf16.mxu1 %v2305_v0 }
  0x36   :  { %777 = vmatpush1.bf16.msra.mxu0 %v2151_v16  ;;  %2134 = vmatpush1.bf16.msra.mxu1 %v2151_v16  ;;  %v2249_v16 = vld [vmem:[%s3217_s0 + $0x280] ss:$8 sps:$4 sm:$0xff]  }
  0x37   :  { %778 = vmatprep.subr.bf16.mxu0 %v2305_v0  ;;  %2119 = vmatprep.subr.bf16.mxu1 %v2305_v0 }
  0x3a   :  { %779 = vmatpush1.bf16.msra.mxu0 %v2152_v17  ;;  %2135 = vmatpush1.bf16.msra.mxu1 %v2152_v17  ;;  %v2250_v17 = vld [vmem:[%s3217_s0 + $0x104] ss:$8 sps:$4 sm:$0xff]  }
  0x3b   :  { %780 = vmatprep.subr.bf16.mxu0 %v2305_v0  ;;  %2120 = vmatprep.subr.bf16.mxu1 %v2305_v0  ;;  %v2225_v0 = vld [vmem:[%s3217_s0 + $0x240] ss:$8 sps:$4 sm:$0xff]  }
  0x3e   :  { %781 = vmatpush1.bf16.msra.mxu0 %v2153_v18  ;;  %2136 = vmatpush1.bf16.msra.mxu1 %v2153_v18  ;;  %v2252_v18 = vld [vmem:[%s3217_s0 + $0x294] ss:$8 sps:$4 sm:$0xff]  }
  0x41   :  { %783 = vmatmul.mubr.bf16.vlgmr.msra.gmra.mrb[0].mxu0 %v2154_v19  ;;  %983 = vmatmul.mubr.bf16.vlgmr.msra.gmra.mrb[0].mxu1 %v2157_v20  ;;  %v2254_v19 = vld [vmem:[%s3217_s0 + $0x100] ss:$8 sps:$4 sm:$0xff]   ;;  %v2255_v20 = vld [vmem:[%s3217_s0 + $0x290] ss:$8 sps:$4 sm:$0xff]  }
  0x42   :  { %790 = vmatprep.mubr.bf16.mxu0 %v2160_v21  ;;  %990 = vmatprep.mubr.bf16.mxu1 %v2162_v22  ;;  %v2256_v21 = vld [vmem:[%s3217_s0 + $0x114] ss:$8 sps:$4 sm:$0xff]   ;;  %v2258_v22 = vld [vmem:[%s3217_s0 + $0x2a4] ss:$8 sps:$4 sm:$0xff]  }
  0x49   :  { %791 = vmatmul.mubr.bf16.gmra.mrb[4].mxu0 %v2164_v23  ;;  %991 = vmatmul.mubr.bf16.gmra.mrb[4].mxu1 %v2165_v24  ;;  %v2260_v23 = vld [vmem:[%s3217_s0 + $0x110] ss:$8 sps:$4 sm:$0xff]   ;;  %v2261_v24 = vld [vmem:[%s3217_s0 + $0x2a0] ss:$8 sps:$4 sm:$0xff]  }
  0x4a   :  { %798 = vmatprep.mubr.bf16.mxu0 %v2166_v25  ;;  %998 = vmatprep.mubr.bf16.mxu1 %v2168_v26  ;;  %v2262_v25 = vld [vmem:[%s3217_s0 + $0x124] ss:$8 sps:$4 sm:$0xff]   ;;  %v2264_v26 = vld [vmem:[%s3217_s0 + $0x2b4] ss:$8 sps:$4 sm:$0xff]  }
  0x51   :  { %799 = vmatmul.mubr.bf16.gmra.mrb[8].mxu0 %v2170_v27  ;;  %999 = vmatmul.mubr.bf16.gmra.mrb[8].mxu1 %v2171_v28  ;;  %v2266_v27 = vld [vmem:[%s3217_s0 + $0x120] ss:$8 sps:$4 sm:$0xff]   ;;  %v2267_v28 = vld [vmem:[%s3217_s0 + $0x2b0] ss:$8 sps:$4 sm:$0xff]  }
  0x52   :  { %806 = vmatprep.mubr.bf16.mxu0 %v2172_v29  ;;  %1006 = vmatprep.mubr.bf16.mxu1 %v2174_v30  ;;  %v2268_v29 = vld [vmem:[%s3217_s0 + $0x134] ss:$8 sps:$4 sm:$0xff]   ;;  %v2270_v30 = vld [vmem:[%s3217_s0 + $0x2c4] ss:$8 sps:$4 sm:$0xff]  }
  0x59   :  { %807 = vmatmul.mubr.bf16.gmra.mrb[12].mxu0 %v2176_v31  ;;  %1007 = vmatmul.mubr.bf16.gmra.mrb[12].mxu1 %v2177_v32  ;;  %v2272_v31 = vld [vmem:[%s3217_s0 + $0x130] ss:$8 sps:$4 sm:$0xff]   ;;  %v2273_v32 = vld [vmem:[%s3217_s0 + $0x2c0] ss:$8 sps:$4 sm:$0xff]  }
  0x5a   :  { %814 = vmatprep.mubr.bf16.mxu0 %v2178_v33  ;;  %1014 = vmatprep.mubr.bf16.mxu1 %v2180_v34  ;;  %v2274_v33 = vld [vmem:[%s3217_s0 + $0x144] ss:$8 sps:$4 sm:$0xff]   ;;  %v2276_v34 = vld [vmem:[%s3217_s0 + $0x2d4] ss:$8 sps:$4 sm:$0xff]  }
  0x61   :  { %815 = vmatmul.mubr.bf16.gmra.mrb[16].mxu0 %v2182_v35  ;;  %1015 = vmatmul.mubr.bf16.gmra.mrb[16].mxu1 %v2183_v36  ;;  %v2278_v35 = vld [vmem:[%s3217_s0 + $0x140] ss:$8 sps:$4 sm:$0xff]   ;;  %v2279_v36 = vld [vmem:[%s3217_s0 + $0x2d0] ss:$8 sps:$4 sm:$0xff]  }
  0x62   :  { %822 = vmatprep.mubr.bf16.mxu0 %v2184_v37  ;;  %1022 = vmatprep.mubr.bf16.mxu1 %v2186_v38  ;;  %v2280_v37 = vld [vmem:[%s3217_s0 + $0x154] ss:$8 sps:$4 sm:$0xff]   ;;  %v2282_v38 = vld [vmem:[%s3217_s0 + $0x2e4] ss:$8 sps:$4 sm:$0xff]  }
  0x69   :  { %823 = vmatmul.mubr.bf16.gmra.mrb[20].mxu0 %v2188_v39  ;;  %1023 = vmatmul.mubr.bf16.gmra.mrb[20].mxu1 %v2189_v40  ;;  %v2284_v39 = vld [vmem:[%s3217_s0 + $0x150] ss:$8 sps:$4 sm:$0xff]   ;;  %v2285_v40 = vld [vmem:[%s3217_s0 + $0x2e0] ss:$8 sps:$4 sm:$0xff]  }
  0x6a   :  { %830 = vmatprep.mubr.bf16.mxu0 %v2190_v41  ;;  %1030 = vmatprep.mubr.bf16.mxu1 %v2192_v42  ;;  %v2286_v41 = vld [vmem:[%s3217_s0 + $0x164] ss:$8 sps:$4 sm:$0xff]   ;;  %v2288_v42 = vld [vmem:[%s3217_s0 + $0x2f4] ss:$8 sps:$4 sm:$0xff]  }
  0x71   :  { %831 = vmatmul.mubr.bf16.gmra.mrb[24].mxu0 %v2194_v43  ;;  %1031 = vmatmul.mubr.bf16.gmra.mrb[24].mxu1 %v2195_v44  ;;  %v2290_v43 = vld [vmem:[%s3217_s0 + $0x160] ss:$8 sps:$4 sm:$0xff]   ;;  %v2291_v44 = vld [vmem:[%s3217_s0 + $0x2f0] ss:$8 sps:$4 sm:$0xff]  }
  0x72   :  { %838 = vmatprep.mubr.bf16.mxu0 %v2196_v45  ;;  %1038 = vmatprep.mubr.bf16.mxu1 %v2198_v46  ;;  %v2292_v45 = vld [vmem:[%s3217_s0 + $0x174] ss:$8 sps:$4 sm:$0xff]   ;;  %v2294_v46 = vld [vmem:[%s3217_s0 + $0x304] ss:$8 sps:$4 sm:$0xff]  }
  0x79   :  { %839 = vmatmul.mubr.bf16.gmra.mrb[28].mxu0 %v2200_v47  ;;  %1039 = vmatmul.mubr.bf16.gmra.mrb[28].mxu1 %v2201_v48  ;;  %v2296_v47 = vld [vmem:[%s3217_s0 + $0x170] ss:$8 sps:$4 sm:$0xff]   ;;  %v2297_v48 = vld [vmem:[%s3217_s0 + $0x300] ss:$8 sps:$4 sm:$0xff]  }
  0x7a   :  { %846 = vmatprep.mubr.bf16.mxu0 %v2202_v49  ;;  %1046 = vmatprep.mubr.bf16.mxu1 %v2204_v50  ;;  %v2298_v49 = vld [vmem:[%s3217_s0 + $0x184] ss:$8 sps:$4 sm:$0xff]   ;;  %v2300_v50 = vld [vmem:[%s3217_s0 + $0x314] ss:$8 sps:$4 sm:$0xff]  }
  0x81   :  { %847 = vmatmul.mubr.bf16.gmra.mrb[32].mxu0 %v2206_v51  ;;  %1047 = vmatmul.mubr.bf16.gmra.mrb[32].mxu1 %v2207_v52  ;;  %v2302_v51 = vld [vmem:[%s3217_s0 + $0x180] ss:$8 sps:$4 sm:$0xff]   ;;  %v2303_v52 = vld [vmem:[%s3217_s0 + $0x310] ss:$8 sps:$4 sm:$0xff]  }
  0x82   :  { %854 = vmatprep.mubr.bf16.mxu0 %v2208_v53  ;;  %1054 = vmatprep.mubr.bf16.mxu1 %v2210_v54  ;;  %v2709_v53 = vld [vmem:[%s3218_s2] ss:$0 sm:$0xff] }
  0x89   :  { %855 = vmatmul.mubr.bf16.gmra.mrb[36].mxu0 %v2212_v55  ;;  %1055 = vmatmul.mubr.bf16.gmra.mrb[36].mxu1 %v2213_v56 }
  0x8a   :  { %862 = vmatprep.mubr.bf16.mxu0 %v2214_v57  ;;  %1062 = vmatprep.mubr.bf16.mxu1 %v2216_v58 }
  0x91   :  { %863 = vmatmul.mubr.bf16.gmra.mrb[40].mxu0 %v2218_v59  ;;  %1063 = vmatmul.mubr.bf16.gmra.mrb[40].mxu1 %v2219_v60 }
  0x92   :  { %870 = vmatprep.mubr.bf16.mxu0 %v2220_v61  ;;  %1070 = vmatprep.mubr.bf16.mxu1 %v2222_v62 }
  0x99   :  { %871 = vmatmul.mubr.bf16.gmra.mrb[44].mxu0 %v2224_v63  ;;  %1071 = vmatmul.mubr.bf16.gmra.mrb[44].mxu1 %v2225_v0 }
  0x9a   :  { %878 = vmatprep.mubr.bf16.mxu0 %v2226_v1  ;;  %1078 = vmatprep.mubr.bf16.mxu1 %v2228_v2 }
  0xa1   :  { %879 = vmatmul.mubr.bf16.gmra.mrb[48].mxu0 %v2230_v3  ;;  %1079 = vmatmul.mubr.bf16.gmra.mrb[48].mxu1 %v2231_v4 }
  0xa2   :  { %886 = vmatprep.mubr.bf16.mxu0 %v2232_v5  ;;  %1086 = vmatprep.mubr.bf16.mxu1 %v2234_v6 }
  0xa9   :  { %887 = vmatmul.mubr.bf16.gmra.mrb[52].mxu0 %v2236_v7  ;;  %1087 = vmatmul.mubr.bf16.gmra.mrb[52].mxu1 %v2237_v8 }
  0xaa   :  { %894 = vmatprep.mubr.bf16.mxu0 %v2238_v9  ;;  %1094 = vmatprep.mubr.bf16.mxu1 %v2240_v10 }
  0xb1   :  { %895 = vmatmul.mubr.bf16.gmra.mrb[56].mxu0 %v2242_v11  ;;  %1095 = vmatmul.mubr.bf16.gmra.mrb[56].mxu1 %v2243_v12 }
  0xb2   :  { %902 = vmatprep.mubr.bf16.mxu0 %v2244_v13  ;;  %1102 = vmatprep.mubr.bf16.mxu1 %v2246_v14 }
  0xb9   :  { %903 = vmatmul.mubr.bf16.gmra.mrb[60].mxu0 %v2248_v15  ;;  %1103 = vmatmul.mubr.bf16.gmra.mrb[60].mxu1 %v2249_v16 }
  0xba   :  { %910 = vmatprep.mubr.bf16.mxu0 %v2250_v17  ;;  %1110 = vmatprep.mubr.bf16.mxu1 %v2252_v18 }
  0xc1   :  { %911 = vmatmul.mubr.bf16.gmra.mrb[64].mxu0 %v2254_v19  ;;  %1111 = vmatmul.mubr.bf16.gmra.mrb[64].mxu1 %v2255_v20 }
  0xc2   :  { %918 = vmatprep.mubr.bf16.mxu0 %v2256_v21  ;;  %1118 = vmatprep.mubr.bf16.mxu1 %v2258_v22 }
  0xc9   :  { %919 = vmatmul.mubr.bf16.gmra.mrb[68].mxu0 %v2260_v23  ;;  %1119 = vmatmul.mubr.bf16.gmra.mrb[68].mxu1 %v2261_v24 }
  0xca   :  { %926 = vmatprep.mubr.bf16.mxu0 %v2262_v25  ;;  %1126 = vmatprep.mubr.bf16.mxu1 %v2264_v26 }
  0xd1   :  { %927 = vmatmul.mubr.bf16.gmra.mrb[72].mxu0 %v2266_v27  ;;  %1127 = vmatmul.mubr.bf16.gmra.mrb[72].mxu1 %v2267_v28 }
  0xd2   :  { %934 = vmatprep.mubr.bf16.mxu0 %v2268_v29  ;;  %1134 = vmatprep.mubr.bf16.mxu1 %v2270_v30 }
  0xd9   :  { %935 = vmatmul.mubr.bf16.gmra.mrb[76].mxu0 %v2272_v31  ;;  %1135 = vmatmul.mubr.bf16.gmra.mrb[76].mxu1 %v2273_v32 }
  0xda   :  { %942 = vmatprep.mubr.bf16.mxu0 %v2274_v33  ;;  %1142 = vmatprep.mubr.bf16.mxu1 %v2276_v34 }
  0xe1   :  { %943 = vmatmul.mubr.bf16.gmra.mrb[80].mxu0 %v2278_v35  ;;  %1143 = vmatmul.mubr.bf16.gmra.mrb[80].mxu1 %v2279_v36 }
  0xe2   :  { %950 = vmatprep.mubr.bf16.mxu0 %v2280_v37  ;;  %1150 = vmatprep.mubr.bf16.mxu1 %v2282_v38 }
  0xe9   :  { %951 = vmatmul.mubr.bf16.gmra.mrb[84].mxu0 %v2284_v39  ;;  %1151 = vmatmul.mubr.bf16.gmra.mrb[84].mxu1 %v2285_v40 }
  0xea   :  { %958 = vmatprep.mubr.bf16.mxu0 %v2286_v41  ;;  %1158 = vmatprep.mubr.bf16.mxu1 %v2288_v42 }
  0xf1   :  { %959 = vmatmul.mubr.bf16.gmra.mrb[88].mxu0 %v2290_v43  ;;  %1159 = vmatmul.mubr.bf16.gmra.mrb[88].mxu1 %v2291_v44 }
  0xf2   :  { %966 = vmatprep.mubr.bf16.mxu0 %v2292_v45  ;;  %1166 = vmatprep.mubr.bf16.mxu1 %v2294_v46 }
  0xf9   :  { %967 = vmatmul.mubr.bf16.gmra.mrb[92].mxu0 %v2296_v47  ;;  %1167 = vmatmul.mubr.bf16.gmra.mrb[92].mxu1 %v2297_v48 }
  0xfa   :  { %974 = vmatprep.mubr.bf16.mxu0 %v2298_v49  ;;  %1174 = vmatprep.mubr.bf16.mxu1 %v2300_v50 }
 0x101   :  { %975 = vmatmul.mubr.bf16.gmra.mrb[96].mxu0 %v2302_v51  ;;  %1175 = vmatmul.mubr.bf16.gmra.mrb[96].mxu1 %v2303_v52 }
 0x114   :  { %v784_v54 = vpop.f32.mrb[0].mxu0  ;;  %v984_v55 = vpop.f32.mrb[0].mxu1 }
 0x115   :  { %v785_v56 = vadd.f32 %v2709_v53, %v784_v54  ;;  %v985_v57 = vadd.f32 %v2709_v53, %v984_v55  ;;  %v786_v58 = vpop.f32.mrb[1].mxu0  ;;  %v986_v59 = vpop.f32.mrb[1].mxu1 }
 0x116   :  { %v787_v60 = vpop.f32.mrb[2].mxu0  ;;  %v987_v61 = vpop.f32.mrb[2].mxu1 }
 0x117   :  { %v1183_v62 = vmax.f32 %v785_v56, 0.0  ;;  %v1233_v63 = vmax.f32 %v985_v57, 0.0  ;;  %v788_v0 = vadd.f32 %v2709_v53, %v787_v60  ;;  %v988_v1 = vadd.f32 %v2709_v53, %v987_v61  ;;  %v789_v2 = vpop.f32.mrb[3].mxu0  ;;  %v989_v3 = vpop.f32.mrb[3].mxu1 }
 0x119   :  { %v2005_v4 = vpack.c.bf16 %v1183_v62, %v1183_v62  ;;  %v2055_v5 = vpack.c.bf16 %v1233_v63, %v1233_v63  ;;  %v1184_v6 = vmax.f32 %v788_v0, 0.0  ;;  %v1234_v7 = vmax.f32 %v988_v1, 0.0 }
 0x11b   :  { %1684 = vst.msk [vmem:[%s3219_s3] sm:$0xf] %vm1683_vm0, %v2005_v4  ;;  %1734 = vst.msk [vmem:[%s3219_s3 + $0xc8] sm:$0xf] %vm1683_vm0, %v2055_v5  ;;  %v2006_v8 = vpack.c.bf16 %v1184_v6, %v1184_v6  ;;  %v2056_v9 = vpack.c.bf16 %v1234_v7, %v1234_v7 }
 0x11c   :  { %v792_v10 = vpop.f32.mrb[4].mxu0  ;;  %v992_v11 = vpop.f32.mrb[4].mxu1 }
 0x11d   :  { %1685 = vst.msk [vmem:[%s3219_s3 + $0x4] sm:$0xf] %vm1683_vm0, %v2006_v8  ;;  %1735 = vst.msk [vmem:[%s3219_s3 + $0xcc] sm:$0xf] %vm1683_vm0, %v2056_v9  ;;  %v793_v12 = vadd.f32 %v2709_v53, %v792_v10  ;;  %v993_v13 = vadd.f32 %v2709_v53, %v992_v11  ;;  %v794_v14 = vpop.f32.mrb[5].mxu0  ;;  %v994_v15 = vpop.f32.mrb[5].mxu1 }
 0x11e   :  { %v795_v16 = vpop.f32.mrb[6].mxu0  ;;  %v995_v17 = vpop.f32.mrb[6].mxu1 }
 0x11f   :  { %v1185_v18 = vmax.f32 %v793_v12, 0.0  ;;  %v1235_v19 = vmax.f32 %v993_v13, 0.0  ;;  %v796_v20 = vadd.f32 %v2709_v53, %v795_v16  ;;  %v996_v21 = vadd.f32 %v2709_v53, %v995_v17  ;;  %v797_v22 = vpop.f32.mrb[7].mxu0  ;;  %v997_v23 = vpop.f32.mrb[7].mxu1 }
 0x121   :  { %v2007_v24 = vpack.c.bf16 %v1185_v18, %v1185_v18  ;;  %v2057_v25 = vpack.c.bf16 %v1235_v19, %v1235_v19  ;;  %v1186_v26 = vmax.f32 %v796_v20, 0.0  ;;  %v1236_v27 = vmax.f32 %v996_v21, 0.0 }
 0x123   :  { %1686 = vst.msk [vmem:[%s3219_s3 + $0x8] sm:$0xf] %vm1683_vm0, %v2007_v24  ;;  %1736 = vst.msk [vmem:[%s3219_s3 + $0xd0] sm:$0xf] %vm1683_vm0, %v2057_v25  ;;  %v2008_v28 = vpack.c.bf16 %v1186_v26, %v1186_v26  ;;  %v2058_v29 = vpack.c.bf16 %v1236_v27, %v1236_v27 }
 0x124   :  { %v800_v30 = vpop.f32.mrb[8].mxu0  ;;  %v1000_v31 = vpop.f32.mrb[8].mxu1 }
 0x125   :  { %1687 = vst.msk [vmem:[%s3219_s3 + $0xc] sm:$0xf] %vm1683_vm0, %v2008_v28  ;;  %1737 = vst.msk [vmem:[%s3219_s3 + $0xd4] sm:$0xf] %vm1683_vm0, %v2058_v29  ;;  %v801_v32 = vadd.f32 %v2709_v53, %v800_v30  ;;  %v1001_v33 = vadd.f32 %v2709_v53, %v1000_v31  ;;  %v802_v34 = vpop.f32.mrb[9].mxu0  ;;  %v1002_v35 = vpop.f32.mrb[9].mxu1 }
 0x126   :  { %v803_v36 = vpop.f32.mrb[10].mxu0  ;;  %v1003_v37 = vpop.f32.mrb[10].mxu1 }
 0x127   :  { %v1187_v38 = vmax.f32 %v801_v32, 0.0  ;;  %v1237_v39 = vmax.f32 %v1001_v33, 0.0  ;;  %v804_v40 = vadd.f32 %v2709_v53, %v803_v36  ;;  %v1004_v41 = vadd.f32 %v2709_v53, %v1003_v37  ;;  %v805_v42 = vpop.f32.mrb[11].mxu0  ;;  %v1005_v43 = vpop.f32.mrb[11].mxu1 }
 0x129   :  { %v2009_v44 = vpack.c.bf16 %v1187_v38, %v1187_v38  ;;  %v2059_v45 = vpack.c.bf16 %v1237_v39, %v1237_v39  ;;  %v1188_v46 = vmax.f32 %v804_v40, 0.0  ;;  %v1238_v47 = vmax.f32 %v1004_v41, 0.0 }
 0x12b   :  { %1688 = vst.msk [vmem:[%s3219_s3 + $0x10] sm:$0xf] %vm1683_vm0, %v2009_v44  ;;  %1738 = vst.msk [vmem:[%s3219_s3 + $0xd8] sm:$0xf] %vm1683_vm0, %v2059_v45  ;;  %v2010_v48 = vpack.c.bf16 %v1188_v46, %v1188_v46  ;;  %v2060_v49 = vpack.c.bf16 %v1238_v47, %v1238_v47 }
 0x12c   :  { %v808_v50 = vpop.f32.mrb[12].mxu0  ;;  %v1008_v51 = vpop.f32.mrb[12].mxu1 }
 0x12d   :  { %1689 = vst.msk [vmem:[%s3219_s3 + $0x14] sm:$0xf] %vm1683_vm0, %v2010_v48  ;;  %1739 = vst.msk [vmem:[%s3219_s3 + $0xdc] sm:$0xf] %vm1683_vm0, %v2060_v49  ;;  %v809_v52 = vadd.f32 %v2709_v53, %v808_v50  ;;  %v1009_v54 = vadd.f32 %v2709_v53, %v1008_v51  ;;  %v810_v55 = vpop.f32.mrb[13].mxu0  ;;  %v1010_v56 = vpop.f32.mrb[13].mxu1 }
 0x12e   :  { %v811_v57 = vpop.f32.mrb[14].mxu0  ;;  %v1011_v58 = vpop.f32.mrb[14].mxu1 }
 0x12f   :  { %v1189_v59 = vmax.f32 %v809_v52, 0.0  ;;  %v1239_v60 = vmax.f32 %v1009_v54, 0.0  ;;  %v812_v61 = vadd.f32 %v2709_v53, %v811_v57  ;;  %v1012_v62 = vadd.f32 %v2709_v53, %v1011_v58  ;;  %v813_v63 = vpop.f32.mrb[15].mxu0  ;;  %v1013_v0 = vpop.f32.mrb[15].mxu1 }
 0x131   :  { %v2011_v1 = vpack.c.bf16 %v1189_v59, %v1189_v59  ;;  %v2061_v2 = vpack.c.bf16 %v1239_v60, %v1239_v60  ;;  %v1190_v3 = vmax.f32 %v812_v61, 0.0  ;;  %v1240_v4 = vmax.f32 %v1012_v62, 0.0 }
 0x133   :  { %1690 = vst.msk [vmem:[%s3219_s3 + $0x18] sm:$0xf] %vm1683_vm0, %v2011_v1  ;;  %1740 = vst.msk [vmem:[%s3219_s3 + $0xe0] sm:$0xf] %vm1683_vm0, %v2061_v2  ;;  %v2012_v5 = vpack.c.bf16 %v1190_v3, %v1190_v3  ;;  %v2062_v6 = vpack.c.bf16 %v1240_v4, %v1240_v4 }
 0x134   :  { %v816_v7 = vpop.f32.mrb[16].mxu0  ;;  %v1016_v8 = vpop.f32.mrb[16].mxu1 }
 0x135   :  { %1691 = vst.msk [vmem:[%s3219_s3 + $0x1c] sm:$0xf] %vm1683_vm0, %v2012_v5  ;;  %1741 = vst.msk [vmem:[%s3219_s3 + $0xe4] sm:$0xf] %vm1683_vm0, %v2062_v6  ;;  %v817_v9 = vadd.f32 %v2709_v53, %v816_v7  ;;  %v1017_v10 = vadd.f32 %v2709_v53, %v1016_v8  ;;  %v818_v11 = vpop.f32.mrb[17].mxu0  ;;  %v1018_v12 = vpop.f32.mrb[17].mxu1 }
 0x136   :  { %v819_v13 = vpop.f32.mrb[18].mxu0  ;;  %v1019_v14 = vpop.f32.mrb[18].mxu1 }
 0x137   :  { %v1191_v15 = vmax.f32 %v817_v9, 0.0  ;;  %v1241_v16 = vmax.f32 %v1017_v10, 0.0  ;;  %v820_v17 = vadd.f32 %v2709_v53, %v819_v13  ;;  %v1020_v18 = vadd.f32 %v2709_v53, %v1019_v14  ;;  %v821_v19 = vpop.f32.mrb[19].mxu0  ;;  %v1021_v20 = vpop.f32.mrb[19].mxu1 }
 0x139   :  { %v2013_v21 = vpack.c.bf16 %v1191_v15, %v1191_v15  ;;  %v2063_v22 = vpack.c.bf16 %v1241_v16, %v1241_v16  ;;  %v1192_v23 = vmax.f32 %v820_v17, 0.0  ;;  %v1242_v24 = vmax.f32 %v1020_v18, 0.0 }
 0x13b   :  { %1692 = vst.msk [vmem:[%s3219_s3 + $0x20] sm:$0xf] %vm1683_vm0, %v2013_v21  ;;  %1742 = vst.msk [vmem:[%s3219_s3 + $0xe8] sm:$0xf] %vm1683_vm0, %v2063_v22  ;;  %v2014_v25 = vpack.c.bf16 %v1192_v23, %v1192_v23  ;;  %v2064_v26 = vpack.c.bf16 %v1242_v24, %v1242_v24 }
 0x13c   :  { %v824_v27 = vpop.f32.mrb[20].mxu0  ;;  %v1024_v28 = vpop.f32.mrb[20].mxu1 }
 0x13d   :  { %1693 = vst.msk [vmem:[%s3219_s3 + $0x24] sm:$0xf] %vm1683_vm0, %v2014_v25  ;;  %1743 = vst.msk [vmem:[%s3219_s3 + $0xec] sm:$0xf] %vm1683_vm0, %v2064_v26  ;;  %v825_v29 = vadd.f32 %v2709_v53, %v824_v27  ;;  %v1025_v30 = vadd.f32 %v2709_v53, %v1024_v28  ;;  %v826_v31 = vpop.f32.mrb[21].mxu0  ;;  %v1026_v32 = vpop.f32.mrb[21].mxu1 }
 0x13e   :  { %v827_v33 = vpop.f32.mrb[22].mxu0  ;;  %v1027_v34 = vpop.f32.mrb[22].mxu1 }
 0x13f   :  { %v1193_v35 = vmax.f32 %v825_v29, 0.0  ;;  %v1243_v36 = vmax.f32 %v1025_v30, 0.0  ;;  %v828_v37 = vadd.f32 %v2709_v53, %v827_v33  ;;  %v1028_v38 = vadd.f32 %v2709_v53, %v1027_v34  ;;  %v829_v39 = vpop.f32.mrb[23].mxu0  ;;  %v1029_v40 = vpop.f32.mrb[23].mxu1 }
 0x141   :  { %v2015_v41 = vpack.c.bf16 %v1193_v35, %v1193_v35  ;;  %v2065_v42 = vpack.c.bf16 %v1243_v36, %v1243_v36  ;;  %v1194_v43 = vmax.f32 %v828_v37, 0.0  ;;  %v1244_v44 = vmax.f32 %v1028_v38, 0.0 }
 0x143   :  { %1694 = vst.msk [vmem:[%s3219_s3 + $0x28] sm:$0xf] %vm1683_vm0, %v2015_v41  ;;  %1744 = vst.msk [vmem:[%s3219_s3 + $0xf0] sm:$0xf] %vm1683_vm0, %v2065_v42  ;;  %v2016_v45 = vpack.c.bf16 %v1194_v43, %v1194_v43  ;;  %v2066_v46 = vpack.c.bf16 %v1244_v44, %v1244_v44 }
 0x144   :  { %v832_v47 = vpop.f32.mrb[24].mxu0  ;;  %v1032_v48 = vpop.f32.mrb[24].mxu1 }
 0x145   :  { %1695 = vst.msk [vmem:[%s3219_s3 + $0x2c] sm:$0xf] %vm1683_vm0, %v2016_v45  ;;  %1745 = vst.msk [vmem:[%s3219_s3 + $0xf4] sm:$0xf] %vm1683_vm0, %v2066_v46  ;;  %v833_v49 = vadd.f32 %v2709_v53, %v832_v47  ;;  %v1033_v50 = vadd.f32 %v2709_v53, %v1032_v48  ;;  %v834_v51 = vpop.f32.mrb[25].mxu0  ;;  %v1034_v52 = vpop.f32.mrb[25].mxu1 }
 0x146   :  { %v835_v54 = vpop.f32.mrb[26].mxu0  ;;  %v1035_v55 = vpop.f32.mrb[26].mxu1 }
 0x147   :  { %v1195_v56 = vmax.f32 %v833_v49, 0.0  ;;  %v1245_v57 = vmax.f32 %v1033_v50, 0.0  ;;  %v836_v58 = vadd.f32 %v2709_v53, %v835_v54  ;;  %v1036_v59 = vadd.f32 %v2709_v53, %v1035_v55  ;;  %v837_v60 = vpop.f32.mrb[27].mxu0  ;;  %v1037_v61 = vpop.f32.mrb[27].mxu1 }
 0x149   :  { %v2017_v62 = vpack.c.bf16 %v1195_v56, %v1195_v56  ;;  %v2067_v63 = vpack.c.bf16 %v1245_v57, %v1245_v57  ;;  %v1196_v0 = vmax.f32 %v836_v58, 0.0  ;;  %v1246_v1 = vmax.f32 %v1036_v59, 0.0 }
 0x14b   :  { %1696 = vst.msk [vmem:[%s3219_s3 + $0x30] sm:$0xf] %vm1683_vm0, %v2017_v62  ;;  %1746 = vst.msk [vmem:[%s3219_s3 + $0xf8] sm:$0xf] %vm1683_vm0, %v2067_v63  ;;  %v2018_v2 = vpack.c.bf16 %v1196_v0, %v1196_v0  ;;  %v2068_v3 = vpack.c.bf16 %v1246_v1, %v1246_v1 }
 0x14c   :  { %v840_v4 = vpop.f32.mrb[28].mxu0  ;;  %v1040_v5 = vpop.f32.mrb[28].mxu1 }
 0x14d   :  { %1697 = vst.msk [vmem:[%s3219_s3 + $0x34] sm:$0xf] %vm1683_vm0, %v2018_v2  ;;  %1747 = vst.msk [vmem:[%s3219_s3 + $0xfc] sm:$0xf] %vm1683_vm0, %v2068_v3  ;;  %v841_v6 = vadd.f32 %v2709_v53, %v840_v4  ;;  %v1041_v7 = vadd.f32 %v2709_v53, %v1040_v5  ;;  %v842_v8 = vpop.f32.mrb[29].mxu0  ;;  %v1042_v9 = vpop.f32.mrb[29].mxu1 }
 0x14e   :  { %v843_v10 = vpop.f32.mrb[30].mxu0  ;;  %v1043_v11 = vpop.f32.mrb[30].mxu1 }
 0x14f   :  { %v1197_v12 = vmax.f32 %v841_v6, 0.0  ;;  %v1247_v13 = vmax.f32 %v1041_v7, 0.0  ;;  %v844_v14 = vadd.f32 %v2709_v53, %v843_v10  ;;  %v1044_v15 = vadd.f32 %v2709_v53, %v1043_v11  ;;  %v845_v16 = vpop.f32.mrb[31].mxu0  ;;  %v1045_v17 = vpop.f32.mrb[31].mxu1 }
 0x151   :  { %v2019_v18 = vpack.c.bf16 %v1197_v12, %v1197_v12  ;;  %v2069_v19 = vpack.c.bf16 %v1247_v13, %v1247_v13  ;;  %v1198_v20 = vmax.f32 %v844_v14, 0.0  ;;  %v1248_v21 = vmax.f32 %v1044_v15, 0.0 }
 0x153   :  { %1698 = vst.msk [vmem:[%s3219_s3 + $0x38] sm:$0xf] %vm1683_vm0, %v2019_v18  ;;  %1748 = vst.msk [vmem:[%s3219_s3 + $0x100] sm:$0xf] %vm1683_vm0, %v2069_v19  ;;  %v2020_v22 = vpack.c.bf16 %v1198_v20, %v1198_v20  ;;  %v2070_v23 = vpack.c.bf16 %v1248_v21, %v1248_v21 }
 0x154   :  { %v848_v24 = vpop.f32.mrb[32].mxu0  ;;  %v1048_v25 = vpop.f32.mrb[32].mxu1 }
 0x155   :  { %1699 = vst.msk [vmem:[%s3219_s3 + $0x3c] sm:$0xf] %vm1683_vm0, %v2020_v22  ;;  %1749 = vst.msk [vmem:[%s3219_s3 + $0x104] sm:$0xf] %vm1683_vm0, %v2070_v23  ;;  %v849_v26 = vadd.f32 %v2709_v53, %v848_v24  ;;  %v1049_v27 = vadd.f32 %v2709_v53, %v1048_v25  ;;  %v850_v28 = vpop.f32.mrb[33].mxu0  ;;  %v1050_v29 = vpop.f32.mrb[33].mxu1 }
 0x156   :  { %v851_v30 = vpop.f32.mrb[34].mxu0  ;;  %v1051_v31 = vpop.f32.mrb[34].mxu1 }
 0x157   :  { %v1199_v32 = vmax.f32 %v849_v26, 0.0  ;;  %v1249_v33 = vmax.f32 %v1049_v27, 0.0  ;;  %v852_v34 = vadd.f32 %v2709_v53, %v851_v30  ;;  %v1052_v35 = vadd.f32 %v2709_v53, %v1051_v31  ;;  %v853_v36 = vpop.f32.mrb[35].mxu0  ;;  %v1053_v37 = vpop.f32.mrb[35].mxu1 }
 0x159   :  { %v2021_v38 = vpack.c.bf16 %v1199_v32, %v1199_v32  ;;  %v2071_v39 = vpack.c.bf16 %v1249_v33, %v1249_v33  ;;  %v1200_v40 = vmax.f32 %v852_v34, 0.0  ;;  %v1250_v41 = vmax.f32 %v1052_v35, 0.0 }
 0x15b   :  { %1700 = vst.msk [vmem:[%s3219_s3 + $0x40] sm:$0xf] %vm1683_vm0, %v2021_v38  ;;  %1750 = vst.msk [vmem:[%s3219_s3 + $0x108] sm:$0xf] %vm1683_vm0, %v2071_v39  ;;  %v2022_v42 = vpack.c.bf16 %v1200_v40, %v1200_v40  ;;  %v2072_v43 = vpack.c.bf16 %v1250_v41, %v1250_v41 }
 0x15c   :  { %v856_v44 = vpop.f32.mrb[36].mxu0  ;;  %v1056_v45 = vpop.f32.mrb[36].mxu1 }
 0x15d   :  { %1701 = vst.msk [vmem:[%s3219_s3 + $0x44] sm:$0xf] %vm1683_vm0, %v2022_v42  ;;  %1751 = vst.msk [vmem:[%s3219_s3 + $0x10c] sm:$0xf] %vm1683_vm0, %v2072_v43  ;;  %v857_v46 = vadd.f32 %v2709_v53, %v856_v44  ;;  %v1057_v47 = vadd.f32 %v2709_v53, %v1056_v45  ;;  %v858_v48 = vpop.f32.mrb[37].mxu0  ;;  %v1058_v49 = vpop.f32.mrb[37].mxu1 }
 0x15e   :  { %v859_v50 = vpop.f32.mrb[38].mxu0  ;;  %v1059_v51 = vpop.f32.mrb[38].mxu1 }
 0x15f   :  { %v1201_v52 = vmax.f32 %v857_v46, 0.0  ;;  %v1251_v54 = vmax.f32 %v1057_v47, 0.0  ;;  %v860_v55 = vadd.f32 %v2709_v53, %v859_v50  ;;  %v1060_v56 = vadd.f32 %v2709_v53, %v1059_v51  ;;  %v861_v57 = vpop.f32.mrb[39].mxu0  ;;  %v1061_v58 = vpop.f32.mrb[39].mxu1 }
 0x161   :  { %v2023_v59 = vpack.c.bf16 %v1201_v52, %v1201_v52  ;;  %v2073_v60 = vpack.c.bf16 %v1251_v54, %v1251_v54  ;;  %v1202_v61 = vmax.f32 %v860_v55, 0.0  ;;  %v1252_v62 = vmax.f32 %v1060_v56, 0.0 }
 0x163   :  { %1702 = vst.msk [vmem:[%s3219_s3 + $0x48] sm:$0xf] %vm1683_vm0, %v2023_v59  ;;  %1752 = vst.msk [vmem:[%s3219_s3 + $0x110] sm:$0xf] %vm1683_vm0, %v2073_v60  ;;  %v2024_v63 = vpack.c.bf16 %v1202_v61, %v1202_v61  ;;  %v2074_v0 = vpack.c.bf16 %v1252_v62, %v1252_v62 }
 0x164   :  { %v864_v1 = vpop.f32.mrb[40].mxu0  ;;  %v1064_v2 = vpop.f32.mrb[40].mxu1 }
 0x165   :  { %1703 = vst.msk [vmem:[%s3219_s3 + $0x4c] sm:$0xf] %vm1683_vm0, %v2024_v63  ;;  %1753 = vst.msk [vmem:[%s3219_s3 + $0x114] sm:$0xf] %vm1683_vm0, %v2074_v0  ;;  %v865_v3 = vadd.f32 %v2709_v53, %v864_v1  ;;  %v1065_v4 = vadd.f32 %v2709_v53, %v1064_v2  ;;  %v866_v5 = vpop.f32.mrb[41].mxu0  ;;  %v1066_v6 = vpop.f32.mrb[41].mxu1 }
 0x166   :  { %v867_v7 = vpop.f32.mrb[42].mxu0  ;;  %v1067_v8 = vpop.f32.mrb[42].mxu1 }
 0x167   :  { %v1203_v9 = vmax.f32 %v865_v3, 0.0  ;;  %v1253_v10 = vmax.f32 %v1065_v4, 0.0  ;;  %v868_v11 = vadd.f32 %v2709_v53, %v867_v7  ;;  %v1068_v12 = vadd.f32 %v2709_v53, %v1067_v8  ;;  %v869_v13 = vpop.f32.mrb[43].mxu0  ;;  %v1069_v14 = vpop.f32.mrb[43].mxu1 }
 0x169   :  { %v2025_v15 = vpack.c.bf16 %v1203_v9, %v1203_v9  ;;  %v2075_v16 = vpack.c.bf16 %v1253_v10, %v1253_v10  ;;  %v1204_v17 = vmax.f32 %v868_v11, 0.0  ;;  %v1254_v18 = vmax.f32 %v1068_v12, 0.0 }
 0x16b   :  { %1704 = vst.msk [vmem:[%s3219_s3 + $0x50] sm:$0xf] %vm1683_vm0, %v2025_v15  ;;  %1754 = vst.msk [vmem:[%s3219_s3 + $0x118] sm:$0xf] %vm1683_vm0, %v2075_v16  ;;  %v2026_v19 = vpack.c.bf16 %v1204_v17, %v1204_v17  ;;  %v2076_v20 = vpack.c.bf16 %v1254_v18, %v1254_v18 }
 0x16c   :  { %v872_v21 = vpop.f32.mrb[44].mxu0  ;;  %v1072_v22 = vpop.f32.mrb[44].mxu1 }
 0x16d   :  { %1705 = vst.msk [vmem:[%s3219_s3 + $0x54] sm:$0xf] %vm1683_vm0, %v2026_v19  ;;  %1755 = vst.msk [vmem:[%s3219_s3 + $0x11c] sm:$0xf] %vm1683_vm0, %v2076_v20  ;;  %v873_v23 = vadd.f32 %v2709_v53, %v872_v21  ;;  %v1073_v24 = vadd.f32 %v2709_v53, %v1072_v22  ;;  %v874_v25 = vpop.f32.mrb[45].mxu0  ;;  %v1074_v26 = vpop.f32.mrb[45].mxu1 }
 0x16e   :  { %v875_v27 = vpop.f32.mrb[46].mxu0  ;;  %v1075_v28 = vpop.f32.mrb[46].mxu1 }
 0x16f   :  { %v1205_v29 = vmax.f32 %v873_v23, 0.0  ;;  %v1255_v30 = vmax.f32 %v1073_v24, 0.0  ;;  %v876_v31 = vadd.f32 %v2709_v53, %v875_v27  ;;  %v1076_v32 = vadd.f32 %v2709_v53, %v1075_v28  ;;  %v877_v33 = vpop.f32.mrb[47].mxu0  ;;  %v1077_v34 = vpop.f32.mrb[47].mxu1 }
 0x171   :  { %v2027_v35 = vpack.c.bf16 %v1205_v29, %v1205_v29  ;;  %v2077_v36 = vpack.c.bf16 %v1255_v30, %v1255_v30  ;;  %v1206_v37 = vmax.f32 %v876_v31, 0.0  ;;  %v1256_v38 = vmax.f32 %v1076_v32, 0.0 }
 0x173   :  { %1706 = vst.msk [vmem:[%s3219_s3 + $0x58] sm:$0xf] %vm1683_vm0, %v2027_v35  ;;  %1756 = vst.msk [vmem:[%s3219_s3 + $0x120] sm:$0xf] %vm1683_vm0, %v2077_v36  ;;  %v2028_v39 = vpack.c.bf16 %v1206_v37, %v1206_v37  ;;  %v2078_v40 = vpack.c.bf16 %v1256_v38, %v1256_v38 }
 0x174   :  { %v880_v41 = vpop.f32.mrb[48].mxu0  ;;  %v1080_v42 = vpop.f32.mrb[48].mxu1 }
 0x175   :  { %1707 = vst.msk [vmem:[%s3219_s3 + $0x5c] sm:$0xf] %vm1683_vm0, %v2028_v39  ;;  %1757 = vst.msk [vmem:[%s3219_s3 + $0x124] sm:$0xf] %vm1683_vm0, %v2078_v40  ;;  %v881_v43 = vadd.f32 %v2709_v53, %v880_v41  ;;  %v1081_v44 = vadd.f32 %v2709_v53, %v1080_v42  ;;  %v882_v45 = vpop.f32.mrb[49].mxu0  ;;  %v1082_v46 = vpop.f32.mrb[49].mxu1 }
 0x176   :  { %v883_v47 = vpop.f32.mrb[50].mxu0  ;;  %v1083_v48 = vpop.f32.mrb[50].mxu1 }
 0x177   :  { %v1207_v49 = vmax.f32 %v881_v43, 0.0  ;;  %v1257_v50 = vmax.f32 %v1081_v44, 0.0  ;;  %v884_v51 = vadd.f32 %v2709_v53, %v883_v47  ;;  %v1084_v52 = vadd.f32 %v2709_v53, %v1083_v48  ;;  %v885_v54 = vpop.f32.mrb[51].mxu0  ;;  %v1085_v55 = vpop.f32.mrb[51].mxu1 }
 0x179   :  { %v2029_v56 = vpack.c.bf16 %v1207_v49, %v1207_v49  ;;  %v2079_v57 = vpack.c.bf16 %v1257_v50, %v1257_v50  ;;  %v1208_v58 = vmax.f32 %v884_v51, 0.0  ;;  %v1258_v59 = vmax.f32 %v1084_v52, 0.0 }
 0x17b   :  { %1708 = vst.msk [vmem:[%s3219_s3 + $0x60] sm:$0xf] %vm1683_vm0, %v2029_v56  ;;  %1758 = vst.msk [vmem:[%s3219_s3 + $0x128] sm:$0xf] %vm1683_vm0, %v2079_v57  ;;  %v2030_v60 = vpack.c.bf16 %v1208_v58, %v1208_v58  ;;  %v2080_v61 = vpack.c.bf16 %v1258_v59, %v1258_v59 }
 0x17c   :  { %v888_v62 = vpop.f32.mrb[52].mxu0  ;;  %v1088_v63 = vpop.f32.mrb[52].mxu1 }
 0x17d   :  { %1709 = vst.msk [vmem:[%s3219_s3 + $0x64] sm:$0xf] %vm1683_vm0, %v2030_v60  ;;  %1759 = vst.msk [vmem:[%s3219_s3 + $0x12c] sm:$0xf] %vm1683_vm0, %v2080_v61  ;;  %v889_v0 = vadd.f32 %v2709_v53, %v888_v62  ;;  %v1089_v1 = vadd.f32 %v2709_v53, %v1088_v63  ;;  %v890_v2 = vpop.f32.mrb[53].mxu0  ;;  %v1090_v3 = vpop.f32.mrb[53].mxu1 }
 0x17e   :  { %v891_v4 = vpop.f32.mrb[54].mxu0  ;;  %v1091_v5 = vpop.f32.mrb[54].mxu1 }
 0x17f   :  { %v1209_v6 = vmax.f32 %v889_v0, 0.0  ;;  %v1259_v7 = vmax.f32 %v1089_v1, 0.0  ;;  %v892_v8 = vadd.f32 %v2709_v53, %v891_v4  ;;  %v1092_v9 = vadd.f32 %v2709_v53, %v1091_v5  ;;  %v893_v10 = vpop.f32.mrb[55].mxu0  ;;  %v1093_v11 = vpop.f32.mrb[55].mxu1 }
 0x181   :  { %v2031_v12 = vpack.c.bf16 %v1209_v6, %v1209_v6  ;;  %v2081_v13 = vpack.c.bf16 %v1259_v7, %v1259_v7  ;;  %v1210_v14 = vmax.f32 %v892_v8, 0.0  ;;  %v1260_v15 = vmax.f32 %v1092_v9, 0.0 }
 0x183   :  { %1710 = vst.msk [vmem:[%s3219_s3 + $0x68] sm:$0xf] %vm1683_vm0, %v2031_v12  ;;  %1760 = vst.msk [vmem:[%s3219_s3 + $0x130] sm:$0xf] %vm1683_vm0, %v2081_v13  ;;  %v2032_v16 = vpack.c.bf16 %v1210_v14, %v1210_v14  ;;  %v2082_v17 = vpack.c.bf16 %v1260_v15, %v1260_v15 }
 0x184   :  { %v896_v18 = vpop.f32.mrb[56].mxu0  ;;  %v1096_v19 = vpop.f32.mrb[56].mxu1 }
 0x185   :  { %1711 = vst.msk [vmem:[%s3219_s3 + $0x6c] sm:$0xf] %vm1683_vm0, %v2032_v16  ;;  %1761 = vst.msk [vmem:[%s3219_s3 + $0x134] sm:$0xf] %vm1683_vm0, %v2082_v17  ;;  %v897_v20 = vadd.f32 %v2709_v53, %v896_v18  ;;  %v1097_v21 = vadd.f32 %v2709_v53, %v1096_v19  ;;  %v898_v22 = vpop.f32.mrb[57].mxu0  ;;  %v1098_v23 = vpop.f32.mrb[57].mxu1 }
 0x186   :  { %v899_v24 = vpop.f32.mrb[58].mxu0  ;;  %v1099_v25 = vpop.f32.mrb[58].mxu1 }
 0x187   :  { %v1211_v26 = vmax.f32 %v897_v20, 0.0  ;;  %v1261_v27 = vmax.f32 %v1097_v21, 0.0  ;;  %v900_v28 = vadd.f32 %v2709_v53, %v899_v24  ;;  %v1100_v29 = vadd.f32 %v2709_v53, %v1099_v25  ;;  %v901_v30 = vpop.f32.mrb[59].mxu0  ;;  %v1101_v31 = vpop.f32.mrb[59].mxu1 }
 0x189   :  { %v2033_v32 = vpack.c.bf16 %v1211_v26, %v1211_v26  ;;  %v2083_v33 = vpack.c.bf16 %v1261_v27, %v1261_v27  ;;  %v1212_v34 = vmax.f32 %v900_v28, 0.0  ;;  %v1262_v35 = vmax.f32 %v1100_v29, 0.0 }
 0x18b   :  { %1712 = vst.msk [vmem:[%s3219_s3 + $0x70] sm:$0xf] %vm1683_vm0, %v2033_v32  ;;  %1762 = vst.msk [vmem:[%s3219_s3 + $0x138] sm:$0xf] %vm1683_vm0, %v2083_v33  ;;  %v2034_v36 = vpack.c.bf16 %v1212_v34, %v1212_v34  ;;  %v2084_v37 = vpack.c.bf16 %v1262_v35, %v1262_v35 }
 0x18c   :  { %v904_v38 = vpop.f32.mrb[60].mxu0  ;;  %v1104_v39 = vpop.f32.mrb[60].mxu1 }
 0x18d   :  { %1713 = vst.msk [vmem:[%s3219_s3 + $0x74] sm:$0xf] %vm1683_vm0, %v2034_v36  ;;  %1763 = vst.msk [vmem:[%s3219_s3 + $0x13c] sm:$0xf] %vm1683_vm0, %v2084_v37  ;;  %v905_v40 = vadd.f32 %v2709_v53, %v904_v38  ;;  %v1105_v41 = vadd.f32 %v2709_v53, %v1104_v39  ;;  %v906_v42 = vpop.f32.mrb[61].mxu0  ;;  %v1106_v43 = vpop.f32.mrb[61].mxu1 }
 0x18e   :  { %v907_v44 = vpop.f32.mrb[62].mxu0  ;;  %v1107_v45 = vpop.f32.mrb[62].mxu1 }
 0x18f   :  { %v1213_v46 = vmax.f32 %v905_v40, 0.0  ;;  %v1263_v47 = vmax.f32 %v1105_v41, 0.0  ;;  %v908_v48 = vadd.f32 %v2709_v53, %v907_v44  ;;  %v1108_v49 = vadd.f32 %v2709_v53, %v1107_v45  ;;  %v909_v50 = vpop.f32.mrb[63].mxu0  ;;  %v1109_v51 = vpop.f32.mrb[63].mxu1 }
 0x191   :  { %v2035_v52 = vpack.c.bf16 %v1213_v46, %v1213_v46  ;;  %v2085_v54 = vpack.c.bf16 %v1263_v47, %v1263_v47  ;;  %v1214_v55 = vmax.f32 %v908_v48, 0.0  ;;  %v1264_v56 = vmax.f32 %v1108_v49, 0.0 }
 0x193   :  { %1714 = vst.msk [vmem:[%s3219_s3 + $0x78] sm:$0xf] %vm1683_vm0, %v2035_v52  ;;  %1764 = vst.msk [vmem:[%s3219_s3 + $0x140] sm:$0xf] %vm1683_vm0, %v2085_v54  ;;  %v2036_v57 = vpack.c.bf16 %v1214_v55, %v1214_v55  ;;  %v2086_v58 = vpack.c.bf16 %v1264_v56, %v1264_v56 }
 0x194   :  { %v912_v59 = vpop.f32.mrb[64].mxu0  ;;  %v1112_v60 = vpop.f32.mrb[64].mxu1 }
 0x195   :  { %1715 = vst.msk [vmem:[%s3219_s3 + $0x7c] sm:$0xf] %vm1683_vm0, %v2036_v57  ;;  %1765 = vst.msk [vmem:[%s3219_s3 + $0x144] sm:$0xf] %vm1683_vm0, %v2086_v58  ;;  %v913_v61 = vadd.f32 %v2709_v53, %v912_v59  ;;  %v1113_v62 = vadd.f32 %v2709_v53, %v1112_v60  ;;  %v914_v63 = vpop.f32.mrb[65].mxu0  ;;  %v1114_v0 = vpop.f32.mrb[65].mxu1 }
 0x196   :  { %v915_v1 = vpop.f32.mrb[66].mxu0  ;;  %v1115_v2 = vpop.f32.mrb[66].mxu1 }
 0x197   :  { %v1215_v3 = vmax.f32 %v913_v61, 0.0  ;;  %v1265_v4 = vmax.f32 %v1113_v62, 0.0  ;;  %v916_v5 = vadd.f32 %v2709_v53, %v915_v1  ;;  %v1116_v6 = vadd.f32 %v2709_v53, %v1115_v2  ;;  %v917_v7 = vpop.f32.mrb[67].mxu0  ;;  %v1117_v8 = vpop.f32.mrb[67].mxu1 }
 0x199   :  { %v2037_v9 = vpack.c.bf16 %v1215_v3, %v1215_v3  ;;  %v2087_v10 = vpack.c.bf16 %v1265_v4, %v1265_v4  ;;  %v1216_v11 = vmax.f32 %v916_v5, 0.0  ;;  %v1266_v12 = vmax.f32 %v1116_v6, 0.0 }
 0x19b   :  { %1716 = vst.msk [vmem:[%s3219_s3 + $0x80] sm:$0xf] %vm1683_vm0, %v2037_v9  ;;  %1766 = vst.msk [vmem:[%s3219_s3 + $0x148] sm:$0xf] %vm1683_vm0, %v2087_v10  ;;  %v2038_v13 = vpack.c.bf16 %v1216_v11, %v1216_v11  ;;  %v2088_v14 = vpack.c.bf16 %v1266_v12, %v1266_v12 }
 0x19c   :  { %v920_v15 = vpop.f32.mrb[68].mxu0  ;;  %v1120_v16 = vpop.f32.mrb[68].mxu1 }
 0x19d   :  { %1717 = vst.msk [vmem:[%s3219_s3 + $0x84] sm:$0xf] %vm1683_vm0, %v2038_v13  ;;  %1767 = vst.msk [vmem:[%s3219_s3 + $0x14c] sm:$0xf] %vm1683_vm0, %v2088_v14  ;;  %v921_v17 = vadd.f32 %v2709_v53, %v920_v15  ;;  %v1121_v18 = vadd.f32 %v2709_v53, %v1120_v16  ;;  %v922_v19 = vpop.f32.mrb[69].mxu0  ;;  %v1122_v20 = vpop.f32.mrb[69].mxu1 }
 0x19e   :  { %v923_v21 = vpop.f32.mrb[70].mxu0  ;;  %v1123_v22 = vpop.f32.mrb[70].mxu1 }
 0x19f   :  { %v1217_v23 = vmax.f32 %v921_v17, 0.0  ;;  %v1267_v24 = vmax.f32 %v1121_v18, 0.0  ;;  %v924_v25 = vadd.f32 %v2709_v53, %v923_v21  ;;  %v1124_v26 = vadd.f32 %v2709_v53, %v1123_v22  ;;  %v925_v27 = vpop.f32.mrb[71].mxu0  ;;  %v1125_v28 = vpop.f32.mrb[71].mxu1 }
 0x1a1   :  { %v2039_v29 = vpack.c.bf16 %v1217_v23, %v1217_v23  ;;  %v2089_v30 = vpack.c.bf16 %v1267_v24, %v1267_v24  ;;  %v1218_v31 = vmax.f32 %v924_v25, 0.0  ;;  %v1268_v32 = vmax.f32 %v1124_v26, 0.0 }
 0x1a3   :  { %1718 = vst.msk [vmem:[%s3219_s3 + $0x88] sm:$0xf] %vm1683_vm0, %v2039_v29  ;;  %1768 = vst.msk [vmem:[%s3219_s3 + $0x150] sm:$0xf] %vm1683_vm0, %v2089_v30  ;;  %v2040_v33 = vpack.c.bf16 %v1218_v31, %v1218_v31  ;;  %v2090_v34 = vpack.c.bf16 %v1268_v32, %v1268_v32 }
 0x1a4   :  { %v928_v35 = vpop.f32.mrb[72].mxu0  ;;  %v1128_v36 = vpop.f32.mrb[72].mxu1 }
 0x1a5   :  { %1719 = vst.msk [vmem:[%s3219_s3 + $0x8c] sm:$0xf] %vm1683_vm0, %v2040_v33  ;;  %1769 = vst.msk [vmem:[%s3219_s3 + $0x154] sm:$0xf] %vm1683_vm0, %v2090_v34  ;;  %v929_v37 = vadd.f32 %v2709_v53, %v928_v35  ;;  %v1129_v38 = vadd.f32 %v2709_v53, %v1128_v36  ;;  %v930_v39 = vpop.f32.mrb[73].mxu0  ;;  %v1130_v40 = vpop.f32.mrb[73].mxu1 }
 0x1a6   :  { %v931_v41 = vpop.f32.mrb[74].mxu0  ;;  %v1131_v42 = vpop.f32.mrb[74].mxu1 }
 0x1a7   :  { %v1219_v43 = vmax.f32 %v929_v37, 0.0  ;;  %v1269_v44 = vmax.f32 %v1129_v38, 0.0  ;;  %v932_v45 = vadd.f32 %v2709_v53, %v931_v41  ;;  %v1132_v46 = vadd.f32 %v2709_v53, %v1131_v42  ;;  %v933_v47 = vpop.f32.mrb[75].mxu0  ;;  %v1133_v48 = vpop.f32.mrb[75].mxu1  ;;  %v3136_v42 = vld [vmem:[%s3218_s2] ss:$0 sm:$0xff] }
 0x1a9   :  { %v2041_v49 = vpack.c.bf16 %v1219_v43, %v1219_v43  ;;  %v2091_v50 = vpack.c.bf16 %v1269_v44, %v1269_v44  ;;  %v1220_v51 = vmax.f32 %v932_v45, 0.0  ;;  %v1270_v52 = vmax.f32 %v1132_v46, 0.0 }
 0x1ab   :  { %1720 = vst.msk [vmem:[%s3219_s3 + $0x90] sm:$0xf] %vm1683_vm0, %v2041_v49  ;;  %1770 = vst.msk [vmem:[%s3219_s3 + $0x158] sm:$0xf] %vm1683_vm0, %v2091_v50  ;;  %v2042_v54 = vpack.c.bf16 %v1220_v51, %v1220_v51  ;;  %v2092_v55 = vpack.c.bf16 %v1270_v52, %v1270_v52 }
 0x1ac   :  { %v936_v56 = vpop.f32.mrb[76].mxu0  ;;  %v1136_v57 = vpop.f32.mrb[76].mxu1 }
 0x1ad   :  { %1721 = vst.msk [vmem:[%s3219_s3 + $0x94] sm:$0xf] %vm1683_vm0, %v2042_v54  ;;  %1771 = vst.msk [vmem:[%s3219_s3 + $0x15c] sm:$0xf] %vm1683_vm0, %v2092_v55  ;;  %v937_v58 = vadd.f32 %v2709_v53, %v936_v56  ;;  %v1137_v59 = vadd.f32 %v2709_v53, %v1136_v57  ;;  %v938_v60 = vpop.f32.mrb[77].mxu0  ;;  %v1138_v61 = vpop.f32.mrb[77].mxu1 }
 0x1ae   :  { %v939_v62 = vpop.f32.mrb[78].mxu0  ;;  %v1139_v63 = vpop.f32.mrb[78].mxu1 }
 0x1af   :  { %v1221_v0 = vmax.f32 %v937_v58, 0.0  ;;  %v1271_v1 = vmax.f32 %v1137_v59, 0.0  ;;  %v940_v2 = vadd.f32 %v2709_v53, %v939_v62  ;;  %v1140_v3 = vadd.f32 %v2709_v53, %v1139_v63  ;;  %v941_v4 = vpop.f32.mrb[79].mxu0  ;;  %v1141_v5 = vpop.f32.mrb[79].mxu1 }
 0x1b1   :  { %v2043_v6 = vpack.c.bf16 %v1221_v0, %v1221_v0  ;;  %v2093_v7 = vpack.c.bf16 %v1271_v1, %v1271_v1  ;;  %v1222_v8 = vmax.f32 %v940_v2, 0.0  ;;  %v1272_v9 = vmax.f32 %v1140_v3, 0.0 }
 0x1b3   :  { %1722 = vst.msk [vmem:[%s3219_s3 + $0x98] sm:$0xf] %vm1683_vm0, %v2043_v6  ;;  %1772 = vst.msk [vmem:[%s3219_s3 + $0x160] sm:$0xf] %vm1683_vm0, %v2093_v7  ;;  %v2044_v10 = vpack.c.bf16 %v1222_v8, %v1222_v8  ;;  %v2094_v11 = vpack.c.bf16 %v1272_v9, %v1272_v9 }
 0x1b4   :  { %v944_v12 = vpop.f32.mrb[80].mxu0  ;;  %v1144_v13 = vpop.f32.mrb[80].mxu1 }
 0x1b5   :  { %1723 = vst.msk [vmem:[%s3219_s3 + $0x9c] sm:$0xf] %vm1683_vm0, %v2044_v10  ;;  %1773 = vst.msk [vmem:[%s3219_s3 + $0x164] sm:$0xf] %vm1683_vm0, %v2094_v11  ;;  %v945_v14 = vadd.f32 %v2709_v53, %v944_v12  ;;  %v1145_v15 = vadd.f32 %v2709_v53, %v1144_v13  ;;  %v946_v16 = vpop.f32.mrb[81].mxu0  ;;  %v1146_v17 = vpop.f32.mrb[81].mxu1 }
 0x1b6   :  { %v947_v18 = vpop.f32.mrb[82].mxu0  ;;  %v1147_v19 = vpop.f32.mrb[82].mxu1 }
 0x1b7   :  { %v1223_v20 = vmax.f32 %v945_v14, 0.0  ;;  %v1273_v21 = vmax.f32 %v1145_v15, 0.0  ;;  %v948_v22 = vadd.f32 %v2709_v53, %v947_v18  ;;  %v1148_v23 = vadd.f32 %v2709_v53, %v1147_v19  ;;  %v949_v24 = vpop.f32.mrb[83].mxu0  ;;  %v1149_v25 = vpop.f32.mrb[83].mxu1 }
 0x1b9   :  { %v2045_v26 = vpack.c.bf16 %v1223_v20, %v1223_v20  ;;  %v2095_v27 = vpack.c.bf16 %v1273_v21, %v1273_v21  ;;  %v1224_v28 = vmax.f32 %v948_v22, 0.0  ;;  %v1274_v29 = vmax.f32 %v1148_v23, 0.0 }
 0x1bb   :  { %1724 = vst.msk [vmem:[%s3219_s3 + $0xa0] sm:$0xf] %vm1683_vm0, %v2045_v26  ;;  %1774 = vst.msk [vmem:[%s3219_s3 + $0x168] sm:$0xf] %vm1683_vm0, %v2095_v27  ;;  %v2046_v30 = vpack.c.bf16 %v1224_v28, %v1224_v28  ;;  %v2096_v31 = vpack.c.bf16 %v1274_v29, %v1274_v29 }
 0x1bc   :  { %v952_v32 = vpop.f32.mrb[84].mxu0  ;;  %v1152_v33 = vpop.f32.mrb[84].mxu1 }
 0x1bd   :  { %1725 = vst.msk [vmem:[%s3219_s3 + $0xa4] sm:$0xf] %vm1683_vm0, %v2046_v30  ;;  %1775 = vst.msk [vmem:[%s3219_s3 + $0x16c] sm:$0xf] %vm1683_vm0, %v2096_v31  ;;  %v953_v34 = vadd.f32 %v2709_v53, %v952_v32  ;;  %v1153_v35 = vadd.f32 %v2709_v53, %v1152_v33  ;;  %v954_v36 = vpop.f32.mrb[85].mxu0  ;;  %v1154_v37 = vpop.f32.mrb[85].mxu1 }
 0x1be   :  { %v955_v38 = vpop.f32.mrb[86].mxu0  ;;  %v1155_v39 = vpop.f32.mrb[86].mxu1 }
 0x1bf   :  { %v1225_v40 = vmax.f32 %v953_v34, 0.0  ;;  %v1275_v41 = vmax.f32 %v1153_v35, 0.0  ;;  %v956_v43 = vadd.f32 %v3136_v42, %v955_v38  ;;  %v1156_v44 = vadd.f32 %v3136_v42, %v1155_v39  ;;  %v957_v45 = vpop.f32.mrb[87].mxu0  ;;  %v1157_v46 = vpop.f32.mrb[87].mxu1 }
 0x1c1   :  { %v2047_v47 = vpack.c.bf16 %v1225_v40, %v1225_v40  ;;  %v2097_v48 = vpack.c.bf16 %v1275_v41, %v1275_v41  ;;  %v1226_v53 = vmax.f32 %v956_v43, 0.0  ;;  %v1276_v49 = vmax.f32 %v1156_v44, 0.0 }
 0x1c3   :  { %1726 = vst.msk [vmem:[%s3219_s3 + $0xa8] sm:$0xf] %vm1683_vm0, %v2047_v47  ;;  %1776 = vst.msk [vmem:[%s3219_s3 + $0x170] sm:$0xf] %vm1683_vm0, %v2097_v48  ;;  %v2048_v50 = vpack.c.bf16 %v1226_v53, %v1226_v53  ;;  %v2098_v51 = vpack.c.bf16 %v1276_v49, %v1276_v49 }
 0x1c4   :  { %v960_v52 = vpop.f32.mrb[88].mxu0  ;;  %v1160_v54 = vpop.f32.mrb[88].mxu1 }
 0x1c5   :  { %1727 = vst.msk [vmem:[%s3219_s3 + $0xac] sm:$0xf] %vm1683_vm0, %v2048_v50  ;;  %1777 = vst.msk [vmem:[%s3219_s3 + $0x174] sm:$0xf] %vm1683_vm0, %v2098_v51  ;;  %v961_v55 = vadd.f32 %v3136_v42, %v960_v52  ;;  %v1161_v56 = vadd.f32 %v3136_v42, %v1160_v54  ;;  %v962_v57 = vpop.f32.mrb[89].mxu0  ;;  %v1162_v58 = vpop.f32.mrb[89].mxu1 }
 0x1c6   :  { %v963_v59 = vpop.f32.mrb[90].mxu0  ;;  %v1163_v60 = vpop.f32.mrb[90].mxu1 }
 0x1c7   :  { %v1227_v61 = vmax.f32 %v961_v55, 0.0  ;;  %v1277_v62 = vmax.f32 %v1161_v56, 0.0  ;;  %v964_v63 = vadd.f32 %v3136_v42, %v963_v59  ;;  %v1164_v0 = vadd.f32 %v3136_v42, %v1163_v60  ;;  %v965_v1 = vpop.f32.mrb[91].mxu0  ;;  %v1165_v2 = vpop.f32.mrb[91].mxu1 }
 0x1c9   :  { %v2049_v3 = vpack.c.bf16 %v1227_v61, %v1227_v61  ;;  %v2099_v4 = vpack.c.bf16 %v1277_v62, %v1277_v62  ;;  %v1228_v5 = vmax.f32 %v964_v63, 0.0  ;;  %v1278_v6 = vmax.f32 %v1164_v0, 0.0 }
 0x1cb   :  { %1728 = vst.msk [vmem:[%s3219_s3 + $0xb0] sm:$0xf] %vm1683_vm0, %v2049_v3  ;;  %1778 = vst.msk [vmem:[%s3219_s3 + $0x178] sm:$0xf] %vm1683_vm0, %v2099_v4  ;;  %v2050_v7 = vpack.c.bf16 %v1228_v5, %v1228_v5  ;;  %v2100_v8 = vpack.c.bf16 %v1278_v6, %v1278_v6 }
 0x1cc   :  { %v968_v9 = vpop.f32.mrb[92].mxu0  ;;  %v1168_v10 = vpop.f32.mrb[92].mxu1 }
 0x1cd   :  { %1729 = vst.msk [vmem:[%s3219_s3 + $0xb4] sm:$0xf] %vm1683_vm0, %v2050_v7  ;;  %1779 = vst.msk [vmem:[%s3219_s3 + $0x17c] sm:$0xf] %vm1683_vm0, %v2100_v8  ;;  %v969_v11 = vadd.f32 %v3136_v42, %v968_v9  ;;  %v1169_v12 = vadd.f32 %v3136_v42, %v1168_v10  ;;  %v970_v13 = vpop.f32.mrb[93].mxu0  ;;  %v1170_v14 = vpop.f32.mrb[93].mxu1 }
 0x1ce   :  { %v971_v15 = vpop.f32.mrb[94].mxu0  ;;  %v1171_v16 = vpop.f32.mrb[94].mxu1 }
 0x1cf   :  { %v1229_v17 = vmax.f32 %v969_v11, 0.0  ;;  %v1279_v18 = vmax.f32 %v1169_v12, 0.0  ;;  %v972_v19 = vadd.f32 %v3136_v42, %v971_v15  ;;  %v1172_v20 = vadd.f32 %v3136_v42, %v1171_v16  ;;  %v973_v21 = vpop.f32.mrb[95].mxu0  ;;  %v1173_v22 = vpop.f32.mrb[95].mxu1 }
 0x1d1   :  { %v2051_v23 = vpack.c.bf16 %v1229_v17, %v1229_v17  ;;  %v2101_v24 = vpack.c.bf16 %v1279_v18, %v1279_v18  ;;  %v1230_v25 = vmax.f32 %v972_v19, 0.0  ;;  %v1280_v26 = vmax.f32 %v1172_v20, 0.0 }
 0x1d3   :  { %1730 = vst.msk [vmem:[%s3219_s3 + $0xb8] sm:$0xf] %vm1683_vm0, %v2051_v23  ;;  %1780 = vst.msk [vmem:[%s3219_s3 + $0x180] sm:$0xf] %vm1683_vm0, %v2101_v24  ;;  %v2052_v27 = vpack.c.bf16 %v1230_v25, %v1230_v25  ;;  %v2102_v28 = vpack.c.bf16 %v1280_v26, %v1280_v26 }
 0x1d4   :  { %v976_v29 = vpop.f32.mrb[96].mxu0  ;;  %v1176_v30 = vpop.f32.mrb[96].mxu1 }
 0x1d5   :  { %1731 = vst.msk [vmem:[%s3219_s3 + $0xbc] sm:$0xf] %vm1683_vm0, %v2052_v27  ;;  %1781 = vst.msk [vmem:[%s3219_s3 + $0x184] sm:$0xf] %vm1683_vm0, %v2102_v28  ;;  %v977_v31 = vadd.f32 %v3136_v42, %v976_v29  ;;  %v1177_v32 = vadd.f32 %v3136_v42, %v1176_v30  ;;  %v978_v33 = vpop.f32.mrb[97].mxu0  ;;  %v1178_v34 = vpop.f32.mrb[97].mxu1 }
 0x1d6   :  { %v979_v35 = vpop.f32.mrb[98].mxu0  ;;  %v1179_v36 = vpop.f32.mrb[98].mxu1 }
 0x1d7   :  { %v1231_v37 = vmax.f32 %v977_v31, 0.0  ;;  %v1281_v38 = vmax.f32 %v1177_v32, 0.0  ;;  %v980_v39 = vadd.f32 %v3136_v42, %v979_v35  ;;  %v1180_v40 = vadd.f32 %v3136_v42, %v1179_v36  ;;  %v981_v41 = vpop.f32.mrb[99].mxu0  ;;  %v1181_v43 = vpop.f32.mrb[99].mxu1 }
 0x1d9   :  { %v2053_v44 = vpack.c.bf16 %v1231_v37, %v1231_v37  ;;  %v2103_v45 = vpack.c.bf16 %v1281_v38, %v1281_v38  ;;  %v1232_v46 = vmax.f32 %v980_v39, 0.0  ;;  %v1282_v47 = vmax.f32 %v1180_v40, 0.0 }
 0x1db   :  { %1732 = vst.msk [vmem:[%s3219_s3 + $0xc0] sm:$0xf] %vm1683_vm0, %v2053_v44  ;;  %1782 = vst.msk [vmem:[%s3219_s3 + $0x188] sm:$0xf] %vm1683_vm0, %v2103_v45  ;;  %v2054_v48 = vpack.c.bf16 %v1232_v46, %v1232_v46  ;;  %v2104_v53 = vpack.c.bf16 %v1282_v47, %v1282_v47 }
 0x1dd   :  { %1733 = vst.msk [vmem:[%s3219_s3 + $0xc4] sm:$0xf] %vm1683_vm0, %v2054_v48  ;;  %1783 = vst.msk [vmem:[%s3219_s3 + $0x18c] sm:$0xf] %vm1683_vm0, %v2104_v53 }

// kernel: dqn_forward.4
= control target key start
LH: loop header
LB: loop body
LE: loop exit
PB: predicated region body
PF: predicated region fallthrough
CT: control target
= control target key end

     0   :  { %vm504_vm0 = vcmask 257024   ;;  %s998_s1 = inlined_call_operand.vmem [shape: bf16[256,32], index: 1, kind: input, shape index: {}]   ;;  %s999_s0 = inlined_call_operand.vmem [shape: bf16[168,256], index: 0, kind: input, shape index: {}]   ;;  %s1000_s2 = inlined_call_operand.vmem [shape: f32[1,32], index: 2, kind: input, shape index: {}]   ;;  %s1001_s3 = inlined_call_operand.vmem [shape: bf16[168,32], index: 3, kind: output, shape index: {}]  }
   0x1   :  { %v709_v0 = vld [vmem:[%s998_s1 + $0x40] sm:$0xff]   ;;  %v711_v2 = vld [vmem:[%s998_s1 + $0x48] sm:$0xff]   ;;  %v713_v4 = vld [vmem:[%s998_s1 + $0x50] sm:$0xff]  }
   0x2   :  { %v710_v1 = vld [vmem:[%s998_s1] sm:$0xff]   ;;  %611 = vmatprep.subr.bf16.mxu0 %v709_v0  ;;  %693 = vmatprep.subr.bf16.mxu1 %v709_v0  ;;  %v712_v3 = vld [vmem:[%s998_s1 + $0x8] sm:$0xff]   ;;  %v714_v5 = vld [vmem:[%s998_s1 + $0x10] sm:$0xff]  }
   0x3   :  { %612 = vmatpush3.bf16.msra.mxu0 %v710_v1  ;;  %701 = vmatpush3.bf16.msra.mxu1 %v710_v1  ;;  %v715_v6 = vld [vmem:[%s998_s1 + $0x58] sm:$0xff]   ;;  %v717_v8 = vld [vmem:[%s998_s1 + $0x60] sm:$0xff]   ;;  %v719_v10 = vld [vmem:[%s998_s1 + $0x68] sm:$0xff]  }
   0x4   :  { %613 = vmatprep.subr.bf16.mxu0 %v711_v2  ;;  %694 = vmatprep.subr.bf16.mxu1 %v711_v2  ;;  %v716_v7 = vld [vmem:[%s998_s1 + $0x18] sm:$0xff]   ;;  %v718_v9 = vld [vmem:[%s998_s1 + $0x20] sm:$0xff]   ;;  %v720_v13 = vld [vmem:[%s998_s1 + $0x28] sm:$0xff]  }
   0x5   :  { %v727_v11 = vld [vmem:[%s999_s0 + $0x4] ss:$8 sps:$4 sm:$0xff]   ;;  %v721_v14 = vld [vmem:[%s998_s1 + $0x70] sm:$0xff]   ;;  %v723_v16 = vld [vmem:[%s998_s1 + $0x78] sm:$0xff]  }
   0x6   :  { %v730_v12 = vld [vmem:[%s999_s0 + $0x64] ss:$8 sps:$4 sm:$0xff]   ;;  %310 = vmatprep.mubr.bf16.mxu0 %v727_v11  ;;  %v722_v15 = vld [vmem:[%s998_s1 + $0x30] sm:$0xff]   ;;  %v724_v17 = vld [vmem:[%s998_s1 + $0x38] sm:$0xff]  }
   0x7   :  { %614 = vmatpush3.bf16.msra.mxu0 %v712_v3  ;;  %702 = vmatpush3.bf16.msra.mxu1 %v712_v3  ;;  %v725_v18 = vld [vmem:[%s999_s0] ss:$8 sps:$4 sm:$0xff]   ;;  %v731_v20 = vld [vmem:[%s999_s0 + $0x14] ss:$8 sps:$4 sm:$0xff]   ;;  %v733_v22 = vld [vmem:[%s999_s0 + $0x10] ss:$8 sps:$4 sm:$0xff]  }
   0x8   :  { %615 = vmatprep.subr.bf16.mxu0 %v713_v4  ;;  %695 = vmatprep.subr.bf16.mxu1 %v713_v4  ;;  %v728_v19 = vld [vmem:[%s999_s0 + $0x60] ss:$8 sps:$4 sm:$0xff]   ;;  %v734_v21 = vld [vmem:[%s999_s0 + $0x74] ss:$8 sps:$4 sm:$0xff]   ;;  %v738_v23 = vld [vmem:[%s999_s0 + $0x70] ss:$8 sps:$4 sm:$0xff]  }
   0x9   :  { %358 = vmatprep.mubr.bf16.mxu1 %v730_v12  ;;  %v736_v24 = vld [vmem:[%s999_s0 + $0x24] ss:$8 sps:$4 sm:$0xff]   ;;  %v739_v26 = vld [vmem:[%s999_s0 + $0x20] ss:$8 sps:$4 sm:$0xff]   ;;  %v742_v28 = vld [vmem:[%s999_s0 + $0x34] ss:$8 sps:$4 sm:$0xff]  }
   0xa   :  { %v740_v25 = vld [vmem:[%s999_s0 + $0x84] ss:$8 sps:$4 sm:$0xff]   ;;  %v744_v27 = vld [vmem:[%s999_s0 + $0x80] ss:$8 sps:$4 sm:$0xff]   ;;  %v746_v29 = vld [vmem:[%s999_s0 + $0x94] ss:$8 sps:$4 sm:$0xff]  }
   0xb   :  { %616 = vmatpush3.bf16.msra.mxu0 %v714_v5  ;;  %703 = vmatpush3.bf16.msra.mxu1 %v714_v5  ;;  %v35_v30 = vld [vmem:[%s999_s0 + $0xa0] sm:$0xff]  ;;  %v745_v31 = vld [vmem:[%s999_s0 + $0x30] ss:$8 sps:$4 sm:$0xff]   ;;  %v753_v37 = vld [vmem:[%s999_s0 + $0x54] ss:$8 sps:$4 sm:$0xff]  }
   0xc   :  { %617 = vmatprep.subr.bf16.mxu0 %v715_v6  ;;  %696 = vmatprep.subr.bf16.mxu1 %v715_v6  ;;  %v750_v32 = vld [vmem:[%s999_s0 + $0x90] ss:$8 sps:$4 sm:$0xff]   ;;  %v748_v33 = vld [vmem:[%s999_s0 + $0x44] ss:$8 sps:$4 sm:$0xff]   ;;  %v552_v34 = vcombine.high %v35_v30, %v35_v30  ;;  %v751_v35 = vld [vmem:[%s999_s0 + $0x40] ss:$8 sps:$4 sm:$0xff]   ;;  %v551_v36 = vcombine.low %v35_v30, %v35_v30 }
   0xd   :  { %v756_v38 = vld [vmem:[%s999_s0 + $0x50] ss:$8 sps:$4 sm:$0xff]   ;;  %v891_v41 = vld [vmem:[%s1000_s2] ss:$0 sm:$0xff] }
   0xf   :  { %618 = vmatpush3.bf16.msra.mxu0 %v716_v7  ;;  %704 = vmatpush3.bf16.msra.mxu1 %v716_v7 }
  0x10   :  { %619 = vmatprep.subr.bf16.mxu0 %v717_v8  ;;  %697 = vmatprep.subr.bf16.mxu1 %v717_v8 }
  0x13   :  { %620 = vmatpush3.bf16.msra.mxu0 %v718_v9  ;;  %705 = vmatpush3.bf16.msra.mxu1 %v718_v9 }
  0x14   :  { %621 = vmatprep.subr.bf16.mxu0 %v719_v10  ;;  %698 = vmatprep.subr.bf16.mxu1 %v719_v10 }
  0x17   :  { %622 = vmatpush3.bf16.msra.mxu0 %v720_v13  ;;  %706 = vmatpush3.bf16.msra.mxu1 %v720_v13 }
  0x18   :  { %623 = vmatprep.subr.bf16.mxu0 %v721_v14  ;;  %699 = vmatprep.subr.bf16.mxu1 %v721_v14 }
  0x1b   :  { %624 = vmatpush3.bf16.msra.mxu0 %v722_v15  ;;  %707 = vmatpush3.bf16.msra.mxu1 %v722_v15 }
  0x1c   :  { %625 = vmatprep.subr.bf16.mxu0 %v723_v16  ;;  %700 = vmatprep.subr.bf16.mxu1 %v723_v16 }
  0x1f   :  { %626 = vmatpush3.bf16.msra.mxu0 %v724_v17  ;;  %708 = vmatpush3.bf16.msra.mxu1 %v724_v17 }
  0x22   :  { %311 = vmatmul.mubr.bf16.vlgmr.msra.gmra.mrb[0].mxu0 %v725_v18  ;;  %359 = vmatmul.mubr.bf16.vlgmr.msra.gmra.mrb[0].mxu1 %v728_v19 }
  0x23   :  { %318 = vmatprep.mubr.bf16.mxu0 %v731_v20  ;;  %366 = vmatprep.mubr.bf16.mxu1 %v734_v21 }
  0x2a   :  { %319 = vmatmul.mubr.bf16.gmra.mrb[4].mxu0 %v733_v22  ;;  %367 = vmatmul.mubr.bf16.gmra.mrb[4].mxu1 %v738_v23 }
  0x2b   :  { %326 = vmatprep.mubr.bf16.mxu0 %v736_v24  ;;  %374 = vmatprep.mubr.bf16.mxu1 %v740_v25 }
  0x32   :  { %327 = vmatmul.mubr.bf16.gmra.mrb[8].mxu0 %v739_v26  ;;  %375 = vmatmul.mubr.bf16.gmra.mrb[8].mxu1 %v744_v27 }
  0x33   :  { %334 = vmatprep.mubr.bf16.mxu0 %v742_v28  ;;  %382 = vmatprep.mubr.bf16.mxu1 %v746_v29 }
  0x3a   :  { %335 = vmatmul.mubr.bf16.gmra.mrb[12].mxu0 %v745_v31  ;;  %383 = vmatmul.mubr.bf16.gmra.mrb[12].mxu1 %v750_v32 }
  0x3b   :  { %342 = vmatprep.mubr.bf16.mxu0 %v748_v33  ;;  %390 = vmatprep.mubr.bf16.mxu1 %v552_v34 }
  0x42   :  { %343 = vmatmul.mubr.bf16.gmra.mrb[16].mxu0 %v751_v35  ;;  %391 = vmatmul.mubr.bf16.gmra.mrb[16].mxu1 %v551_v36 }
  0x43   :  { %350 = vmatprep.mubr.bf16.mxu0 %v753_v37 }
  0x4a   :  { %351 = vmatmul.mubr.bf16.gmra.mrb[20].mxu0 %v756_v38 }
  0xf5   :  { %v627_v39 = vpop.f32.mrb[0].mxu0  ;;  %v663_v40 = vpop.f32.mrb[0].mxu1 }
  0xf6   :  { %v628_v42 = vpop.f32.mrb[1].mxu0  ;;  %v664_v43 = vpop.f32.mrb[1].mxu1 }
  0xf7   :  { %v629_v44 = vadd.f32 %v628_v42, %v627_v39  ;;  %v630_v45 = vpop.f32.mrb[2].mxu0  ;;  %v665_v46 = vadd.f32 %v664_v43, %v663_v40  ;;  %v666_v47 = vpop.f32.mrb[2].mxu1 }
  0xf8   :  { %v631_v48 = vpop.f32.mrb[3].mxu0  ;;  %v667_v49 = vpop.f32.mrb[3].mxu1 }
  0xf9   :  { %v313_v50 = vadd.f32 %v629_v44, %v891_v41  ;;  %v632_v51 = vadd.f32 %v631_v48, %v630_v45  ;;  %v361_v52 = vadd.f32 %v665_v46, %v891_v41  ;;  %v668_v53 = vadd.f32 %v667_v49, %v666_v47 }
  0xfb   :  { %v398_v54 = vmax.f32 %v313_v50, 0.0  ;;  %v316_v55 = vadd.f32 %v632_v51, %v891_v41  ;;  %v410_v56 = vmax.f32 %v361_v52, 0.0  ;;  %v364_v57 = vadd.f32 %v668_v53, %v891_v41 }
  0xfd   :  { %v590_v58 = vpack.c.bf16 %v398_v54, %v398_v54  ;;  %v399_v59 = vmax.f32 %v316_v55, 0.0  ;;  %v633_v60 = vpop.f32.mrb[4].mxu0  ;;  %v602_v61 = vpack.c.bf16 %v410_v56, %v410_v56  ;;  %v411_v62 = vmax.f32 %v364_v57, 0.0  ;;  %v669_v63 = vpop.f32.mrb[4].mxu1 }
  0xfe   :  { %v634_v0 = vpop.f32.mrb[5].mxu0  ;;  %v670_v1 = vpop.f32.mrb[5].mxu1 }
  0xff   :  { %505 = vst.msk [vmem:[%s1001_s3] sm:$0xf] %vm504_vm0, %v590_v58  ;;  %v591_v2 = vpack.c.bf16 %v399_v59, %v399_v59  ;;  %517 = vst.msk [vmem:[%s1001_s3 + $0x30] sm:$0xf] %vm504_vm0, %v602_v61  ;;  %v635_v3 = vadd.f32 %v634_v0, %v633_v60  ;;  %v636_v4 = vpop.f32.mrb[6].mxu0  ;;  %v603_v5 = vpack.c.bf16 %v411_v62, %v411_v62  ;;  %v672_v7 = vpop.f32.mrb[6].mxu1 }
 0x100   :  { %v671_v6 = vadd.f32 %v670_v1, %v669_v63  ;;  %v637_v8 = vpop.f32.mrb[7].mxu0  ;;  %v673_v9 = vpop.f32.mrb[7].mxu1 }
 0x101   :  { %506 = vst.msk [vmem:[%s1001_s3 + $0x4] sm:$0xf] %vm504_vm0, %v591_v2  ;;  %v321_v10 = vadd.f32 %v635_v3, %v891_v41  ;;  %518 = vst.msk [vmem:[%s1001_s3 + $0x34] sm:$0xf] %vm504_vm0, %v603_v5  ;;  %v638_v11 = vadd.f32 %v637_v8, %v636_v4  ;;  %v674_v13 = vadd.f32 %v673_v9, %v672_v7 }
 0x102   :  { %v369_v12 = vadd.f32 %v671_v6, %v891_v41 }
 0x103   :  { %v400_v14 = vmax.f32 %v321_v10, 0.0  ;;  %v324_v15 = vadd.f32 %v638_v11, %v891_v41  ;;  %v372_v17 = vadd.f32 %v674_v13, %v891_v41 }
 0x104   :  { %v412_v16 = vmax.f32 %v369_v12, 0.0 }
 0x105   :  { %v592_v18 = vpack.c.bf16 %v400_v14, %v400_v14  ;;  %v401_v19 = vmax.f32 %v324_v15, 0.0  ;;  %v639_v20 = vpop.f32.mrb[8].mxu0  ;;  %v413_v22 = vmax.f32 %v372_v17, 0.0  ;;  %v675_v23 = vpop.f32.mrb[8].mxu1 }
 0x106   :  { %v604_v21 = vpack.c.bf16 %v412_v16, %v412_v16  ;;  %v640_v24 = vpop.f32.mrb[9].mxu0  ;;  %v676_v25 = vpop.f32.mrb[9].mxu1 }
 0x107   :  { %507 = vst.msk [vmem:[%s1001_s3 + $0x8] sm:$0xf] %vm504_vm0, %v592_v18  ;;  %v593_v26 = vpack.c.bf16 %v401_v19, %v401_v19  ;;  %v641_v27 = vadd.f32 %v640_v24, %v639_v20  ;;  %v642_v28 = vpop.f32.mrb[10].mxu0  ;;  %v605_v29 = vpack.c.bf16 %v413_v22, %v413_v22  ;;  %v677_v30 = vadd.f32 %v676_v25, %v675_v23  ;;  %v678_v31 = vpop.f32.mrb[10].mxu1 }
 0x108   :  { %519 = vst.msk [vmem:[%s1001_s3 + $0x38] sm:$0xf] %vm504_vm0, %v604_v21  ;;  %v643_v32 = vpop.f32.mrb[11].mxu0  ;;  %v679_v33 = vpop.f32.mrb[11].mxu1 }
 0x109   :  { %508 = vst.msk [vmem:[%s1001_s3 + $0xc] sm:$0xf] %vm504_vm0, %v593_v26  ;;  %v329_v34 = vadd.f32 %v641_v27, %v891_v41  ;;  %520 = vst.msk [vmem:[%s1001_s3 + $0x3c] sm:$0xf] %vm504_vm0, %v605_v29  ;;  %v644_v35 = vadd.f32 %v643_v32, %v642_v28  ;;  %v377_v36 = vadd.f32 %v677_v30, %v891_v41 }
 0x10a   :  { %v680_v37 = vadd.f32 %v679_v33, %v678_v31 }
 0x10b   :  { %v402_v38 = vmax.f32 %v329_v34, 0.0  ;;  %v332_v39 = vadd.f32 %v644_v35, %v891_v41  ;;  %v414_v40 = vmax.f32 %v377_v36, 0.0 }
 0x10c   :  { %v380_v42 = vadd.f32 %v680_v37, %v891_v41 }
 0x10d   :  { %v594_v43 = vpack.c.bf16 %v402_v38, %v402_v38  ;;  %v403_v44 = vmax.f32 %v332_v39, 0.0  ;;  %v645_v45 = vpop.f32.mrb[12].mxu0  ;;  %v606_v46 = vpack.c.bf16 %v414_v40, %v414_v40  ;;  %v681_v48 = vpop.f32.mrb[12].mxu1 }
 0x10e   :  { %v415_v47 = vmax.f32 %v380_v42, 0.0  ;;  %v646_v49 = vpop.f32.mrb[13].mxu0  ;;  %v682_v50 = vpop.f32.mrb[13].mxu1 }
 0x10f   :  { %509 = vst.msk [vmem:[%s1001_s3 + $0x10] sm:$0xf] %vm504_vm0, %v594_v43  ;;  %v595_v51 = vpack.c.bf16 %v403_v44, %v403_v44  ;;  %521 = vst.msk [vmem:[%s1001_s3 + $0x40] sm:$0xf] %vm504_vm0, %v606_v46  ;;  %v647_v52 = vadd.f32 %v646_v49, %v645_v45  ;;  %v648_v53 = vpop.f32.mrb[14].mxu0  ;;  %v683_v55 = vadd.f32 %v682_v50, %v681_v48  ;;  %v684_v56 = vpop.f32.mrb[14].mxu1 }
 0x110   :  { %v607_v54 = vpack.c.bf16 %v415_v47, %v415_v47  ;;  %v649_v57 = vpop.f32.mrb[15].mxu0  ;;  %v685_v58 = vpop.f32.mrb[15].mxu1 }
 0x111   :  { %510 = vst.msk [vmem:[%s1001_s3 + $0x14] sm:$0xf] %vm504_vm0, %v595_v51  ;;  %v337_v59 = vadd.f32 %v647_v52, %v891_v41  ;;  %v650_v60 = vadd.f32 %v649_v57, %v648_v53  ;;  %v385_v61 = vadd.f32 %v683_v55, %v891_v41  ;;  %v686_v62 = vadd.f32 %v685_v58, %v684_v56 }
 0x112   :  { %522 = vst.msk [vmem:[%s1001_s3 + $0x44] sm:$0xf] %vm504_vm0, %v607_v54 }
 0x113   :  { %v404_v63 = vmax.f32 %v337_v59, 0.0  ;;  %v340_v0 = vadd.f32 %v650_v60, %v891_v41  ;;  %v416_v1 = vmax.f32 %v385_v61, 0.0  ;;  %v388_v2 = vadd.f32 %v686_v62, %v891_v41 }
 0x115   :  { %v596_v3 = vpack.c.bf16 %v404_v63, %v404_v63  ;;  %v405_v4 = vmax.f32 %v340_v0, 0.0  ;;  %v651_v5 = vpop.f32.mrb[16].mxu0  ;;  %v608_v6 = vpack.c.bf16 %v416_v1, %v416_v1  ;;  %v417_v7 = vmax.f32 %v388_v2, 0.0  ;;  %v687_v8 = vpop.f32.mrb[16].mxu1 }
 0x116   :  { %v652_v9 = vpop.f32.mrb[17].mxu0  ;;  %v688_v10 = vpop.f32.mrb[17].mxu1 }
 0x117   :  { %511 = vst.msk [vmem:[%s1001_s3 + $0x18] sm:$0xf] %vm504_vm0, %v596_v3  ;;  %v597_v11 = vpack.c.bf16 %v405_v4, %v405_v4  ;;  %523 = vst.msk [vmem:[%s1001_s3 + $0x48] sm:$0xf] %vm504_vm0, %v608_v6  ;;  %v653_v12 = vadd.f32 %v652_v9, %v651_v5  ;;  %v654_v13 = vpop.f32.mrb[18].mxu0  ;;  %v609_v14 = vpack.c.bf16 %v417_v7, %v417_v7  ;;  %v690_v16 = vpop.f32.mrb[18].mxu1 }
 0x118   :  { %v689_v15 = vadd.f32 %v688_v10, %v687_v8  ;;  %v655_v17 = vpop.f32.mrb[19].mxu0  ;;  %v691_v18 = vpop.f32.mrb[19].mxu1 }
 0x119   :  { %512 = vst.msk [vmem:[%s1001_s3 + $0x1c] sm:$0xf] %vm504_vm0, %v597_v11  ;;  %v345_v19 = vadd.f32 %v653_v12, %v891_v41  ;;  %524 = vst.msk [vmem:[%s1001_s3 + $0x4c] sm:$0xf] %vm504_vm0, %v609_v14  ;;  %v656_v20 = vadd.f32 %v655_v17, %v654_v13 }
 0x11a   :  { %v393_v21 = vadd.f32 %v689_v15, %v891_v41 }
 0x11b   :  { %v406_v22 = vmax.f32 %v345_v19, 0.0  ;;  %v348_v23 = vadd.f32 %v656_v20, %v891_v41 }
 0x11c   :  { %v418_v24 = vmax.f32 %v393_v21, 0.0 }
 0x11d   :  { %v598_v25 = vpack.c.bf16 %v406_v22, %v406_v22  ;;  %v407_v26 = vmax.f32 %v348_v23, 0.0  ;;  %v657_v27 = vpop.f32.mrb[20].mxu0 }
 0x11e   :  { %v610_v28 = vpack.c.bf16 %v418_v24, %v418_v24  ;;  %v658_v29 = vpop.f32.mrb[21].mxu0 }
 0x11f   :  { %513 = vst.msk [vmem:[%s1001_s3 + $0x20] sm:$0xf] %vm504_vm0, %v598_v25  ;;  %v599_v30 = vpack.c.bf16 %v407_v26, %v407_v26  ;;  %v659_v31 = vadd.f32 %v658_v29, %v657_v27  ;;  %v660_v32 = vpop.f32.mrb[22].mxu0 }
 0x120   :  { %525 = vst.msk [vmem:[%s1001_s3 + $0x50] sm:$0xf] %vm504_vm0, %v610_v28  ;;  %v661_v33 = vpop.f32.mrb[23].mxu0 }
 0x121   :  { %514 = vst.msk [vmem:[%s1001_s3 + $0x24] sm:$0xf] %vm504_vm0, %v599_v30  ;;  %v353_v34 = vadd.f32 %v659_v31, %v891_v41  ;;  %v662_v35 = vadd.f32 %v661_v33, %v660_v32 }
 0x123   :  { %v408_v36 = vmax.f32 %v353_v34, 0.0  ;;  %v356_v37 = vadd.f32 %v662_v35, %v891_v41 }
 0x125   :  { %v600_v38 = vpack.c.bf16 %v408_v36, %v408_v36  ;;  %v409_v39 = vmax.f32 %v356_v37, 0.0 }
 0x127   :  { %515 = vst.msk [vmem:[%s1001_s3 + $0x28] sm:$0xf] %vm504_vm0, %v600_v38  ;;  %v601_v40 = vpack.c.bf16 %v409_v39, %v409_v39 }
 0x129   :  { %516 = vst.msk [vmem:[%s1001_s3 + $0x2c] sm:$0xf] %vm504_vm0, %v601_v40 }

// kernel: dqn_forward.5
= control target key start
LH: loop header
LB: loop body
LE: loop exit
PB: predicated region body
PF: predicated region fallthrough
CT: control target
= control target key end

     0   :  { %vm2061_vm0 = vcmask 261120   ;;  %s4790_s1 = inlined_call_operand.vmem [shape: bf16[2592,256], index: 1, kind: input, shape index: {}]   ;;  %s4791_s0 = inlined_call_operand.vmem [shape: bf16[8,2592], index: 0, kind: input, shape index: {}]   ;;  %s4792_s3 = inlined_call_operand.vmem [shape: bf16[256,128], index: 3, kind: input, shape index: {}]   ;;  %s4793_s2 = inlined_call_operand.vmem [shape: f32[1,256], index: 2, kind: input, shape index: {}]   ;;  %s4794_s4 = inlined_call_operand.vmem [shape: f32[1,128], index: 4, kind: input, shape index: {}]   ;;  %s4795_s5 = inlined_call_operand.vmem [shape: f32[8,128], index: 5, kind: output, shape index: {}]  }
   0x1   :  { %v3126_v0 = vld [vmem:[%s4790_s1 + $0x4] ss:$8 sps:$4 sm:$0xff]   ;;  %v3130_v2 = vld [vmem:[%s4790_s1] ss:$8 sps:$4 sm:$0xff]   ;;  %v3132_v4 = vld [vmem:[%s4790_s1 + $0x14] ss:$8 sps:$4 sm:$0xff]  }
   0x2   :  { %v3128_v1 = vld [vmem:[%s4790_s1 + $0x504] ss:$8 sps:$4 sm:$0xff]   ;;  %2065 = vmatprep.subr.bf16.mxu1 %v3126_v0  ;;  %v3131_v3 = vld [vmem:[%s4790_s1 + $0x500] ss:$8 sps:$4 sm:$0xff]   ;;  %v3134_v5 = vld [vmem:[%s4790_s1 + $0x514] ss:$8 sps:$4 sm:$0xff]  }
   0x3   :  { %2270 = vmatprep.subr.bf16.mxu0 %v3128_v1  ;;  %2066 = vmatpush1.bf16.msra.mxu1 %v3130_v2  ;;  %v3136_v6 = vld [vmem:[%s4790_s1 + $0x10] ss:$8 sps:$4 sm:$0xff]   ;;  %v3138_v8 = vld [vmem:[%s4790_s1 + $0x24] ss:$8 sps:$4 sm:$0xff]   ;;  %v3142_v10 = vld [vmem:[%s4790_s1 + $0x20] ss:$8 sps:$4 sm:$0xff]  }
   0x4   :  { %2271 = vmatpush1.bf16.msra.mxu0 %v3131_v3  ;;  %2067 = vmatprep.subr.bf16.mxu1 %v3132_v4  ;;  %v3137_v7 = vld [vmem:[%s4790_s1 + $0x510] ss:$8 sps:$4 sm:$0xff]   ;;  %v3140_v9 = vld [vmem:[%s4790_s1 + $0x524] ss:$8 sps:$4 sm:$0xff]   ;;  %v3143_v11 = vld [vmem:[%s4790_s1 + $0x520] ss:$8 sps:$4 sm:$0xff]  }
   0x5   :  { %2272 = vmatprep.subr.bf16.mxu0 %v3134_v5  ;;  %v3144_v12 = vld [vmem:[%s4790_s1 + $0x34] ss:$8 sps:$4 sm:$0xff]   ;;  %v3148_v14 = vld [vmem:[%s4790_s1 + $0x30] ss:$8 sps:$4 sm:$0xff]   ;;  %v3150_v16 = vld [vmem:[%s4790_s1 + $0x44] ss:$8 sps:$4 sm:$0xff]  }
   0x6   :  { %v3146_v13 = vld [vmem:[%s4790_s1 + $0x534] ss:$8 sps:$4 sm:$0xff]   ;;  %v3149_v15 = vld [vmem:[%s4790_s1 + $0x530] ss:$8 sps:$4 sm:$0xff]   ;;  %v3152_v17 = vld [vmem:[%s4790_s1 + $0x544] ss:$8 sps:$4 sm:$0xff]  }
   0x7   :  { %2068 = vmatpush1.bf16.msra.mxu1 %v3136_v6  ;;  %v3154_v18 = vld [vmem:[%s4790_s1 + $0x40] ss:$8 sps:$4 sm:$0xff]   ;;  %v3156_v20 = vld [vmem:[%s4790_s1 + $0x54] ss:$8 sps:$4 sm:$0xff]   ;;  %v3160_v22 = vld [vmem:[%s4790_s1 + $0x50] ss:$8 sps:$4 sm:$0xff]  }
   0x8   :  { %2273 = vmatpush1.bf16.msra.mxu0 %v3137_v7  ;;  %2069 = vmatprep.subr.bf16.mxu1 %v3138_v8  ;;  %v3155_v19 = vld [vmem:[%s4790_s1 + $0x540] ss:$8 sps:$4 sm:$0xff]   ;;  %v3158_v21 = vld [vmem:[%s4790_s1 + $0x554] ss:$8 sps:$4 sm:$0xff]   ;;  %v3161_v23 = vld [vmem:[%s4790_s1 + $0x550] ss:$8 sps:$4 sm:$0xff]  }
   0x9   :  { %2274 = vmatprep.subr.bf16.mxu0 %v3140_v9  ;;  %v3162_v24 = vld [vmem:[%s4790_s1 + $0x64] ss:$8 sps:$4 sm:$0xff]   ;;  %v3166_v26 = vld [vmem:[%s4790_s1 + $0x60] ss:$8 sps:$4 sm:$0xff]   ;;  %v3168_v28 = vld [vmem:[%s4790_s1 + $0x74] ss:$8 sps:$4 sm:$0xff]  }
   0xa   :  { %v3164_v25 = vld [vmem:[%s4790_s1 + $0x564] ss:$8 sps:$4 sm:$0xff]   ;;  %v3167_v27 = vld [vmem:[%s4790_s1 + $0x560] ss:$8 sps:$4 sm:$0xff]   ;;  %v3170_v29 = vld [vmem:[%s4790_s1 + $0x574] ss:$8 sps:$4 sm:$0xff]  }
   0xb   :  { %2070 = vmatpush1.bf16.msra.mxu1 %v3142_v10  ;;  %v3172_v30 = vld [vmem:[%s4790_s1 + $0x70] ss:$8 sps:$4 sm:$0xff]   ;;  %v3174_v32 = vld [vmem:[%s4790_s1 + $0x84] ss:$8 sps:$4 sm:$0xff]   ;;  %v3178_v34 = vld [vmem:[%s4790_s1 + $0x80] ss:$8 sps:$4 sm:$0xff]  }
   0xc   :  { %2275 = vmatpush1.bf16.msra.mxu0 %v3143_v11  ;;  %2071 = vmatprep.subr.bf16.mxu1 %v3144_v12  ;;  %v3173_v31 = vld [vmem:[%s4790_s1 + $0x570] ss:$8 sps:$4 sm:$0xff]   ;;  %v3176_v33 = vld [vmem:[%s4790_s1 + $0x584] ss:$8 sps:$4 sm:$0xff]   ;;  %v3179_v35 = vld [vmem:[%s4790_s1 + $0x580] ss:$8 sps:$4 sm:$0xff]  }
   0xd   :  { %2276 = vmatprep.subr.bf16.mxu0 %v3146_v13  ;;  %v3180_v36 = vld [vmem:[%s4790_s1 + $0x94] ss:$8 sps:$4 sm:$0xff]   ;;  %v3184_v38 = vld [vmem:[%s4790_s1 + $0x90] ss:$8 sps:$4 sm:$0xff]   ;;  %v3186_v40 = vld [vmem:[%s4790_s1 + $0xa4] ss:$8 sps:$4 sm:$0xff]  }
   0xe   :  { %v3182_v37 = vld [vmem:[%s4790_s1 + $0x594] ss:$8 sps:$4 sm:$0xff]   ;;  %v3185_v39 = vld [vmem:[%s4790_s1 + $0x590] ss:$8 sps:$4 sm:$0xff]   ;;  %v3188_v41 = vld [vmem:[%s4790_s1 + $0x5a4] ss:$8 sps:$4 sm:$0xff]  }
   0xf   :  { %2072 = vmatpush1.bf16.msra.mxu1 %v3148_v14  ;;  %v3190_v42 = vld [vmem:[%s4790_s1 + $0xa0] ss:$8 sps:$4 sm:$0xff]   ;;  %v3192_v44 = vld [vmem:[%s4790_s1 + $0xb4] ss:$8 sps:$4 sm:$0xff]   ;;  %v3196_v47 = vld [vmem:[%s4790_s1 + $0xb0] ss:$8 sps:$4 sm:$0xff]  }
  0x10   :  { %2277 = vmatpush1.bf16.msra.mxu0 %v3149_v15  ;;  %2073 = vmatprep.subr.bf16.mxu1 %v3150_v16  ;;  %v3191_v43 = vld [vmem:[%s4790_s1 + $0x5a0] ss:$8 sps:$4 sm:$0xff]   ;;  %v3194_v45 = vld [vmem:[%s4790_s1 + $0x5b4] ss:$8 sps:$4 sm:$0xff]   ;;  %v3197_v49 = vld [vmem:[%s4790_s1 + $0x5b0] ss:$8 sps:$4 sm:$0xff]  }
  0x11   :  { %2278 = vmatprep.subr.bf16.mxu0 %v3152_v17  ;;  %v21_v46 = vld [vmem:[%s4791_s0] sm:$0xff]  ;;  %v26_v50 = vld [vmem:[%s4791_s0 + $0x28] sm:$0xff]  ;;  %v3204_v56 = vld [vmem:[%s4790_s1 + $0xd4] ss:$8 sps:$4 sm:$0xff]  }
  0x12   :  { %v2701_v48 = vcombine.high %v21_v46, %v21_v46  ;;  %v3198_v51 = vld [vmem:[%s4790_s1 + $0xc4] ss:$8 sps:$4 sm:$0xff]   ;;  %v2711_v53 = vcombine.high %v26_v50, %v26_v50  ;;  %v3202_v54 = vld [vmem:[%s4790_s1 + $0xc0] ss:$8 sps:$4 sm:$0xff]   ;;  %v3206_v57 = vld [vmem:[%s4790_s1 + $0x5d4] ss:$8 sps:$4 sm:$0xff]   ;;  %v2700_v6 = vcombine.low %v21_v46, %v21_v46  ;;  %v2710_v7 = vcombine.low %v26_v50, %v26_v50 }
  0x13   :  { %2074 = vmatpush1.bf16.msra.mxu1 %v3154_v18  ;;  %v3200_v52 = vld [vmem:[%s4790_s1 + $0x5c4] ss:$8 sps:$4 sm:$0xff]   ;;  %v3203_v55 = vld [vmem:[%s4790_s1 + $0x5c0] ss:$8 sps:$4 sm:$0xff]   ;;  %v3208_v58 = vld [vmem:[%s4790_s1 + $0xd0] ss:$8 sps:$4 sm:$0xff]  }
  0x14   :  { %2279 = vmatpush1.bf16.msra.mxu0 %v3155_v19  ;;  %2075 = vmatprep.subr.bf16.mxu1 %v3156_v20  ;;  %v3209_v59 = vld [vmem:[%s4790_s1 + $0x5d0] ss:$8 sps:$4 sm:$0xff]   ;;  %v3210_v60 = vld [vmem:[%s4790_s1 + $0xe4] ss:$8 sps:$4 sm:$0xff]   ;;  %v3214_v62 = vld [vmem:[%s4790_s1 + $0xe0] ss:$8 sps:$4 sm:$0xff]  }
  0x15   :  { %2280 = vmatprep.subr.bf16.mxu0 %v3158_v21  ;;  %2097 = vmatprep.mubr.bf16.mxu1 %v2701_v48  ;;  %v3212_v61 = vld [vmem:[%s4790_s1 + $0x5e4] ss:$8 sps:$4 sm:$0xff]   ;;  %v3215_v63 = vld [vmem:[%s4790_s1 + $0x5e0] ss:$8 sps:$4 sm:$0xff]   ;;  %v3216_v0 = vld [vmem:[%s4790_s1 + $0xf4] ss:$8 sps:$4 sm:$0xff]  }
  0x16   :  { %2302 = vmatprep.mubr.bf16.mxu0 %v2711_v53  ;;  %v3218_v1 = vld [vmem:[%s4790_s1 + $0x5f4] ss:$8 sps:$4 sm:$0xff]   ;;  %v3220_v2 = vld [vmem:[%s4790_s1 + $0xf0] ss:$8 sps:$4 sm:$0xff]   ;;  %v3226_v4 = vld [vmem:[%s4790_s1 + $0x104] ss:$8 sps:$4 sm:$0xff]  }
  0x17   :  { %2076 = vmatpush1.bf16.msra.mxu1 %v3160_v22  ;;  %v3221_v3 = vld [vmem:[%s4790_s1 + $0x5f0] ss:$8 sps:$4 sm:$0xff]   ;;  %v3231_v5 = vld [vmem:[%s4790_s1 + $0x604] ss:$8 sps:$4 sm:$0xff]   ;;  %v3224_v8 = vld [vmem:[%s4790_s1 + $0x100] ss:$8 sps:$4 sm:$0xff]  }
  0x18   :  { %2281 = vmatpush1.bf16.msra.mxu0 %v3161_v23  ;;  %2077 = vmatprep.subr.bf16.mxu1 %v3162_v24  ;;  %v3229_v9 = vld [vmem:[%s4790_s1 + $0x600] ss:$8 sps:$4 sm:$0xff]   ;;  %v3234_v10 = vld [vmem:[%s4790_s1 + $0x114] ss:$8 sps:$4 sm:$0xff]   ;;  %v3232_v12 = vld [vmem:[%s4790_s1 + $0x110] ss:$8 sps:$4 sm:$0xff]  }
  0x19   :  { %2282 = vmatprep.subr.bf16.mxu0 %v3164_v25  ;;  %v3237_v11 = vld [vmem:[%s4790_s1 + $0x614] ss:$8 sps:$4 sm:$0xff]   ;;  %v3235_v13 = vld [vmem:[%s4790_s1 + $0x610] ss:$8 sps:$4 sm:$0xff]   ;;  %v3240_v14 = vld [vmem:[%s4790_s1 + $0x124] ss:$8 sps:$4 sm:$0xff]  }
  0x1a   :  { %v3243_v15 = vld [vmem:[%s4790_s1 + $0x624] ss:$8 sps:$4 sm:$0xff]   ;;  %v3238_v16 = vld [vmem:[%s4790_s1 + $0x120] ss:$8 sps:$4 sm:$0xff]   ;;  %v3246_v18 = vld [vmem:[%s4790_s1 + $0x134] ss:$8 sps:$4 sm:$0xff]  }
  0x1b   :  { %2078 = vmatpush1.bf16.msra.mxu1 %v3166_v26  ;;  %v3241_v17 = vld [vmem:[%s4790_s1 + $0x620] ss:$8 sps:$4 sm:$0xff]   ;;  %v3249_v19 = vld [vmem:[%s4790_s1 + $0x634] ss:$8 sps:$4 sm:$0xff]   ;;  %v3244_v20 = vld [vmem:[%s4790_s1 + $0x130] ss:$8 sps:$4 sm:$0xff]  }
  0x1c   :  { %2283 = vmatpush1.bf16.msra.mxu0 %v3167_v27  ;;  %2079 = vmatprep.subr.bf16.mxu1 %v3168_v28  ;;  %v3247_v21 = vld [vmem:[%s4790_s1 + $0x630] ss:$8 sps:$4 sm:$0xff]   ;;  %v3252_v22 = vld [vmem:[%s4790_s1 + $0x144] ss:$8 sps:$4 sm:$0xff]   ;;  %v3250_v24 = vld [vmem:[%s4790_s1 + $0x140] ss:$8 sps:$4 sm:$0xff]  }
  0x1d   :  { %2284 = vmatprep.subr.bf16.mxu0 %v3170_v29  ;;  %v3255_v23 = vld [vmem:[%s4790_s1 + $0x644] ss:$8 sps:$4 sm:$0xff]   ;;  %v3253_v25 = vld [vmem:[%s4790_s1 + $0x640] ss:$8 sps:$4 sm:$0xff]   ;;  %v3258_v26 = vld [vmem:[%s4790_s1 + $0x154] ss:$8 sps:$4 sm:$0xff]  }
  0x1e   :  { %v3261_v27 = vld [vmem:[%s4790_s1 + $0x654] ss:$8 sps:$4 sm:$0xff]   ;;  %v3256_v28 = vld [vmem:[%s4790_s1 + $0x150] ss:$8 sps:$4 sm:$0xff]   ;;  %v3288_v50 = vld [vmem:[%s4790_s1 + $0x1a4] ss:$8 sps:$4 sm:$0xff]  }
  0x1f   :  { %2080 = vmatpush1.bf16.msra.mxu1 %v3172_v30  ;;  %v3259_v29 = vld [vmem:[%s4790_s1 + $0x650] ss:$8 sps:$4 sm:$0xff]   ;;  %v3264_v30 = vld [vmem:[%s4790_s1 + $0x164] ss:$8 sps:$4 sm:$0xff]   ;;  %v3282_v46 = vld [vmem:[%s4790_s1 + $0x194] ss:$8 sps:$4 sm:$0xff]  }
  0x20   :  { %2285 = vmatpush1.bf16.msra.mxu0 %v3173_v31  ;;  %2081 = vmatprep.subr.bf16.mxu1 %v3174_v32  ;;  %v3267_v31 = vld [vmem:[%s4790_s1 + $0x664] ss:$8 sps:$4 sm:$0xff]   ;;  %v3280_v48 = vld [vmem:[%s4790_s1 + $0x190] ss:$8 sps:$4 sm:$0xff]   ;;  %v3289_v53 = vld [vmem:[%s4790_s1 + $0x6a0] ss:$8 sps:$4 sm:$0xff]  }
  0x21   :  { %2286 = vmatprep.subr.bf16.mxu0 %v3176_v33  ;;  %v3959_v32 = vld [vmem:[%s4791_s0 + $0x8] sm:$0xff] }
  0x22   :  { %v3262_v33 = vld [vmem:[%s4790_s1 + $0x160] ss:$8 sps:$4 sm:$0xff]  }
  0x23   :  { %2082 = vmatpush1.bf16.msra.mxu1 %v3178_v34  ;;  %v3265_v34 = vld [vmem:[%s4790_s1 + $0x660] ss:$8 sps:$4 sm:$0xff]  }
  0x24   :  { %2287 = vmatpush1.bf16.msra.mxu0 %v3179_v35  ;;  %2083 = vmatprep.subr.bf16.mxu1 %v3180_v36  ;;  %v2703_v35 = vcombine.high %v3959_v32, %v3959_v32  ;;  %v3972_v36 = vld [vmem:[%s4791_s0 + $0x30] sm:$0xff] }
  0x25   :  { %2288 = vmatprep.subr.bf16.mxu0 %v3182_v37  ;;  %v3270_v37 = vld [vmem:[%s4790_s1 + $0x174] ss:$8 sps:$4 sm:$0xff]  }
  0x27   :  { %2084 = vmatpush1.bf16.msra.mxu1 %v3184_v38  ;;  %v2713_v38 = vcombine.high %v3972_v36, %v3972_v36 }
  0x28   :  { %2289 = vmatpush1.bf16.msra.mxu0 %v3185_v39  ;;  %2085 = vmatprep.subr.bf16.mxu1 %v3186_v40  ;;  %v3273_v39 = vld [vmem:[%s4790_s1 + $0x674] ss:$8 sps:$4 sm:$0xff]   ;;  %v3268_v40 = vld [vmem:[%s4790_s1 + $0x170] ss:$8 sps:$4 sm:$0xff]  }
  0x29   :  { %2290 = vmatprep.subr.bf16.mxu0 %v3188_v41  ;;  %v3271_v41 = vld [vmem:[%s4790_s1 + $0x670] ss:$8 sps:$4 sm:$0xff]  }
  0x2b   :  { %2086 = vmatpush1.bf16.msra.mxu1 %v3190_v42  ;;  %v3276_v42 = vld [vmem:[%s4790_s1 + $0x184] ss:$8 sps:$4 sm:$0xff]  }
  0x2c   :  { %2291 = vmatpush1.bf16.msra.mxu0 %v3191_v43  ;;  %2087 = vmatprep.subr.bf16.mxu1 %v3192_v44  ;;  %v3279_v43 = vld [vmem:[%s4790_s1 + $0x684] ss:$8 sps:$4 sm:$0xff]   ;;  %v3274_v44 = vld [vmem:[%s4790_s1 + $0x180] ss:$8 sps:$4 sm:$0xff]  }
  0x2d   :  { %2292 = vmatprep.subr.bf16.mxu0 %v3194_v45  ;;  %v3277_v45 = vld [vmem:[%s4790_s1 + $0x680] ss:$8 sps:$4 sm:$0xff]  }
  0x2f   :  { %2088 = vmatpush1.bf16.msra.mxu1 %v3196_v47  ;;  %v3285_v47 = vld [vmem:[%s4790_s1 + $0x694] ss:$8 sps:$4 sm:$0xff]  }
  0x30   :  { %2293 = vmatpush1.bf16.msra.mxu0 %v3197_v49  ;;  %2089 = vmatprep.subr.bf16.mxu1 %v3198_v51  ;;  %v3283_v49 = vld [vmem:[%s4790_s1 + $0x690] ss:$8 sps:$4 sm:$0xff]   ;;  %v3291_v51 = vld [vmem:[%s4790_s1 + $0x6a4] ss:$8 sps:$4 sm:$0xff]  }
  0x31   :  { %2294 = vmatprep.subr.bf16.mxu0 %v3200_v52  ;;  %v3286_v52 = vld [vmem:[%s4790_s1 + $0x1a0] ss:$8 sps:$4 sm:$0xff]  }
  0x33   :  { %2090 = vmatpush1.bf16.msra.mxu1 %v3202_v54  ;;  %v3294_v54 = vld [vmem:[%s4790_s1 + $0x1b4] ss:$8 sps:$4 sm:$0xff]  }
  0x34   :  { %2295 = vmatpush1.bf16.msra.mxu0 %v3203_v55  ;;  %2091 = vmatprep.subr.bf16.mxu1 %v3204_v56  ;;  %v3297_v55 = vld [vmem:[%s4790_s1 + $0x6b4] ss:$8 sps:$4 sm:$0xff]   ;;  %v3292_v56 = vld [vmem:[%s4790_s1 + $0x1b0] ss:$8 sps:$4 sm:$0xff]  }
  0x35   :  { %2296 = vmatprep.subr.bf16.mxu0 %v3206_v57  ;;  %v3295_v57 = vld [vmem:[%s4790_s1 + $0x6b0] ss:$8 sps:$4 sm:$0xff]  }
  0x37   :  { %2092 = vmatpush1.bf16.msra.mxu1 %v3208_v58  ;;  %v3300_v58 = vld [vmem:[%s4790_s1 + $0x1c4] ss:$8 sps:$4 sm:$0xff]  }
  0x38   :  { %2297 = vmatpush1.bf16.msra.mxu0 %v3209_v59  ;;  %2093 = vmatprep.subr.bf16.mxu1 %v3210_v60  ;;  %v3303_v59 = vld [vmem:[%s4790_s1 + $0x6c4] ss:$8 sps:$4 sm:$0xff]   ;;  %v3298_v60 = vld [vmem:[%s4790_s1 + $0x1c0] ss:$8 sps:$4 sm:$0xff]  }
  0x39   :  { %2298 = vmatprep.subr.bf16.mxu0 %v3212_v61  ;;  %v3301_v61 = vld [vmem:[%s4790_s1 + $0x6c0] ss:$8 sps:$4 sm:$0xff]  }
  0x3b   :  { %2094 = vmatpush1.bf16.msra.mxu1 %v3214_v62  ;;  %v3306_v62 = vld [vmem:[%s4790_s1 + $0x1d4] ss:$8 sps:$4 sm:$0xff]  }
  0x3c   :  { %2299 = vmatpush1.bf16.msra.mxu0 %v3215_v63  ;;  %2095 = vmatprep.subr.bf16.mxu1 %v3216_v0  ;;  %v3309_v63 = vld [vmem:[%s4790_s1 + $0x6d4] ss:$8 sps:$4 sm:$0xff]   ;;  %v3304_v0 = vld [vmem:[%s4790_s1 + $0x1d0] ss:$8 sps:$4 sm:$0xff]  }
  0x3d   :  { %2300 = vmatprep.subr.bf16.mxu0 %v3218_v1  ;;  %v3307_v1 = vld [vmem:[%s4790_s1 + $0x6d0] ss:$8 sps:$4 sm:$0xff]  }
  0x3f   :  { %2096 = vmatpush1.bf16.msra.mxu1 %v3220_v2  ;;  %v3312_v2 = vld [vmem:[%s4790_s1 + $0x1e4] ss:$8 sps:$4 sm:$0xff]  }
  0x40   :  { %2301 = vmatpush1.bf16.msra.mxu0 %v3221_v3  ;;  %2106 = vmatprep.subr.bf16.mxu1 %v3226_v4  ;;  %v3315_v3 = vld [vmem:[%s4790_s1 + $0x6e4] ss:$8 sps:$4 sm:$0xff]   ;;  %v3310_v4 = vld [vmem:[%s4790_s1 + $0x1e0] ss:$8 sps:$4 sm:$0xff]  }
  0x41   :  { %2311 = vmatprep.subr.bf16.mxu0 %v3231_v5  ;;  %v3313_v5 = vld [vmem:[%s4790_s1 + $0x6e0] ss:$8 sps:$4 sm:$0xff]  }
  0x42   :  { %2098 = vmatmul.mubr.bf16.vlgmr.msra.gmra.mrb[0].mxu1 %v2700_v6  ;;  %v3318_v6 = vld [vmem:[%s4790_s1 + $0x1f4] ss:$8 sps:$4 sm:$0xff]  }
  0x43   :  { %2303 = vmatmul.mubr.bf16.vlgmr.msra.gmra.mrb[0].mxu0 %v2710_v7  ;;  %2107 = vmatpush1.bf16.msra.mxu1 %v3224_v8  ;;  %v3321_v7 = vld [vmem:[%s4790_s1 + $0x6f4] ss:$8 sps:$4 sm:$0xff]   ;;  %v3316_v8 = vld [vmem:[%s4790_s1 + $0x1f0] ss:$8 sps:$4 sm:$0xff]  }
  0x44   :  { %2312 = vmatpush1.bf16.msra.mxu0 %v3229_v9  ;;  %2108 = vmatprep.subr.bf16.mxu1 %v3234_v10  ;;  %v3319_v9 = vld [vmem:[%s4790_s1 + $0x6f0] ss:$8 sps:$4 sm:$0xff]   ;;  %v3326_v10 = vld [vmem:[%s4790_s1 + $0x204] ss:$8 sps:$4 sm:$0xff]  }
  0x45   :  { %2313 = vmatprep.subr.bf16.mxu0 %v3237_v11  ;;  %2138 = vmatprep.mubr.bf16.mxu1 %v2703_v35  ;;  %v3331_v11 = vld [vmem:[%s4790_s1 + $0x704] ss:$8 sps:$4 sm:$0xff]   ;;  %v3353_v35 = vld [vmem:[%s4790_s1 + $0x740] ss:$8 sps:$4 sm:$0xff]  }
  0x46   :  { %2343 = vmatprep.mubr.bf16.mxu0 %v2713_v38  ;;  %v3356_v38 = vld [vmem:[%s4790_s1 + $0x250] ss:$8 sps:$4 sm:$0xff]  }
  0x47   :  { %2109 = vmatpush1.bf16.msra.mxu1 %v3232_v12  ;;  %v2702_v12 = vcombine.low %v3959_v32, %v3959_v32  ;;  %v3352_v32 = vld [vmem:[%s4790_s1 + $0x244] ss:$8 sps:$4 sm:$0xff]  }
  0x48   :  { %2314 = vmatpush1.bf16.msra.mxu0 %v3235_v13  ;;  %2110 = vmatprep.subr.bf16.mxu1 %v3240_v14  ;;  %v3324_v13 = vld [vmem:[%s4790_s1 + $0x200] ss:$8 sps:$4 sm:$0xff]   ;;  %v2712_v14 = vcombine.low %v3972_v36, %v3972_v36  ;;  %v3358_v36 = vld [vmem:[%s4790_s1 + $0x254] ss:$8 sps:$4 sm:$0xff]  }
  0x49   :  { %2315 = vmatprep.subr.bf16.mxu0 %v3243_v15  ;;  %v3329_v15 = vld [vmem:[%s4790_s1 + $0x700] ss:$8 sps:$4 sm:$0xff]  }
  0x4b   :  { %2111 = vmatpush1.bf16.msra.mxu1 %v3238_v16  ;;  %v3334_v16 = vld [vmem:[%s4790_s1 + $0x214] ss:$8 sps:$4 sm:$0xff]  }
  0x4c   :  { %2316 = vmatpush1.bf16.msra.mxu0 %v3241_v17  ;;  %2112 = vmatprep.subr.bf16.mxu1 %v3246_v18  ;;  %v3337_v17 = vld [vmem:[%s4790_s1 + $0x714] ss:$8 sps:$4 sm:$0xff]  }
  0x4d   :  { %2317 = vmatprep.subr.bf16.mxu0 %v3249_v19  ;;  %v4109_v18 = vld [vmem:[%s4791_s0 + $0x10] sm:$0xff] }
  0x4e   :  { %v2705_v19 = vcombine.high %v4109_v18, %v4109_v18 }
  0x4f   :  { %2113 = vmatpush1.bf16.msra.mxu1 %v3244_v20  ;;  %v4116_v20 = vld [vmem:[%s4791_s0 + $0x38] sm:$0xff] }
  0x50   :  { %2318 = vmatpush1.bf16.msra.mxu0 %v3247_v21  ;;  %2114 = vmatprep.subr.bf16.mxu1 %v3252_v22  ;;  %v3332_v21 = vld [vmem:[%s4790_s1 + $0x210] ss:$8 sps:$4 sm:$0xff]  }
  0x51   :  { %2319 = vmatprep.subr.bf16.mxu0 %v3255_v23  ;;  %v3335_v22 = vld [vmem:[%s4790_s1 + $0x710] ss:$8 sps:$4 sm:$0xff]   ;;  %v2715_v23 = vcombine.high %v4116_v20, %v4116_v20 }
  0x53   :  { %2115 = vmatpush1.bf16.msra.mxu1 %v3250_v24  ;;  %v3340_v24 = vld [vmem:[%s4790_s1 + $0x224] ss:$8 sps:$4 sm:$0xff]  }
  0x54   :  { %2320 = vmatpush1.bf16.msra.mxu0 %v3253_v25  ;;  %2116 = vmatprep.subr.bf16.mxu1 %v3258_v26  ;;  %v3343_v25 = vld [vmem:[%s4790_s1 + $0x724] ss:$8 sps:$4 sm:$0xff]   ;;  %v3338_v26 = vld [vmem:[%s4790_s1 + $0x220] ss:$8 sps:$4 sm:$0xff]  }
  0x55   :  { %2321 = vmatprep.subr.bf16.mxu0 %v3261_v27  ;;  %v3341_v27 = vld [vmem:[%s4790_s1 + $0x720] ss:$8 sps:$4 sm:$0xff]  }
  0x57   :  { %2117 = vmatpush1.bf16.msra.mxu1 %v3256_v28  ;;  %v3346_v28 = vld [vmem:[%s4790_s1 + $0x234] ss:$8 sps:$4 sm:$0xff]  }
  0x58   :  { %2322 = vmatpush1.bf16.msra.mxu0 %v3259_v29  ;;  %2118 = vmatprep.subr.bf16.mxu1 %v3264_v30  ;;  %v3349_v29 = vld [vmem:[%s4790_s1 + $0x734] ss:$8 sps:$4 sm:$0xff]   ;;  %v3344_v30 = vld [vmem:[%s4790_s1 + $0x230] ss:$8 sps:$4 sm:$0xff]  }
  0x59   :  { %2323 = vmatprep.subr.bf16.mxu0 %v3267_v31  ;;  %v3347_v31 = vld [vmem:[%s4790_s1 + $0x730] ss:$8 sps:$4 sm:$0xff]  }
  0x5b   :  { %2119 = vmatpush1.bf16.msra.mxu1 %v3262_v33  ;;  %v3355_v33 = vld [vmem:[%s4790_s1 + $0x744] ss:$8 sps:$4 sm:$0xff]  }
  0x5c   :  { %2324 = vmatpush1.bf16.msra.mxu0 %v3265_v34  ;;  %2120 = vmatprep.subr.bf16.mxu1 %v3270_v37  ;;  %v3350_v34 = vld [vmem:[%s4790_s1 + $0x240] ss:$8 sps:$4 sm:$0xff]   ;;  %v3361_v37 = vld [vmem:[%s4790_s1 + $0x754] ss:$8 sps:$4 sm:$0xff]  }
  0x5d   :  { %2325 = vmatprep.subr.bf16.mxu0 %v3273_v39  ;;  %v3359_v39 = vld [vmem:[%s4790_s1 + $0x750] ss:$8 sps:$4 sm:$0xff]  }
  0x5f   :  { %2121 = vmatpush1.bf16.msra.mxu1 %v3268_v40  ;;  %v3364_v40 = vld [vmem:[%s4790_s1 + $0x264] ss:$8 sps:$4 sm:$0xff]  }
  0x60   :  { %2326 = vmatpush1.bf16.msra.mxu0 %v3271_v41  ;;  %2122 = vmatprep.subr.bf16.mxu1 %v3276_v42  ;;  %v3367_v41 = vld [vmem:[%s4790_s1 + $0x764] ss:$8 sps:$4 sm:$0xff]   ;;  %v3362_v42 = vld [vmem:[%s4790_s1 + $0x260] ss:$8 sps:$4 sm:$0xff]  }
  0x61   :  { %2327 = vmatprep.subr.bf16.mxu0 %v3279_v43  ;;  %v3365_v43 = vld [vmem:[%s4790_s1 + $0x760] ss:$8 sps:$4 sm:$0xff]  }
  0x63   :  { %2123 = vmatpush1.bf16.msra.mxu1 %v3274_v44  ;;  %v3370_v44 = vld [vmem:[%s4790_s1 + $0x274] ss:$8 sps:$4 sm:$0xff]  }
  0x64   :  { %2328 = vmatpush1.bf16.msra.mxu0 %v3277_v45  ;;  %2124 = vmatprep.subr.bf16.mxu1 %v3282_v46  ;;  %v3373_v45 = vld [vmem:[%s4790_s1 + $0x774] ss:$8 sps:$4 sm:$0xff]   ;;  %v3368_v46 = vld [vmem:[%s4790_s1 + $0x270] ss:$8 sps:$4 sm:$0xff]  }
  0x65   :  { %2329 = vmatprep.subr.bf16.mxu0 %v3285_v47  ;;  %v3371_v47 = vld [vmem:[%s4790_s1 + $0x770] ss:$8 sps:$4 sm:$0xff]  }
  0x67   :  { %2125 = vmatpush1.bf16.msra.mxu1 %v3280_v48  ;;  %v3376_v48 = vld [vmem:[%s4790_s1 + $0x284] ss:$8 sps:$4 sm:$0xff]  }
  0x68   :  { %2330 = vmatpush1.bf16.msra.mxu0 %v3283_v49  ;;  %2126 = vmatprep.subr.bf16.mxu1 %v3288_v50  ;;  %v3379_v49 = vld [vmem:[%s4790_s1 + $0x784] ss:$8 sps:$4 sm:$0xff]   ;;  %v3374_v50 = vld [vmem:[%s4790_s1 + $0x280] ss:$8 sps:$4 sm:$0xff]  }
  0x69   :  { %2331 = vmatprep.subr.bf16.mxu0 %v3291_v51  ;;  %v3377_v51 = vld [vmem:[%s4790_s1 + $0x780] ss:$8 sps:$4 sm:$0xff]  }
  0x6b   :  { %2127 = vmatpush1.bf16.msra.mxu1 %v3286_v52  ;;  %v3382_v52 = vld [vmem:[%s4790_s1 + $0x294] ss:$8 sps:$4 sm:$0xff]  }
  0x6c   :  { %2332 = vmatpush1.bf16.msra.mxu0 %v3289_v53  ;;  %2128 = vmatprep.subr.bf16.mxu1 %v3294_v54  ;;  %v3385_v53 = vld [vmem:[%s4790_s1 + $0x794] ss:$8 sps:$4 sm:$0xff]   ;;  %v3380_v54 = vld [vmem:[%s4790_s1 + $0x290] ss:$8 sps:$4 sm:$0xff]  }
  0x6d   :  { %2333 = vmatprep.subr.bf16.mxu0 %v3297_v55  ;;  %v3383_v55 = vld [vmem:[%s4790_s1 + $0x790] ss:$8 sps:$4 sm:$0xff]  }
  0x6f   :  { %2129 = vmatpush1.bf16.msra.mxu1 %v3292_v56  ;;  %v3388_v56 = vld [vmem:[%s4790_s1 + $0x2a4] ss:$8 sps:$4 sm:$0xff]  }
  0x70   :  { %2334 = vmatpush1.bf16.msra.mxu0 %v3295_v57  ;;  %2130 = vmatprep.subr.bf16.mxu1 %v3300_v58  ;;  %v3391_v57 = vld [vmem:[%s4790_s1 + $0x7a4] ss:$8 sps:$4 sm:$0xff]   ;;  %v3386_v58 = vld [vmem:[%s4790_s1 + $0x2a0] ss:$8 sps:$4 sm:$0xff]  }
  0x71   :  { %2335 = vmatprep.subr.bf16.mxu0 %v3303_v59  ;;  %v3389_v59 = vld [vmem:[%s4790_s1 + $0x7a0] ss:$8 sps:$4 sm:$0xff]  }
  0x73   :  { %2131 = vmatpush1.bf16.msra.mxu1 %v3298_v60  ;;  %v3394_v60 = vld [vmem:[%s4790_s1 + $0x2b4] ss:$8 sps:$4 sm:$0xff]  }
  0x74   :  { %2336 = vmatpush1.bf16.msra.mxu0 %v3301_v61  ;;  %2132 = vmatprep.subr.bf16.mxu1 %v3306_v62  ;;  %v3397_v61 = vld [vmem:[%s4790_s1 + $0x7b4] ss:$8 sps:$4 sm:$0xff]   ;;  %v3392_v62 = vld [vmem:[%s4790_s1 + $0x2b0] ss:$8 sps:$4 sm:$0xff]  }
  0x75   :  { %2337 = vmatprep.subr.bf16.mxu0 %v3309_v63  ;;  %v3395_v63 = vld [vmem:[%s4790_s1 + $0x7b0] ss:$8 sps:$4 sm:$0xff]  }
  0x77   :  { %2133 = vmatpush1.bf16.msra.mxu1 %v3304_v0  ;;  %v3400_v0 = vld [vmem:[%s4790_s1 + $0x2c4] ss:$8 sps:$4 sm:$0xff]  }
  0x78   :  { %2338 = vmatpush1.bf16.msra.mxu0 %v3307_v1  ;;  %2134 = vmatprep.subr.bf16.mxu1 %v3312_v2  ;;  %v3403_v1 = vld [vmem:[%s4790_s1 + $0x7c4] ss:$8 sps:$4 sm:$0xff]   ;;  %v3398_v2 = vld [vmem:[%s4790_s1 + $0x2c0] ss:$8 sps:$4 sm:$0xff]  }
  0x79   :  { %2339 = vmatprep.subr.bf16.mxu0 %v3315_v3  ;;  %v3401_v3 = vld [vmem:[%s4790_s1 + $0x7c0] ss:$8 sps:$4 sm:$0xff]  }
  0x7b   :  { %2135 = vmatpush1.bf16.msra.mxu1 %v3310_v4  ;;  %v3406_v4 = vld [vmem:[%s4790_s1 + $0x2d4] ss:$8 sps:$4 sm:$0xff]  }
  0x7c   :  { %2340 = vmatpush1.bf16.msra.mxu0 %v3313_v5  ;;  %2136 = vmatprep.subr.bf16.mxu1 %v3318_v6  ;;  %v3409_v5 = vld [vmem:[%s4790_s1 + $0x7d4] ss:$8 sps:$4 sm:$0xff]   ;;  %v3404_v6 = vld [vmem:[%s4790_s1 + $0x2d0] ss:$8 sps:$4 sm:$0xff]  }
  0x7d   :  { %2341 = vmatprep.subr.bf16.mxu0 %v3321_v7  ;;  %v3407_v7 = vld [vmem:[%s4790_s1 + $0x7d0] ss:$8 sps:$4 sm:$0xff]  }
  0x7f   :  { %2137 = vmatpush1.bf16.msra.mxu1 %v3316_v8  ;;  %v3412_v8 = vld [vmem:[%s4790_s1 + $0x2e4] ss:$8 sps:$4 sm:$0xff]  }
  0x80   :  { %2342 = vmatpush1.bf16.msra.mxu0 %v3319_v9  ;;  %2147 = vmatprep.subr.bf16.mxu1 %v3326_v10  ;;  %v3415_v9 = vld [vmem:[%s4790_s1 + $0x7e4] ss:$8 sps:$4 sm:$0xff]   ;;  %v3410_v10 = vld [vmem:[%s4790_s1 + $0x2e0] ss:$8 sps:$4 sm:$0xff]  }
  0x81   :  { %2352 = vmatprep.subr.bf16.mxu0 %v3331_v11  ;;  %v3413_v11 = vld [vmem:[%s4790_s1 + $0x7e0] ss:$8 sps:$4 sm:$0xff]  }
  0x82   :  { %2139 = vmatmul.mubr.bf16.vlgmr.msra.gmra.mrb[0].mxu1 %v2702_v12  ;;  %v3418_v12 = vld [vmem:[%s4790_s1 + $0x2f4] ss:$8 sps:$4 sm:$0xff]  }
  0x83   :  { %2344 = vmatmul.mubr.bf16.vlgmr.msra.gmra.mrb[0].mxu0 %v2712_v14  ;;  %2148 = vmatpush1.bf16.msra.mxu1 %v3324_v13  ;;  %v3421_v13 = vld [vmem:[%s4790_s1 + $0x7f4] ss:$8 sps:$4 sm:$0xff]   ;;  %v3416_v14 = vld [vmem:[%s4790_s1 + $0x2f0] ss:$8 sps:$4 sm:$0xff]  }
  0x84   :  { %2353 = vmatpush1.bf16.msra.mxu0 %v3329_v15  ;;  %2149 = vmatprep.subr.bf16.mxu1 %v3334_v16  ;;  %v3419_v15 = vld [vmem:[%s4790_s1 + $0x7f0] ss:$8 sps:$4 sm:$0xff]   ;;  %v3426_v16 = vld [vmem:[%s4790_s1 + $0x304] ss:$8 sps:$4 sm:$0xff]  }
  0x85   :  { %2354 = vmatprep.subr.bf16.mxu0 %v3337_v17  ;;  %2179 = vmatprep.mubr.bf16.mxu1 %v2705_v19  ;;  %v3431_v17 = vld [vmem:[%s4790_s1 + $0x804] ss:$8 sps:$4 sm:$0xff]   ;;  %v3424_v19 = vld [vmem:[%s4790_s1 + $0x300] ss:$8 sps:$4 sm:$0xff]  }
  0x86   :  { %2384 = vmatprep.mubr.bf16.mxu0 %v2715_v23  ;;  %v2714_v23 = vcombine.low %v4116_v20, %v4116_v20 }
  0x87   :  { %2150 = vmatpush1.bf16.msra.mxu1 %v3332_v21  ;;  %v3429_v21 = vld [vmem:[%s4790_s1 + $0x800] ss:$8 sps:$4 sm:$0xff]  }
  0x88   :  { %2355 = vmatpush1.bf16.msra.mxu0 %v3335_v22  ;;  %2151 = vmatprep.subr.bf16.mxu1 %v3340_v24  ;;  %v2704_v22 = vcombine.low %v4109_v18, %v4109_v18  ;;  %v4313_v24 = vld [vmem:[%s4791_s0 + $0x18] sm:$0xff] }
  0x89   :  { %2356 = vmatprep.subr.bf16.mxu0 %v3343_v25  ;;  %v4318_v25 = vld [vmem:[%s4791_s0 + $0x40] sm:$0xff]  ;;  %v3437_v18 = vld [vmem:[%s4790_s1 + $0x814] ss:$8 sps:$4 sm:$0xff]   ;;  %v2707_v20 = vcombine.high %v4313_v24, %v4313_v24 }
  0x8b   :  { %2152 = vmatpush1.bf16.msra.mxu1 %v3338_v26  ;;  %v3434_v26 = vld [vmem:[%s4790_s1 + $0x314] ss:$8 sps:$4 sm:$0xff]  }
  0x8c   :  { %2357 = vmatpush1.bf16.msra.mxu0 %v3341_v27  ;;  %2153 = vmatprep.subr.bf16.mxu1 %v3346_v28  ;;  %v2717_v27 = vcombine.high %v4318_v25, %v4318_v25  ;;  %v3432_v28 = vld [vmem:[%s4790_s1 + $0x310] ss:$8 sps:$4 sm:$0xff]  }
  0x8d   :  { %2358 = vmatprep.subr.bf16.mxu0 %v3349_v29  ;;  %v3435_v29 = vld [vmem:[%s4790_s1 + $0x810] ss:$8 sps:$4 sm:$0xff]  }
  0x8f   :  { %2154 = vmatpush1.bf16.msra.mxu1 %v3344_v30  ;;  %v3440_v30 = vld [vmem:[%s4790_s1 + $0x324] ss:$8 sps:$4 sm:$0xff]  }
  0x90   :  { %2359 = vmatpush1.bf16.msra.mxu0 %v3347_v31  ;;  %2155 = vmatprep.subr.bf16.mxu1 %v3352_v32  ;;  %v3443_v31 = vld [vmem:[%s4790_s1 + $0x824] ss:$8 sps:$4 sm:$0xff]   ;;  %v3438_v32 = vld [vmem:[%s4790_s1 + $0x320] ss:$8 sps:$4 sm:$0xff]  }
  0x91   :  { %2360 = vmatprep.subr.bf16.mxu0 %v3355_v33  ;;  %v3441_v33 = vld [vmem:[%s4790_s1 + $0x820] ss:$8 sps:$4 sm:$0xff]  }
  0x93   :  { %2156 = vmatpush1.bf16.msra.mxu1 %v3350_v34  ;;  %v3446_v34 = vld [vmem:[%s4790_s1 + $0x334] ss:$8 sps:$4 sm:$0xff]  }
  0x94   :  { %2361 = vmatpush1.bf16.msra.mxu0 %v3353_v35  ;;  %2157 = vmatprep.subr.bf16.mxu1 %v3358_v36  ;;  %v3449_v35 = vld [vmem:[%s4790_s1 + $0x834] ss:$8 sps:$4 sm:$0xff]   ;;  %v3444_v36 = vld [vmem:[%s4790_s1 + $0x330] ss:$8 sps:$4 sm:$0xff]  }
  0x95   :  { %2362 = vmatprep.subr.bf16.mxu0 %v3361_v37  ;;  %v3447_v37 = vld [vmem:[%s4790_s1 + $0x830] ss:$8 sps:$4 sm:$0xff]  }
  0x97   :  { %2158 = vmatpush1.bf16.msra.mxu1 %v3356_v38  ;;  %v3452_v38 = vld [vmem:[%s4790_s1 + $0x344] ss:$8 sps:$4 sm:$0xff]  }
  0x98   :  { %2363 = vmatpush1.bf16.msra.mxu0 %v3359_v39  ;;  %2159 = vmatprep.subr.bf16.mxu1 %v3364_v40  ;;  %v3455_v39 = vld [vmem:[%s4790_s1 + $0x844] ss:$8 sps:$4 sm:$0xff]   ;;  %v3450_v40 = vld [vmem:[%s4790_s1 + $0x340] ss:$8 sps:$4 sm:$0xff]  }
  0x99   :  { %2364 = vmatprep.subr.bf16.mxu0 %v3367_v41  ;;  %v3453_v41 = vld [vmem:[%s4790_s1 + $0x840] ss:$8 sps:$4 sm:$0xff]  }
  0x9b   :  { %2160 = vmatpush1.bf16.msra.mxu1 %v3362_v42  ;;  %v3458_v42 = vld [vmem:[%s4790_s1 + $0x354] ss:$8 sps:$4 sm:$0xff]  }
  0x9c   :  { %2365 = vmatpush1.bf16.msra.mxu0 %v3365_v43  ;;  %2161 = vmatprep.subr.bf16.mxu1 %v3370_v44  ;;  %v3461_v43 = vld [vmem:[%s4790_s1 + $0x854] ss:$8 sps:$4 sm:$0xff]   ;;  %v3456_v44 = vld [vmem:[%s4790_s1 + $0x350] ss:$8 sps:$4 sm:$0xff]  }
  0x9d   :  { %2366 = vmatprep.subr.bf16.mxu0 %v3373_v45  ;;  %v3459_v45 = vld [vmem:[%s4790_s1 + $0x850] ss:$8 sps:$4 sm:$0xff]  }
  0x9f   :  { %2162 = vmatpush1.bf16.msra.mxu1 %v3368_v46  ;;  %v3464_v46 = vld [vmem:[%s4790_s1 + $0x364] ss:$8 sps:$4 sm:$0xff]  }
  0xa0   :  { %2367 = vmatpush1.bf16.msra.mxu0 %v3371_v47  ;;  %2163 = vmatprep.subr.bf16.mxu1 %v3376_v48  ;;  %v3467_v47 = vld [vmem:[%s4790_s1 + $0x864] ss:$8 sps:$4 sm:$0xff]   ;;  %v3462_v48 = vld [vmem:[%s4790_s1 + $0x360] ss:$8 sps:$4 sm:$0xff]  }
  0xa1   :  { %2368 = vmatprep.subr.bf16.mxu0 %v3379_v49  ;;  %v3465_v49 = vld [vmem:[%s4790_s1 + $0x860] ss:$8 sps:$4 sm:$0xff]  }
  0xa3   :  { %2164 = vmatpush1.bf16.msra.mxu1 %v3374_v50  ;;  %v3470_v50 = vld [vmem:[%s4790_s1 + $0x374] ss:$8 sps:$4 sm:$0xff]  }
  0xa4   :  { %2369 = vmatpush1.bf16.msra.mxu0 %v3377_v51  ;;  %2165 = vmatprep.subr.bf16.mxu1 %v3382_v52  ;;  %v3473_v51 = vld [vmem:[%s4790_s1 + $0x874] ss:$8 sps:$4 sm:$0xff]   ;;  %v3468_v52 = vld [vmem:[%s4790_s1 + $0x370] ss:$8 sps:$4 sm:$0xff]  }
  0xa5   :  { %2370 = vmatprep.subr.bf16.mxu0 %v3385_v53  ;;  %v3471_v53 = vld [vmem:[%s4790_s1 + $0x870] ss:$8 sps:$4 sm:$0xff]  }
  0xa7   :  { %2166 = vmatpush1.bf16.msra.mxu1 %v3380_v54  ;;  %v3476_v54 = vld [vmem:[%s4790_s1 + $0x384] ss:$8 sps:$4 sm:$0xff]  }
  0xa8   :  { %2371 = vmatpush1.bf16.msra.mxu0 %v3383_v55  ;;  %2167 = vmatprep.subr.bf16.mxu1 %v3388_v56  ;;  %v3479_v55 = vld [vmem:[%s4790_s1 + $0x884] ss:$8 sps:$4 sm:$0xff]   ;;  %v3474_v56 = vld [vmem:[%s4790_s1 + $0x380] ss:$8 sps:$4 sm:$0xff]  }
  0xa9   :  { %2372 = vmatprep.subr.bf16.mxu0 %v3391_v57  ;;  %v3477_v57 = vld [vmem:[%s4790_s1 + $0x880] ss:$8 sps:$4 sm:$0xff]  }
  0xab   :  { %2168 = vmatpush1.bf16.msra.mxu1 %v3386_v58  ;;  %v3482_v58 = vld [vmem:[%s4790_s1 + $0x394] ss:$8 sps:$4 sm:$0xff]  }
  0xac   :  { %2373 = vmatpush1.bf16.msra.mxu0 %v3389_v59  ;;  %2169 = vmatprep.subr.bf16.mxu1 %v3394_v60  ;;  %v3485_v59 = vld [vmem:[%s4790_s1 + $0x894] ss:$8 sps:$4 sm:$0xff]   ;;  %v3480_v60 = vld [vmem:[%s4790_s1 + $0x390] ss:$8 sps:$4 sm:$0xff]  }
  0xad   :  { %2374 = vmatprep.subr.bf16.mxu0 %v3397_v61  ;;  %v3483_v61 = vld [vmem:[%s4790_s1 + $0x890] ss:$8 sps:$4 sm:$0xff]  }
  0xaf   :  { %2170 = vmatpush1.bf16.msra.mxu1 %v3392_v62  ;;  %v3488_v62 = vld [vmem:[%s4790_s1 + $0x3a4] ss:$8 sps:$4 sm:$0xff]  }
  0xb0   :  { %2375 = vmatpush1.bf16.msra.mxu0 %v3395_v63  ;;  %2171 = vmatprep.subr.bf16.mxu1 %v3400_v0  ;;  %v3491_v63 = vld [vmem:[%s4790_s1 + $0x8a4] ss:$8 sps:$4 sm:$0xff]   ;;  %v3486_v0 = vld [vmem:[%s4790_s1 + $0x3a0] ss:$8 sps:$4 sm:$0xff]  }
  0xb1   :  { %2376 = vmatprep.subr.bf16.mxu0 %v3403_v1  ;;  %v3489_v1 = vld [vmem:[%s4790_s1 + $0x8a0] ss:$8 sps:$4 sm:$0xff]  }
  0xb3   :  { %2172 = vmatpush1.bf16.msra.mxu1 %v3398_v2  ;;  %v3494_v2 = vld [vmem:[%s4790_s1 + $0x3b4] ss:$8 sps:$4 sm:$0xff]  }
  0xb4   :  { %2377 = vmatpush1.bf16.msra.mxu0 %v3401_v3  ;;  %2173 = vmatprep.subr.bf16.mxu1 %v3406_v4  ;;  %v3497_v3 = vld [vmem:[%s4790_s1 + $0x8b4] ss:$8 sps:$4 sm:$0xff]   ;;  %v3492_v4 = vld [vmem:[%s4790_s1 + $0x3b0] ss:$8 sps:$4 sm:$0xff]  }
  0xb5   :  { %2378 = vmatprep.subr.bf16.mxu0 %v3409_v5  ;;  %v3495_v5 = vld [vmem:[%s4790_s1 + $0x8b0] ss:$8 sps:$4 sm:$0xff]  }
  0xb7   :  { %2174 = vmatpush1.bf16.msra.mxu1 %v3404_v6  ;;  %v3500_v6 = vld [vmem:[%s4790_s1 + $0x3c4] ss:$8 sps:$4 sm:$0xff]  }
  0xb8   :  { %2379 = vmatpush1.bf16.msra.mxu0 %v3407_v7  ;;  %2175 = vmatprep.subr.bf16.mxu1 %v3412_v8  ;;  %v3503_v7 = vld [vmem:[%s4790_s1 + $0x8c4] ss:$8 sps:$4 sm:$0xff]   ;;  %v3498_v8 = vld [vmem:[%s4790_s1 + $0x3c0] ss:$8 sps:$4 sm:$0xff]  }
  0xb9   :  { %2380 = vmatprep.subr.bf16.mxu0 %v3415_v9  ;;  %v3501_v9 = vld [vmem:[%s4790_s1 + $0x8c0] ss:$8 sps:$4 sm:$0xff]  }
  0xbb   :  { %2176 = vmatpush1.bf16.msra.mxu1 %v3410_v10  ;;  %v3506_v10 = vld [vmem:[%s4790_s1 + $0x3d4] ss:$8 sps:$4 sm:$0xff]  }
  0xbc   :  { %2381 = vmatpush1.bf16.msra.mxu0 %v3413_v11  ;;  %2177 = vmatprep.subr.bf16.mxu1 %v3418_v12  ;;  %v3509_v11 = vld [vmem:[%s4790_s1 + $0x8d4] ss:$8 sps:$4 sm:$0xff]   ;;  %v3504_v12 = vld [vmem:[%s4790_s1 + $0x3d0] ss:$8 sps:$4 sm:$0xff]  }
  0xbd   :  { %2382 = vmatprep.subr.bf16.mxu0 %v3421_v13  ;;  %v3507_v13 = vld [vmem:[%s4790_s1 + $0x8d0] ss:$8 sps:$4 sm:$0xff]  }
  0xbf   :  { %2178 = vmatpush1.bf16.msra.mxu1 %v3416_v14  ;;  %v3512_v14 = vld [vmem:[%s4790_s1 + $0x3e4] ss:$8 sps:$4 sm:$0xff]  }
  0xc0   :  { %2383 = vmatpush1.bf16.msra.mxu0 %v3419_v15  ;;  %2188 = vmatprep.subr.bf16.mxu1 %v3426_v16  ;;  %v3515_v15 = vld [vmem:[%s4790_s1 + $0x8e4] ss:$8 sps:$4 sm:$0xff]   ;;  %v3510_v16 = vld [vmem:[%s4790_s1 + $0x3e0] ss:$8 sps:$4 sm:$0xff]  }
  0xc1   :  { %2393 = vmatprep.subr.bf16.mxu0 %v3431_v17  ;;  %v3513_v17 = vld [vmem:[%s4790_s1 + $0x8e0] ss:$8 sps:$4 sm:$0xff]  }
  0xc2   :  { %2180 = vmatmul.mubr.bf16.vlgmr.msra.gmra.mrb[0].mxu1 %v2704_v22  ;;  %v3516_v22 = vld [vmem:[%s4790_s1 + $0x3f0] ss:$8 sps:$4 sm:$0xff]  }
  0xc3   :  { %2385 = vmatmul.mubr.bf16.vlgmr.msra.gmra.mrb[0].mxu0 %v2714_v23  ;;  %2189 = vmatpush1.bf16.msra.mxu1 %v3424_v19  ;;  %v3518_v19 = vld [vmem:[%s4790_s1 + $0x3f4] ss:$8 sps:$4 sm:$0xff]   ;;  %v3519_v23 = vld [vmem:[%s4790_s1 + $0x8f0] ss:$8 sps:$4 sm:$0xff]  }
  0xc4   :  { %2394 = vmatpush1.bf16.msra.mxu0 %v3429_v21  ;;  %2190 = vmatprep.subr.bf16.mxu1 %v3434_v26  ;;  %v3521_v21 = vld [vmem:[%s4790_s1 + $0x8f4] ss:$8 sps:$4 sm:$0xff]   ;;  %v3526_v26 = vld [vmem:[%s4790_s1 + $0x404] ss:$8 sps:$4 sm:$0xff]  }
  0xc5   :  { %2395 = vmatprep.subr.bf16.mxu0 %v3437_v18  ;;  %2220 = vmatprep.mubr.bf16.mxu1 %v2707_v20  ;;  %v3531_v18 = vld [vmem:[%s4790_s1 + $0x904] ss:$8 sps:$4 sm:$0xff]   ;;  %v2706_v20 = vcombine.low %v4313_v24, %v4313_v24  ;;  %v3529_v24 = vld [vmem:[%s4790_s1 + $0x900] ss:$8 sps:$4 sm:$0xff]  }
  0xc6   :  { %2425 = vmatprep.mubr.bf16.mxu0 %v2717_v27  ;;  %v2716_v27 = vcombine.low %v4318_v25, %v4318_v25  ;;  %v3534_v25 = vld [vmem:[%s4790_s1 + $0x414] ss:$8 sps:$4 sm:$0xff]  }
  0xc7   :  { %2191 = vmatpush1.bf16.msra.mxu1 %v3432_v28  ;;  %v4517_v28 = vld [vmem:[%s4791_s0 + $0x20] sm:$0xff] }
  0xc8   :  { %2396 = vmatpush1.bf16.msra.mxu0 %v3435_v29  ;;  %2192 = vmatprep.subr.bf16.mxu1 %v3440_v30  ;;  %v4522_v29 = vld [vmem:[%s4791_s0 + $0x48] sm:$0xff] }
  0xc9   :  { %2397 = vmatprep.subr.bf16.mxu0 %v3443_v31  ;;  %v3524_v30 = vld [vmem:[%s4790_s1 + $0x400] ss:$8 sps:$4 sm:$0xff]   ;;  %v3537_v31 = vld [vmem:[%s4790_s1 + $0x914] ss:$8 sps:$4 sm:$0xff]  }
  0xcb   :  { %2193 = vmatpush1.bf16.msra.mxu1 %v3438_v32  ;;  %v2709_v32 = vcombine.high %v4517_v28, %v4517_v28 }
  0xcc   :  { %2398 = vmatpush1.bf16.msra.mxu0 %v3441_v33  ;;  %2194 = vmatprep.subr.bf16.mxu1 %v3446_v34  ;;  %v2719_v33 = vcombine.high %v4522_v29, %v4522_v29  ;;  %v3532_v34 = vld [vmem:[%s4790_s1 + $0x410] ss:$8 sps:$4 sm:$0xff]  }
  0xcd   :  { %2399 = vmatprep.subr.bf16.mxu0 %v3449_v35  ;;  %v3535_v35 = vld [vmem:[%s4790_s1 + $0x910] ss:$8 sps:$4 sm:$0xff]  }
  0xcf   :  { %2195 = vmatpush1.bf16.msra.mxu1 %v3444_v36  ;;  %v3540_v36 = vld [vmem:[%s4790_s1 + $0x424] ss:$8 sps:$4 sm:$0xff]  }
  0xd0   :  { %2400 = vmatpush1.bf16.msra.mxu0 %v3447_v37  ;;  %2196 = vmatprep.subr.bf16.mxu1 %v3452_v38  ;;  %v3543_v37 = vld [vmem:[%s4790_s1 + $0x924] ss:$8 sps:$4 sm:$0xff]   ;;  %v3538_v38 = vld [vmem:[%s4790_s1 + $0x420] ss:$8 sps:$4 sm:$0xff]  }
  0xd1   :  { %2401 = vmatprep.subr.bf16.mxu0 %v3455_v39  ;;  %v3541_v39 = vld [vmem:[%s4790_s1 + $0x920] ss:$8 sps:$4 sm:$0xff]  }
  0xd3   :  { %2197 = vmatpush1.bf16.msra.mxu1 %v3450_v40  ;;  %v3546_v40 = vld [vmem:[%s4790_s1 + $0x434] ss:$8 sps:$4 sm:$0xff]  }
  0xd4   :  { %2402 = vmatpush1.bf16.msra.mxu0 %v3453_v41  ;;  %2198 = vmatprep.subr.bf16.mxu1 %v3458_v42  ;;  %v3549_v41 = vld [vmem:[%s4790_s1 + $0x934] ss:$8 sps:$4 sm:$0xff]   ;;  %v3544_v42 = vld [vmem:[%s4790_s1 + $0x430] ss:$8 sps:$4 sm:$0xff]  }
  0xd5   :  { %2403 = vmatprep.subr.bf16.mxu0 %v3461_v43  ;;  %v3547_v43 = vld [vmem:[%s4790_s1 + $0x930] ss:$8 sps:$4 sm:$0xff]  }
  0xd7   :  { %2199 = vmatpush1.bf16.msra.mxu1 %v3456_v44  ;;  %v3552_v44 = vld [vmem:[%s4790_s1 + $0x444] ss:$8 sps:$4 sm:$0xff]  }
  0xd8   :  { %2404 = vmatpush1.bf16.msra.mxu0 %v3459_v45  ;;  %2200 = vmatprep.subr.bf16.mxu1 %v3464_v46  ;;  %v3555_v45 = vld [vmem:[%s4790_s1 + $0x944] ss:$8 sps:$4 sm:$0xff]   ;;  %v3550_v46 = vld [vmem:[%s4790_s1 + $0x440] ss:$8 sps:$4 sm:$0xff]  }
  0xd9   :  { %2405 = vmatprep.subr.bf16.mxu0 %v3467_v47  ;;  %v3553_v47 = vld [vmem:[%s4790_s1 + $0x940] ss:$8 sps:$4 sm:$0xff]  }
  0xdb   :  { %2201 = vmatpush1.bf16.msra.mxu1 %v3462_v48  ;;  %v3558_v48 = vld [vmem:[%s4790_s1 + $0x454] ss:$8 sps:$4 sm:$0xff]  }
  0xdc   :  { %2406 = vmatpush1.bf16.msra.mxu0 %v3465_v49  ;;  %2202 = vmatprep.subr.bf16.mxu1 %v3470_v50  ;;  %v3561_v49 = vld [vmem:[%s4790_s1 + $0x954] ss:$8 sps:$4 sm:$0xff]   ;;  %v3556_v50 = vld [vmem:[%s4790_s1 + $0x450] ss:$8 sps:$4 sm:$0xff]  }
  0xdd   :  { %2407 = vmatprep.subr.bf16.mxu0 %v3473_v51  ;;  %v3559_v51 = vld [vmem:[%s4790_s1 + $0x950] ss:$8 sps:$4 sm:$0xff]  }
  0xdf   :  { %2203 = vmatpush1.bf16.msra.mxu1 %v3468_v52  ;;  %v3564_v52 = vld [vmem:[%s4790_s1 + $0x464] ss:$8 sps:$4 sm:$0xff]  }
  0xe0   :  { %2408 = vmatpush1.bf16.msra.mxu0 %v3471_v53  ;;  %2204 = vmatprep.subr.bf16.mxu1 %v3476_v54  ;;  %v3567_v53 = vld [vmem:[%s4790_s1 + $0x964] ss:$8 sps:$4 sm:$0xff]   ;;  %v3562_v54 = vld [vmem:[%s4790_s1 + $0x460] ss:$8 sps:$4 sm:$0xff]  }
  0xe1   :  { %2409 = vmatprep.subr.bf16.mxu0 %v3479_v55  ;;  %v3565_v55 = vld [vmem:[%s4790_s1 + $0x960] ss:$8 sps:$4 sm:$0xff]  }
  0xe3   :  { %2205 = vmatpush1.bf16.msra.mxu1 %v3474_v56  ;;  %v3570_v56 = vld [vmem:[%s4790_s1 + $0x474] ss:$8 sps:$4 sm:$0xff]  }
  0xe4   :  { %2410 = vmatpush1.bf16.msra.mxu0 %v3477_v57  ;;  %2206 = vmatprep.subr.bf16.mxu1 %v3482_v58  ;;  %v3573_v57 = vld [vmem:[%s4790_s1 + $0x974] ss:$8 sps:$4 sm:$0xff]   ;;  %v3568_v58 = vld [vmem:[%s4790_s1 + $0x470] ss:$8 sps:$4 sm:$0xff]  }
  0xe5   :  { %2411 = vmatprep.subr.bf16.mxu0 %v3485_v59  ;;  %v3571_v59 = vld [vmem:[%s4790_s1 + $0x970] ss:$8 sps:$4 sm:$0xff]  }
  0xe7   :  { %2207 = vmatpush1.bf16.msra.mxu1 %v3480_v60  ;;  %v3576_v60 = vld [vmem:[%s4790_s1 + $0x484] ss:$8 sps:$4 sm:$0xff]  }
  0xe8   :  { %2412 = vmatpush1.bf16.msra.mxu0 %v3483_v61  ;;  %2208 = vmatprep.subr.bf16.mxu1 %v3488_v62  ;;  %v3579_v61 = vld [vmem:[%s4790_s1 + $0x984] ss:$8 sps:$4 sm:$0xff]   ;;  %v3574_v62 = vld [vmem:[%s4790_s1 + $0x480] ss:$8 sps:$4 sm:$0xff]  }
  0xe9   :  { %2413 = vmatprep.subr.bf16.mxu0 %v3491_v63  ;;  %v3577_v63 = vld [vmem:[%s4790_s1 + $0x980] ss:$8 sps:$4 sm:$0xff]  }
  0xeb   :  { %2209 = vmatpush1.bf16.msra.mxu1 %v3486_v0  ;;  %v3582_v0 = vld [vmem:[%s4790_s1 + $0x494] ss:$8 sps:$4 sm:$0xff]  }
  0xec   :  { %2414 = vmatpush1.bf16.msra.mxu0 %v3489_v1  ;;  %2210 = vmatprep.subr.bf16.mxu1 %v3494_v2  ;;  %v3585_v1 = vld [vmem:[%s4790_s1 + $0x994] ss:$8 sps:$4 sm:$0xff]   ;;  %v3580_v2 = vld [vmem:[%s4790_s1 + $0x490] ss:$8 sps:$4 sm:$0xff]  }
  0xed   :  { %2415 = vmatprep.subr.bf16.mxu0 %v3497_v3  ;;  %v3583_v3 = vld [vmem:[%s4790_s1 + $0x990] ss:$8 sps:$4 sm:$0xff]  }
  0xef   :  { %2211 = vmatpush1.bf16.msra.mxu1 %v3492_v4  ;;  %v3588_v4 = vld [vmem:[%s4790_s1 + $0x4a4] ss:$8 sps:$4 sm:$0xff]  }
  0xf0   :  { %2416 = vmatpush1.bf16.msra.mxu0 %v3495_v5  ;;  %2212 = vmatprep.subr.bf16.mxu1 %v3500_v6  ;;  %v3591_v5 = vld [vmem:[%s4790_s1 + $0x9a4] ss:$8 sps:$4 sm:$0xff]   ;;  %v3586_v6 = vld [vmem:[%s4790_s1 + $0x4a0] ss:$8 sps:$4 sm:$0xff]  }
  0xf1   :  { %2417 = vmatprep.subr.bf16.mxu0 %v3503_v7  ;;  %v3589_v7 = vld [vmem:[%s4790_s1 + $0x9a0] ss:$8 sps:$4 sm:$0xff]  }
  0xf3   :  { %2213 = vmatpush1.bf16.msra.mxu1 %v3498_v8  ;;  %v3594_v8 = vld [vmem:[%s4790_s1 + $0x4b4] ss:$8 sps:$4 sm:$0xff]  }
  0xf4   :  { %2418 = vmatpush1.bf16.msra.mxu0 %v3501_v9  ;;  %2214 = vmatprep.subr.bf16.mxu1 %v3506_v10  ;;  %v3597_v9 = vld [vmem:[%s4790_s1 + $0x9b4] ss:$8 sps:$4 sm:$0xff]   ;;  %v3592_v10 = vld [vmem:[%s4790_s1 + $0x4b0] ss:$8 sps:$4 sm:$0xff]  }
  0xf5   :  { %2419 = vmatprep.subr.bf16.mxu0 %v3509_v11  ;;  %v3595_v11 = vld [vmem:[%s4790_s1 + $0x9b0] ss:$8 sps:$4 sm:$0xff]  }
  0xf7   :  { %2215 = vmatpush1.bf16.msra.mxu1 %v3504_v12  ;;  %v3600_v12 = vld [vmem:[%s4790_s1 + $0x4c4] ss:$8 sps:$4 sm:$0xff]  }
  0xf8   :  { %2420 = vmatpush1.bf16.msra.mxu0 %v3507_v13  ;;  %2216 = vmatprep.subr.bf16.mxu1 %v3512_v14  ;;  %v3603_v13 = vld [vmem:[%s4790_s1 + $0x9c4] ss:$8 sps:$4 sm:$0xff]   ;;  %v3598_v14 = vld [vmem:[%s4790_s1 + $0x4c0] ss:$8 sps:$4 sm:$0xff]  }
  0xf9   :  { %2421 = vmatprep.subr.bf16.mxu0 %v3515_v15  ;;  %v3601_v15 = vld [vmem:[%s4790_s1 + $0x9c0] ss:$8 sps:$4 sm:$0xff]  }
  0xfb   :  { %2217 = vmatpush1.bf16.msra.mxu1 %v3510_v16  ;;  %v3606_v16 = vld [vmem:[%s4790_s1 + $0x4d4] ss:$8 sps:$4 sm:$0xff]  }
  0xfc   :  { %2422 = vmatpush1.bf16.msra.mxu0 %v3513_v17  ;;  %2218 = vmatprep.subr.bf16.mxu1 %v3518_v19  ;;  %v3609_v17 = vld [vmem:[%s4790_s1 + $0x9d4] ss:$8 sps:$4 sm:$0xff]   ;;  %v3604_v19 = vld [vmem:[%s4790_s1 + $0x4d0] ss:$8 sps:$4 sm:$0xff]  }
  0xfd   :  { %2423 = vmatprep.subr.bf16.mxu0 %v3521_v21  ;;  %v3607_v21 = vld [vmem:[%s4790_s1 + $0x9d0] ss:$8 sps:$4 sm:$0xff]  }
  0xff   :  { %2219 = vmatpush1.bf16.msra.mxu1 %v3516_v22  ;;  %v3612_v22 = vld [vmem:[%s4790_s1 + $0x4e4] ss:$8 sps:$4 sm:$0xff]  }
 0x100   :  { %2424 = vmatpush1.bf16.msra.mxu0 %v3519_v23  ;;  %2229 = vmatprep.subr.bf16.mxu1 %v3526_v26  ;;  %v3615_v23 = vld [vmem:[%s4790_s1 + $0x9e4] ss:$8 sps:$4 sm:$0xff]   ;;  %v3610_v26 = vld [vmem:[%s4790_s1 + $0x4e0] ss:$8 sps:$4 sm:$0xff]  }
 0x101   :  { %2434 = vmatprep.subr.bf16.mxu0 %v3531_v18  ;;  %v3613_v18 = vld [vmem:[%s4790_s1 + $0x9e0] ss:$8 sps:$4 sm:$0xff]  }
 0x102   :  { %2221 = vmatmul.mubr.bf16.vlgmr.msra.gmra.mrb[0].mxu1 %v2706_v20  ;;  %v3618_v20 = vld [vmem:[%s4790_s1 + $0x4f4] ss:$8 sps:$4 sm:$0xff]  }
 0x103   :  { %2426 = vmatmul.mubr.bf16.vlgmr.msra.gmra.mrb[0].mxu0 %v2716_v27  ;;  %2230 = vmatpush1.bf16.msra.mxu1 %v3524_v30  ;;  %v3621_v27 = vld [vmem:[%s4790_s1 + $0x9f4] ss:$8 sps:$4 sm:$0xff]   ;;  %v3616_v30 = vld [vmem:[%s4790_s1 + $0x4f0] ss:$8 sps:$4 sm:$0xff]  }
 0x104   :  { %2435 = vmatpush1.bf16.msra.mxu0 %v3529_v24  ;;  %2231 = vmatprep.subr.bf16.mxu1 %v3534_v25  ;;  %v3619_v24 = vld [vmem:[%s4790_s1 + $0x9f0] ss:$8 sps:$4 sm:$0xff]   ;;  %v3628_v25 = vld [vmem:[%s4790_s1 + $0xa04] ss:$8 sps:$4 sm:$0xff]  }
 0x105   :  { %2436 = vmatprep.subr.bf16.mxu0 %v3537_v31  ;;  %2261 = vmatprep.mubr.bf16.mxu1 %v2709_v32  ;;  %v3633_v31 = vld [vmem:[%s4792_s3 + $0x40] sm:$0xff]   ;;  %v2708_v32 = vcombine.low %v4517_v28, %v4517_v28  ;;  %v3635_v28 = vld [vmem:[%s4792_s3 + $0x48] sm:$0xff]  }
 0x106   :  { %2466 = vmatprep.mubr.bf16.mxu0 %v2719_v33  ;;  %v2718_v33 = vcombine.low %v4522_v29, %v4522_v29  ;;  %v3629_v29 = vld [vmem:[%s4790_s1 + $0xa10] ss:$8 sps:$4 sm:$0xff]  }
 0x107   :  { %2232 = vmatpush1.bf16.msra.mxu1 %v3532_v34  ;;  %v3626_v34 = vld [vmem:[%s4790_s1 + $0xa00] ss:$8 sps:$4 sm:$0xff]  }
 0x108   :  { %2437 = vmatpush1.bf16.msra.mxu0 %v3535_v35  ;;  %2233 = vmatprep.subr.bf16.mxu1 %v3540_v36  ;;  %v3631_v35 = vld [vmem:[%s4790_s1 + $0xa14] ss:$8 sps:$4 sm:$0xff]   ;;  %v3634_v36 = vld [vmem:[%s4792_s3] sm:$0xff]  }
 0x109   :  { %2438 = vmatprep.subr.bf16.mxu0 %v3543_v37  ;;  %v3649_v37 = vmov 0  }
 0x10b   :  { %2234 = vmatpush1.bf16.msra.mxu1 %v3538_v38  ;;  %v3636_v38 = vld [vmem:[%s4792_s3 + $0x8] sm:$0xff]  }
 0x10c   :  { %2439 = vmatpush1.bf16.msra.mxu0 %v3541_v39  ;;  %2235 = vmatprep.subr.bf16.mxu1 %v3546_v40  ;;  %v3637_v39 = vld [vmem:[%s4792_s3 + $0x50] sm:$0xff]  }
 0x10d   :  { %2440 = vmatprep.subr.bf16.mxu0 %v3549_v41  ;;  %v3638_v40 = vld [vmem:[%s4792_s3 + $0x10] sm:$0xff]  }
 0x10e   :  { %v3632_v41 = vld [vmem:[%s4791_s0 + $0x50] ss:$0 sps:$4 sm:$0xff]  }
 0x10f   :  { %2236 = vmatpush1.bf16.msra.mxu1 %v3544_v42  ;;  %v3639_v42 = vld [vmem:[%s4792_s3 + $0x58] sm:$0xff]  }
 0x110   :  { %2441 = vmatpush1.bf16.msra.mxu0 %v3547_v43  ;;  %2237 = vmatprep.subr.bf16.mxu1 %v3552_v44  ;;  %v3640_v43 = vld [vmem:[%s4792_s3 + $0x18] sm:$0xff]   ;;  %v3641_v44 = vld [vmem:[%s4792_s3 + $0x60] sm:$0xff]  }
 0x111   :  { %2442 = vmatprep.subr.bf16.mxu0 %v3555_v45  ;;  %v3642_v45 = vld [vmem:[%s4792_s3 + $0x20] sm:$0xff]  }
 0x113   :  { %2238 = vmatpush1.bf16.msra.mxu1 %v3550_v46  ;;  %v3643_v46 = vld [vmem:[%s4792_s3 + $0x68] sm:$0xff]  }
 0x114   :  { %2443 = vmatpush1.bf16.msra.mxu0 %v3553_v47  ;;  %2239 = vmatprep.subr.bf16.mxu1 %v3558_v48  ;;  %v3644_v47 = vld [vmem:[%s4792_s3 + $0x28] sm:$0xff]   ;;  %v3645_v48 = vld [vmem:[%s4792_s3 + $0x70] sm:$0xff]  }
 0x115   :  { %2444 = vmatprep.subr.bf16.mxu0 %v3561_v49  ;;  %v3646_v49 = vld [vmem:[%s4792_s3 + $0x30] sm:$0xff]  }
 0x117   :  { %2240 = vmatpush1.bf16.msra.mxu1 %v3556_v50  ;;  %v3647_v50 = vld [vmem:[%s4792_s3 + $0x78] sm:$0xff]  }
 0x118   :  { %2445 = vmatpush1.bf16.msra.mxu0 %v3559_v51  ;;  %2241 = vmatprep.subr.bf16.mxu1 %v3564_v52  ;;  %v3648_v51 = vld [vmem:[%s4792_s3 + $0x38] sm:$0xff]   ;;  %v358_v52 = vlaneseq }
 0x119   :  { %2446 = vmatprep.subr.bf16.mxu0 %v3567_v53 }
 0x11a   :  { %v359_v53 = vshrl.u32 %v358_v52, 7 }
 0x11b   :  { %2242 = vmatpush1.bf16.msra.mxu1 %v3562_v54 }
 0x11c   :  { %2447 = vmatpush1.bf16.msra.mxu0 %v3565_v55  ;;  %2243 = vmatprep.subr.bf16.mxu1 %v3570_v56 }
 0x11d   :  { %2448 = vmatprep.subr.bf16.mxu0 %v3573_v57  ;;  %v360_v57 = vsub.s32 0, %v359_v53 }
 0x11f   :  { %2244 = vmatpush1.bf16.msra.mxu1 %v3568_v58 }
 0x120   :  { %2449 = vmatpush1.bf16.msra.mxu0 %v3571_v59  ;;  %2245 = vmatprep.subr.bf16.mxu1 %v3576_v60  ;;  %v356_v59 = vld [vmem:[%s4793_s2] sm:$0x3]  ;;  %v364_v60 = vsub.s32 1, %v359_v53 }
 0x121   :  { %2450 = vmatprep.subr.bf16.mxu0 %v3579_v61  ;;  %v361_v61 = vrot.slane %v356_v59, %v360_v57 }
 0x123   :  { %2246 = vmatpush1.bf16.msra.mxu1 %v3574_v62  ;;  %v365_v62 = vrot.slane %v356_v59, %v364_v60 }
 0x124   :  { %2451 = vmatpush1.bf16.msra.mxu0 %v3577_v63  ;;  %2247 = vmatprep.subr.bf16.mxu1 %v3582_v0 }
 0x125   :  { %2452 = vmatprep.subr.bf16.mxu0 %v3585_v1 }
 0x127   :  { %2248 = vmatpush1.bf16.msra.mxu1 %v3580_v2 }
 0x128   :  { %2453 = vmatpush1.bf16.msra.mxu0 %v3583_v3  ;;  %2249 = vmatprep.subr.bf16.mxu1 %v3588_v4 }
 0x129   :  { %2454 = vmatprep.subr.bf16.mxu0 %v3591_v5 }
 0x12b   :  { %2250 = vmatpush1.bf16.msra.mxu1 %v3586_v6 }
 0x12c   :  { %2455 = vmatpush1.bf16.msra.mxu0 %v3589_v7  ;;  %2251 = vmatprep.subr.bf16.mxu1 %v3594_v8 }
 0x12d   :  { %2456 = vmatprep.subr.bf16.mxu0 %v3597_v9 }
 0x12f   :  { %2252 = vmatpush1.bf16.msra.mxu1 %v3592_v10 }
 0x130   :  { %2457 = vmatpush1.bf16.msra.mxu0 %v3595_v11  ;;  %2253 = vmatprep.subr.bf16.mxu1 %v3600_v12  ;;  %v3046_v12 = vld [vmem:[%s4794_s4] ss:$0 sm:$0xff] }
 0x131   :  { %2458 = vmatprep.subr.bf16.mxu0 %v3603_v13 }
 0x133   :  { %2254 = vmatpush1.bf16.msra.mxu1 %v3598_v14 }
 0x134   :  { %2459 = vmatpush1.bf16.msra.mxu0 %v3601_v15  ;;  %2255 = vmatprep.subr.bf16.mxu1 %v3606_v16 }
 0x135   :  { %2460 = vmatprep.subr.bf16.mxu0 %v3609_v17 }
 0x137   :  { %2256 = vmatpush1.bf16.msra.mxu1 %v3604_v19 }
 0x138   :  { %2461 = vmatpush1.bf16.msra.mxu0 %v3607_v21  ;;  %2257 = vmatprep.subr.bf16.mxu1 %v3612_v22 }
 0x139   :  { %2462 = vmatprep.subr.bf16.mxu0 %v3615_v23 }
 0x13b   :  { %2258 = vmatpush1.bf16.msra.mxu1 %v3610_v26 }
 0x13c   :  { %2463 = vmatpush1.bf16.msra.mxu0 %v3613_v18  ;;  %2259 = vmatprep.subr.bf16.mxu1 %v3618_v20 }
 0x13d   :  { %2464 = vmatprep.subr.bf16.mxu0 %v3621_v27 }
 0x13f   :  { %2260 = vmatpush1.bf16.msra.mxu1 %v3616_v30 }
 0x140   :  { %2465 = vmatpush1.bf16.msra.mxu0 %v3619_v24  ;;  %3063 = vmatprep.subr.bf16.mxu1 %v3633_v31 }
 0x141   :  { %2475 = vmatprep.subr.bf16.mxu0 %v3628_v25 }
 0x142   :  { %2262 = vmatmul.mubr.bf16.vlgmr.msra.gmra.mrb[0].mxu1 %v2708_v32 }
 0x143   :  { %2467 = vmatmul.mubr.bf16.vlgmr.msra.gmra.mrb[0].mxu0 %v2718_v33  ;;  %3064 = vmatpush3.bf16.msra.mxu1 %v3634_v36 }
 0x144   :  { %2476 = vmatpush1.bf16.msra.mxu0 %v3626_v34  ;;  %2507 = vmatprep.mubr.bf16.mxu0 %v3649_v37 }
 0x145   :  { %2477 = vmatprep.subr.bf16.mxu0 %v3631_v35  ;;  %3065 = vmatprep.subr.bf16.mxu1 %v3635_v28 }
 0x147   :  { %3066 = vmatpush3.bf16.msra.mxu1 %v3636_v38 }
 0x148   :  { %2478 = vmatpush1.bf16.msra.mxu0 %v3629_v29  ;;  %3067 = vmatprep.subr.bf16.mxu1 %v3637_v39 }
 0x14b   :  { %3068 = vmatpush3.bf16.msra.mxu1 %v3638_v40 }
 0x14c   :  { %3069 = vmatprep.subr.bf16.mxu1 %v3639_v42 }
 0x14f   :  { %3045 = vmatmul.mubr.msk.bf16.vlgmr.msra.gmra.mrb[0].mxu0 %vm2061_vm0, %v3632_v41  ;;  %3070 = vmatpush3.bf16.msra.mxu1 %v3640_v43 }
 0x150   :  { %3071 = vmatprep.subr.bf16.mxu1 %v3641_v44 }
 0x153   :  { %3072 = vmatpush3.bf16.msra.mxu1 %v3642_v45 }
 0x154   :  { %3073 = vmatprep.subr.bf16.mxu1 %v3643_v46 }
 0x157   :  { %3074 = vmatpush3.bf16.msra.mxu1 %v3644_v47 }
 0x158   :  { %3075 = vmatprep.subr.bf16.mxu1 %v3645_v48 }
 0x15b   :  { %3076 = vmatpush3.bf16.msra.mxu1 %v3646_v49 }
 0x15c   :  { %3077 = vmatprep.subr.bf16.mxu1 %v3647_v50 }
 0x15f   :  { %3078 = vmatpush3.bf16.msra.mxu1 %v3648_v51 }
 0x215   :  { %v2263_v54 = vpop.f32.mrb[0].mxu1 }
 0x216   :  { %v2265_v55 = vpop.f32.mrb[1].mxu1  ;;  %v3085_v63 = vadd.f32 %v2263_v54, %v361_v61 }
 0x217   :  { %v2267_v56 = vpop.f32.mrb[2].mxu1  ;;  %v3087_v0 = vadd.f32 %v2265_v55, %v365_v62 }
 0x218   :  { %v2268_v58 = vpop.f32.mrb[3].mxu1 }
 0x222   :  { %v2509_v1 = vpop.f32.mrb[0].mxu0 }
 0x223   :  { %v3086_v2 = vadd.f32 %v3085_v63, %v2509_v1  ;;  %v2511_v3 = vpop.f32.mrb[1].mxu0 }
 0x224   :  { %v3088_v4 = vadd.f32 %v3087_v0, %v2511_v3  ;;  %v2513_v5 = vpop.f32.mrb[2].mxu0 }
 0x225   :  { %v2516_v6 = vmax.f32 %v3086_v2, 0.0  ;;  %v2514_v7 = vpop.f32.mrb[3].mxu0 }
 0x226   :  { %v2517_v8 = vmax.f32 %v3088_v4, 0.0 }
 0x227   :  { %v2518_v10 = vpack.c.bf16 %v2516_v6, %v2516_v6 }
 0x228   :  { %v2519_v9 = vpack.c.bf16 %v2517_v8, %v2517_v8 }
 0x22a   :  { %2687 = vmatprep.mubr.bf16.mxu1 %v2519_v9 }
 0x22b   :  { %2688 = vmatmul.mubr.bf16.vlgmr.msra.gmra.mrb[4].mxu1 %v2518_v10 }
 0x2fe   :  { %v3079_v11 = vpop.f32.mrb[4].mxu1 }
 0x2ff   :  { %v3080_v13 = vpop.f32.mrb[5].mxu1 }
 0x300   :  { %v3081_v14 = vadd.f32 %v3080_v13, %v3079_v11  ;;  %v3082_v15 = vpop.f32.mrb[6].mxu1 }
 0x301   :  { %v3083_v16 = vpop.f32.mrb[7].mxu1 }
 0x302   :  { %v2690_v17 = vadd.f32 %v3081_v14, %v3046_v12 }
 0x304   :  { %2695 = vst [vmem:[%s4795_s5] sm:$0xff] %v2690_v17 }

</bundles_post_ra>
